<compile_context>
chip_gen: v6e
topology: v6e:2x2x1
jax: 0.10.0
libtpu: 0.0.40
codegen_flags: <defaults>
</compile_context>

<pallas_src>
import functools

import numpy as np

import jax
import jax.numpy as jnp
from jax import lax
from jax.experimental import pallas as pl
from jax.experimental.pallas import tpu as pltpu


def _bottleneck_kernel(*refs, has_proj):
    if has_proj:
        (x_ref, xt_ref, xb_ref, w1_ref, w2_ref, w3_ref, ws_ref,
         b1_ref, b2_ref, b3_ref, out_ref) = refs
    else:
        (x_ref, xt_ref, xb_ref, w1_ref, w2_ref, w3_ref,
         b1_ref, b2_ref, b3_ref, out_ref) = refs
        ws_ref = None

    TH, W, Cpi = x_ref.shape[1], x_ref.shape[2], x_ref.shape[3]
    Pp = w1_ref.shape[-1]
    Cpo = out_ref.shape[-1]
    M = TH * W                       # output rows of this tile
    L = (TH + 2) * W                 # rows including the two halo rows
    ti = pl.program_id(1)
    n_tiles = pl.num_programs(1)
    f32, bf16 = jnp.float32, jnp.bfloat16

    x_mid = x_ref[...].reshape(M, Cpi)                # bf16 activations (tile rows)
    xt = xt_ref[...].reshape(W, Cpi)                  # top halo row (clamped)
    xb = xb_ref[...].reshape(W, Cpi)                  # bottom halo row (clamped)
    x_all = jnp.concatenate([xt, x_mid, xb], axis=0)  # (L, Cpi) bf16

    # --- conv1 (1x1) + bn1 + relu: one fused MXU matmul over tile + halos ----
    h1f = jnp.dot(x_all, w1_ref[...], preferred_element_type=f32) + b1_ref[...]
    # Halo rows that fall outside the image (global rows -1 / H) are zero pad.
    ridx = lax.broadcasted_iota(jnp.int32, (L, Pp), 0)
    halo_pad = ((ridx < W) & (ti == 0)) | \
               ((ridx >= (TH + 1) * W) & (ti == n_tiles - 1))
    h1 = jnp.where(halo_pad, 0.0, jnp.maximum(h1f, 0.0)).astype(bf16)   # (L, Pp)

    # --- conv2 (3x3, stride 1, pad 1): 9 accumulating K=Pp matmuls ------------
    # Column taps (kw offsets -1, 0, +1); zero pad the wrapped column.
    h1_3d = h1.reshape(TH + 2, W, Pp)
    zc = jnp.zeros((TH + 2, 1, Pp), bf16)
    tap_m1 = jnp.concatenate([zc, h1_3d[:, :W - 1, :]], axis=1).reshape(L, Pp)
    tap_p1 = jnp.concatenate([h1_3d[:, 1:, :], zc], axis=1).reshape(L, Pp)
    taps = (tap_m1, h1, tap_p1)                       # kw = 0, 1, 2 (HWIO order)

    acc = None                                        # first matmul seeds the acc
    for kh in range(3):                               # row offset kh-1 -> rows [kh*W, kh*W+M)
        lo = kh * W
        for kw in range(3):
            part = jnp.dot(taps[kw][lo:lo + M], w2_ref[kh, kw],
                           preferred_element_type=f32)
            acc = part if acc is None else acc + part
    h2 = jnp.maximum(acc + b2_ref[...], 0.0).astype(bf16)               # (M, Pp)

    # --- conv3 (1x1) + bn3, shortcut fused into the same accumulator ---------
    acc3 = jnp.dot(h2, w3_ref[...], preferred_element_type=f32)
    if has_proj:
        acc3 = acc3 + jnp.dot(x_mid, ws_ref[...], preferred_element_type=f32)
    else:
        acc3 = acc3 + x_mid.astype(f32)               # identity: no matmul at all
    out = jnp.maximum(acc3 + b3_ref[...], 0.0)        # b3 already includes bs (proj)
    out_ref[...] = out.reshape(1, TH, W, Cpo).astype(out_ref.dtype)


def _round_up(c, m=128):
    return ((c + m - 1) // m) * m


def _weight_bytes(Cpi, Pp, Cpo, has_proj):
    k = Cpi * Pp + 9 * Pp * Pp + Pp * Cpo + (Cpi * Cpo if has_proj else 0)
    return 2 * k                                      # bf16


def _vmem_budget():
    """Generation-aware scoped-VMEM budget for the kernel (bytes)."""
    try:
        cap = pltpu.get_tpu_info().vmem_capacity_bytes
    except Exception:                                 # no query API: be conservative
        cap = 128 * 1024 * 1024
    if cap <= 64 * 1024 * 1024:                       # v7x-class: 64 MiB per TensorCore
        return 40 * 1024 * 1024
    return 96 * 1024 * 1024                           # v5e / v6e: 128 MiB


def _estimate_vmem(TH, W, Cpi, Pp, Cpo, has_proj, out_bytes):
    """Rough per-step VMEM footprint (double-buffered I/O, worst-case weights)."""
    L, M = (TH + 2) * W, TH * W
    x_in = 2 * (M + 2 * W) * Cpi * 2                  # bf16 tile + 2 halo rows, 2 buffers
    out = 2 * M * Cpo * out_bytes                     # output tile, 2 buffers
    w = 2 * _weight_bytes(Cpi, Pp, Cpo, has_proj)     # assume double-buffered (fallback)
    inter = (L * Cpi * 2                              # x_all (bf16)
             + L * Pp * (4 + 2 + 2 + 2)               # h1f (f32), h1 + two taps (bf16)
             + M * Pp * (4 + 2)                       # conv2 acc (f32), h2 (bf16)
             + M * Cpo * (4 + out_bytes))             # conv3 acc (f32), out
    return x_in + out + w + int(1.25 * inter)


def _pick_tile_h(H, W, Cpi, Pp, Cpo, has_proj, out_bytes, vmem_budget,
                 prefer_multi_tile=False):
    divisors = [d for d in range(1, H + 1) if H % d == 0]
    fits = [d for d in divisors
            if _estimate_vmem(d, W, Cpi, Pp, Cpo, has_proj, out_bytes) <= vmem_budget]
    if not fits:
        return 1            # degenerate tiny-matmul fallback; correctness over speed
    best = max(fits)        # biggest tile that fits -> amortizes per-step overhead
    if prefer_multi_tile and best == H:
        # v7x has 2 TensorCores: keep >= 2 programs on a parallel axis when N == 1,
        # but never at the cost of starving the MXU (keep TH*W >= 256).
        smaller = [d for d in fits if d < H and d * W >= 256]
        if smaller:
            best = max(smaller)
    return best


def bottleneck_forward_nhwc(x_nhwc, params, stride=1, tile_h=None,
                            out_dtype=jnp.float32):
    """Pallas Bottleneck forward; NHWC in / NHWC out.

    For stacked blocks prefer this entry point with bf16, channel-padded
    activations and out_dtype=jnp.bfloat16: the pad / cast / un-pad passes are
    then skipped entirely and the output can feed the next block directly.
    """
    if stride != 1:
        # TODO(synk): stride > 1 (downsampling Bottleneck) needs a strided
        # spatial gather of the activations; not implemented in this kernel.
        raise NotImplementedError("stride > 1 not supported by this kernel")

    N, H, W, Cin = x_nhwc.shape
    P = params["w1"].shape[-1]
    Cout = params["w3"].shape[-1]
    has_proj = params["ws"] is not None

    Cpi, Pp, Cpo = _round_up(Cin), _round_up(P), _round_up(Cout)
    if not has_proj:
        assert Cin == Cout and Cpi == Cpo, "identity shortcut needs Cin == Cout"

    f32, bf16 = jnp.float32, jnp.bfloat16
    out_bytes = int(np.dtype(out_dtype).itemsize)
    vmem_budget = _vmem_budget()

    if tile_h is None:
        tile_h = _pick_tile_h(H, W, Cpi, Pp, Cpo, has_proj, out_bytes,
                              vmem_budget, prefer_multi_tile=(N < 2))
    assert H % tile_h == 0, f"tile_h={tile_h} must divide H={H}"
    TH = tile_h
    n_tiles = H // TH

    # --- fold BN scales into weights, pad channels to 128 multiples, cast bf16
    def pad2(a, r, c):
        return jnp.pad(a, ((0, r - a.shape[0]), (0, c - a.shape[1])))

    def padb(b, c):
        return jnp.pad(b, (0, c - b.shape[0])).reshape(1, c).astype(f32)

    w1p = pad2(params["w1"] * params["s1"][None, :], Cpi, Pp).astype(bf16)
    w2f = params["w2"] * params["s2"][None, None, None, :]            # (3,3,P,P) HWIO
    w2p = jnp.pad(w2f, ((0, 0), (0, 0), (0, Pp - P), (0, Pp - P))).astype(bf16)
    w3p = pad2(params["w3"] * params["s3"][None, :], Pp, Cpo).astype(bf16)
    b1p = padb(params["b1"], Pp)
    b2p = padb(params["b2"], Pp)
    if has_proj:
        wsp = pad2(params["ws"] * params["ss"][None, :], Cpi, Cpo).astype(bf16)
        b3p = padb(params["b3"] + params["bs"], Cpo)   # conv3 + shortcut bias fused
    else:
        wsp = None
        b3p = padb(params["b3"], Cpo)

    xp = x_nhwc
    if Cin != Cpi:
        xp = jnp.pad(xp, ((0, 0), (0, 0), (0, 0), (0, Cpi - Cin)))
    if xp.dtype != bf16:
        xp = xp.astype(bf16)

    wk = _weight_bytes(Cpi, Pp, Cpo, has_proj)
    flops = 2 * N * H * W * (Cpi * Pp + 9 * Pp * Pp + Pp * Cpo
                             + (Cpi * Cpo if has_proj else 0))
    bytes_accessed = N * H * W * (Cpi * 2 + Cpo * out_bytes) + wk
    cost = pl.CostEstimate(flops=flops, transcendentals=0,
                           bytes_accessed=bytes_accessed)

    kernel = functools.partial(_bottleneck_kernel, has_proj=has_proj)
    args = [xp, xp, xp, w1p, w2p, w3p]
    if has_proj:
        args.append(wsp)
    args += [b1p, b2p, b3p]

    def build_call(single_buffer_consts):
        def const_spec(shape):
            z = (0,) * len(shape)
            if single_buffer_consts:
                # Constant index map: a second pipeline buffer is pure VMEM waste.
                return pl.BlockSpec(shape, lambda n, i, _z=z: _z,
                                    pipeline_mode=pl.Buffered(1))
            return pl.BlockSpec(shape, lambda n, i, _z=z: _z)

        in_specs = [
            # main rows of the tile
            pl.BlockSpec((1, TH, W, Cpi), lambda n, i: (n, i, 0, 0)),
            # 1-row top / bottom halo (clamped at the image edge; masked in-kernel)
            pl.BlockSpec((1, 1, W, Cpi),
                         lambda n, i: (n, jnp.maximum(i * TH - 1, 0), 0, 0)),
            pl.BlockSpec((1, 1, W, Cpi),
                         lambda n, i: (n, jnp.minimum(i * TH + TH, H - 1), 0, 0)),
            const_spec((Cpi, Pp)),             # w1 (scale-folded, bf16)
            const_spec((3, 3, Pp, Pp)),        # w2 (scale-folded, bf16, HWIO)
            const_spec((Pp, Cpo)),             # w3 (scale-folded, bf16)
        ]
        if has_proj:
            in_specs.append(const_spec((Cpi, Cpo)))    # ws (scale-folded, bf16)
        in_specs += [const_spec((1, Pp)),              # b1
                     const_spec((1, Pp)),              # b2
                     const_spec((1, Cpo))]             # b3 (+ bs if projection)

        return pl.pallas_call(
            kernel,
            out_shape=jax.ShapeDtypeStruct((N, H, W, Cpo), out_dtype),
            grid=(N, n_tiles),
            in_specs=in_specs,
            out_specs=pl.BlockSpec((1, TH, W, Cpo), lambda n, i: (n, i, 0, 0)),
            compiler_params=pltpu.CompilerParams(
                dimension_semantics=("parallel", "parallel"),
                vmem_limit_bytes=vmem_budget),
            cost_estimate=cost,
        )

    try:
        out_pad = jax.block_until_ready(build_call(True)(*args))
    except Exception:
        # Fallback if this JAX build rejects single-buffered constant operands.
        out_pad = build_call(False)(*args)

    if Cpo != Cout:            # no-op for real ResNet widths (Cout % 128 == 0)
        out_pad = out_pad[..., :Cout]
    return out_pad


def bottleneck_forward(x_nchw, params, stride=1, tile_h=None):
    """NCHW / f32 wrapper matching the PyTorch module's layout and dtype."""
    x_nhwc = jnp.transpose(x_nchw, (0, 2, 3, 1))
    out = bottleneck_forward_nhwc(x_nhwc, params, stride=stride, tile_h=tile_h,
                                  out_dtype=jnp.float32)
    return jnp.transpose(out, (0, 3, 1, 2))


def init_params(key, in_planes, planes, expansion=4, stride=1):
    """Deterministic synthetic parameters.  BN folded to (scale, bias)."""
    cout = expansion * planes
    ks = jax.random.split(key, 8)

    def bn_fold(k, c, eps=1e-5):
        k1, k2, k3, k4 = jax.random.split(k, 4)
        gamma = jax.random.uniform(k1, (c,), minval=0.5, maxval=1.5)
        beta = jax.random.normal(k2, (c,)) * 0.1
        rmean = jax.random.normal(k3, (c,)) * 0.1
        rvar = jax.random.uniform(k4, (c,), minval=0.5, maxval=1.5)
        scale = gamma * lax.rsqrt(rvar + eps)
        bias = beta - rmean * scale
        return scale.astype(jnp.float32), bias.astype(jnp.float32)

    w1 = (jax.random.normal(ks[0], (in_planes, planes)) * 0.3).astype(jnp.float32)
    w2 = (jax.random.normal(ks[1], (3, 3, planes, planes)) * 0.15).astype(jnp.float32)
    w3 = (jax.random.normal(ks[2], (planes, cout)) * 0.2).astype(jnp.float32)
    s1, b1 = bn_fold(ks[3], planes)
    s2, b2 = bn_fold(ks[4], planes)
    s3, b3 = bn_fold(ks[5], cout)

    if (stride != 1) or (in_planes != cout):
        ws = (jax.random.normal(ks[6], (in_planes, cout)) * 0.2).astype(jnp.float32)
        ss, bs = bn_fold(ks[7], cout)
    else:
        ws = ss = bs = None          # identity shortcut: no projection at all

    return dict(w1=w1, w2=w2, w3=w3, ws=ws, s1=s1, b1=b1, s2=s2, b2=b2,
                s3=s3, b3=b3, ss=ss, bs=bs)


def ref_forward_nchw(x_nchw, p):
    """Pure-JAX f32 reference (mirrors the PyTorch eval-mode forward)."""
    x = jnp.transpose(x_nchw, (0, 2, 3, 1))
    dn = ('NHWC', 'HWIO', 'NHWC')

    def conv(h, w, padding):
        return lax.conv_general_dilated(h, w, window_strides=(1, 1),
                                        padding=padding, dimension_numbers=dn,
                                        precision=lax.Precision.HIGHEST)

    h = conv(x, p["w1"][None, None], 'VALID')
    h = jax.nn.relu(h * p["s1"] + p["b1"])
    h = conv(h, p["w2"], ((1, 1), (1, 1)))
    h = jax.nn.relu(h * p["s2"] + p["b2"])
    h = conv(h, p["w3"][None, None], 'VALID')
    h = h * p["s3"] + p["b3"]
    if p["ws"] is None:
        sc = x
    else:
        sc = conv(x, p["ws"][None, None], 'VALID') * p["ss"] + p["bs"]
    out = jax.nn.relu(h + sc)
    return jnp.transpose(out, (0, 3, 1, 2))


if __name__ == "__main__":
    key = jax.random.PRNGKey(0)
    k1, k2, k3, k4 = jax.random.split(key, 4)
    # Tolerance is bf16-matmul vs f32 reference; structural bugs give O(0.1+) errors.
    RTOL = ATOL = 3e-2

    # Case 1: projection shortcut (Cin != expansion*planes); tile_h=8 -> two
    # row tiles per image so the halo exchange across tiles is exercised.
    N, Cin, H, W, planes = 2, 4, 16, 16, 4
    x = jax.random.normal(k1, (N, Cin, H, W), dtype=jnp.float32)
    params = init_params(k2, Cin, planes)
    out = jax.block_until_ready(bottleneck_forward(x, params, tile_h=8))
    ref = ref_forward_nchw(x, params)
    assert out.shape == (N, 4 * planes, H, W), out.shape
    if not jnp.allclose(out, ref, rtol=RTOL, atol=ATOL):
        raise AssertionError(
            f"projection case mismatch, max abs err = {jnp.max(jnp.abs(out - ref))}")

    # Case 2: identity shortcut (Cin == expansion*planes), auto tile picker
    # (single row tile -> both halo rows masked inside the kernel).
    Cin2 = 4 * planes
    x2 = jax.random.normal(k3, (N, Cin2, H, W), dtype=jnp.float32)
    params2 = init_params(k4, Cin2, planes)
    out2 = jax.block_until_ready(bottleneck_forward(x2, params2, tile_h=None))
    ref2 = ref_forward_nchw(x2, params2)
    assert out2.shape == (N, 4 * planes, H, W), out2.shape
    if not jnp.allclose(out2, ref2, rtol=RTOL, atol=ATOL):
        raise AssertionError(
            f"identity case mismatch, max abs err = {jnp.max(jnp.abs(out2 - ref2))}")

    print("KERNEL_OK")
</pallas_src>

<mosaic_0001>
module attributes {stable_mosaic.version = 11 : i64} {
  func.func @_bottleneck_kernel(%arg0: i32, %arg1: i32, %arg2: memref<1x8x16x128xbf16, #tpu.memory_space<vmem>>, %arg3: memref<1x1x16x128xbf16, #tpu.memory_space<vmem>>, %arg4: memref<1x1x16x128xbf16, #tpu.memory_space<vmem>>, %arg5: memref<128x128xbf16, #tpu.memory_space<vmem>>, %arg6: memref<3x3x128x128xbf16, #tpu.memory_space<vmem>>, %arg7: memref<128x128xbf16, #tpu.memory_space<vmem>>, %arg8: memref<128x128xbf16, #tpu.memory_space<vmem>>, %arg9: memref<1x128xf32, #tpu.memory_space<vmem>>, %arg10: memref<1x128xf32, #tpu.memory_space<vmem>>, %arg11: memref<1x128xf32, #tpu.memory_space<vmem>>, %arg12: memref<1x8x16x128xf32, #tpu.memory_space<vmem>>) attributes {dimension_semantics = [#tpu.dimension_semantics<parallel>, #tpu.dimension_semantics<parallel>], iteration_bounds = array<i64: 2, 2>, scalar_prefetch = 0 : i64, scratch_operands = 0 : i64, tpu.core_type = #tpu.core_type<tc>, window_params = [{transform_indices = @transform_0, window_bounds = array<i64: 1, 8, 16, 128>}, {transform_indices = @transform_1, window_bounds = array<i64: 1, 1, 16, 128>}, {transform_indices = @transform_2, window_bounds = array<i64: 1, 1, 16, 128>}, {pipeline_mode = #tpu.pipeline_mode<synchronous>, transform_indices = @transform_3, window_bounds = array<i64: 128, 128>}, {pipeline_mode = #tpu.pipeline_mode<synchronous>, transform_indices = @transform_4, window_bounds = array<i64: 3, 3, 128, 128>}, {pipeline_mode = #tpu.pipeline_mode<synchronous>, transform_indices = @transform_5, window_bounds = array<i64: 128, 128>}, {pipeline_mode = #tpu.pipeline_mode<synchronous>, transform_indices = @transform_6, window_bounds = array<i64: 128, 128>}, {pipeline_mode = #tpu.pipeline_mode<synchronous>, transform_indices = @transform_7, window_bounds = array<i64: 1, 128>}, {pipeline_mode = #tpu.pipeline_mode<synchronous>, transform_indices = @transform_8, window_bounds = array<i64: 1, 128>}, {pipeline_mode = #tpu.pipeline_mode<synchronous>, transform_indices = @transform_9, window_bounds = array<i64: 1, 128>}, {transform_indices = @transform_10, window_bounds = array<i64: 1, 8, 16, 128>}]} {
    %c0 = arith.constant 0 : index
    %c0_0 = arith.constant 0 : index
    %c0_1 = arith.constant 0 : index
    %c0_2 = arith.constant 0 : index
    %0 = vector.load %arg2[%c0, %c0_0, %c0_1, %c0_2] : memref<1x8x16x128xbf16, #tpu.memory_space<vmem>>, vector<1x8x16x128xbf16>
    %1 = vector.shape_cast %0 : vector<1x8x16x128xbf16> to vector<128x128xbf16>
    %c0_3 = arith.constant 0 : index
    %c0_4 = arith.constant 0 : index
    %c0_5 = arith.constant 0 : index
    %c0_6 = arith.constant 0 : index
    %2 = vector.load %arg3[%c0_3, %c0_4, %c0_5, %c0_6] : memref<1x1x16x128xbf16, #tpu.memory_space<vmem>>, vector<1x1x16x128xbf16>
    %3 = vector.shape_cast %2 : vector<1x1x16x128xbf16> to vector<16x128xbf16>
    %c0_7 = arith.constant 0 : index
    %c0_8 = arith.constant 0 : index
    %c0_9 = arith.constant 0 : index
    %c0_10 = arith.constant 0 : index
    %4 = vector.load %arg4[%c0_7, %c0_8, %c0_9, %c0_10] : memref<1x1x16x128xbf16, #tpu.memory_space<vmem>>, vector<1x1x16x128xbf16>
    %5 = vector.shape_cast %4 : vector<1x1x16x128xbf16> to vector<16x128xbf16>
    %6 = tpu.concatenate %3, %1, %5 in 0 : vector<16x128xbf16>, vector<128x128xbf16>, vector<16x128xbf16> -> vector<160x128xbf16>
    %c0_11 = arith.constant 0 : index
    %c0_12 = arith.constant 0 : index
    %7 = vector.load %arg5[%c0_11, %c0_12] : memref<128x128xbf16, #tpu.memory_space<vmem>>, vector<128x128xbf16>
    %cst = arith.constant dense<0.000000e+00> : vector<160x128xf32>
    %8 = tpu.matmul %6, %7, %cst {dimension_numbers = #tpu.dot_dimension_numbers<[1], [0], [0], [1], [0, 0, 1, 1], [], []>} : vector<160x128xbf16>, vector<128x128xbf16>, vector<160x128xf32> -> vector<160x128xf32>
    %c0_13 = arith.constant 0 : index
    %c0_14 = arith.constant 0 : index
    %9 = vector.load %arg9[%c0_13, %c0_14] : memref<1x128xf32, #tpu.memory_space<vmem>>, vector<1x128xf32>
    %10 = vector.broadcast %9 : vector<1x128xf32> to vector<160x128xf32>
    %11 = arith.addf %8, %10 : vector<160x128xf32>
    %12 = tpu.iota {dimensions = array<i32: 0>} : vector<160x128xi32>
    %c16_i32 = arith.constant 16 : i32
    %13 = vector.broadcast %c16_i32 : i32 to vector<160x128xi32>
    %14 = arith.cmpi slt, %12, %13 : vector<160x128xi32>
    %c0_i32 = arith.constant 0 : i32
    %15 = arith.cmpi eq, %arg1, %c0_i32 : i32
    %16 = vector.broadcast %15 : i1 to vector<160x128xi1>
    %17 = arith.andi %14, %16 : vector<160x128xi1>
    %c144_i32 = arith.constant 144 : i32
    %18 = vector.broadcast %c144_i32 : i32 to vector<160x128xi32>
    %19 = arith.cmpi sge, %12, %18 : vector<160x128xi32>
    %c1_i32 = arith.constant 1 : i32
    %20 = arith.cmpi eq, %arg1, %c1_i32 : i32
    %21 = vector.broadcast %20 : i1 to vector<160x128xi1>
    %22 = arith.andi %19, %21 : vector<160x128xi1>
    %23 = arith.ori %17, %22 : vector<160x128xi1>
    %cst_15 = arith.constant 0.000000e+00 : f32
    %24 = vector.broadcast %cst_15 : f32 to vector<160x128xf32>
    %25 = arith.maximumf %11, %24 : vector<160x128xf32>
    %cst_16 = arith.constant 0.000000e+00 : f32
    %26 = vector.broadcast %cst_16 : f32 to vector<160x128xf32>
    %27 = arith.select %23, %26, %25 : vector<160x128xi1>, vector<160x128xf32>
    %28 = arith.truncf %27 : vector<160x128xf32> to vector<160x128xbf16>
    %29 = vector.shape_cast %28 : vector<160x128xbf16> to vector<10x16x128xbf16>
    %cst_17 = arith.constant 0.000000e+00 : bf16
    %30 = vector.broadcast %cst_17 : bf16 to vector<10x1x128xbf16>
    %31 = vector.extract_strided_slice %29 {offsets = [0, 0, 0], sizes = [10, 15, 128], strides = [1, 1, 1]} : vector<10x16x128xbf16> to vector<10x15x128xbf16>
    %32 = tpu.concatenate %30, %31 in 1 : vector<10x1x128xbf16>, vector<10x15x128xbf16> -> vector<10x16x128xbf16>
    %33 = vector.shape_cast %32 : vector<10x16x128xbf16> to vector<160x128xbf16>
    %34 = vector.extract_strided_slice %29 {offsets = [0, 1, 0], sizes = [10, 15, 128], strides = [1, 1, 1]} : vector<10x16x128xbf16> to vector<10x15x128xbf16>
    %35 = tpu.concatenate %34, %30 in 1 : vector<10x15x128xbf16>, vector<10x1x128xbf16> -> vector<10x16x128xbf16>
    %36 = vector.shape_cast %35 : vector<10x16x128xbf16> to vector<160x128xbf16>
    %37 = vector.extract_strided_slice %33 {offsets = [0, 0], sizes = [128, 128], strides = [1, 1]} : vector<160x128xbf16> to vector<128x128xbf16>
    %c0_18 = arith.constant 0 : index
    %c0_19 = arith.constant 0 : index
    %c0_20 = arith.constant 0 : index
    %c0_21 = arith.constant 0 : index
    %38 = vector.load %arg6[%c0_18, %c0_19, %c0_20, %c0_21] : memref<3x3x128x128xbf16, #tpu.memory_space<vmem>>, vector<1x1x128x128xbf16>
    %39 = vector.shape_cast %38 : vector<1x1x128x128xbf16> to vector<128x128xbf16>
    %cst_22 = arith.constant dense<0.000000e+00> : vector<128x128xf32>
    %40 = tpu.matmul %37, %39, %cst_22 {dimension_numbers = #tpu.dot_dimension_numbers<[1], [0], [0], [1], [0, 0, 1, 1], [], []>} : vector<128x128xbf16>, vector<128x128xbf16>, vector<128x128xf32> -> vector<128x128xf32>
    %41 = vector.extract_strided_slice %28 {offsets = [0, 0], sizes = [128, 128], strides = [1, 1]} : vector<160x128xbf16> to vector<128x128xbf16>
    %c0_23 = arith.constant 0 : index
    %c1 = arith.constant 1 : index
    %c0_24 = arith.constant 0 : index
    %c0_25 = arith.constant 0 : index
    %42 = vector.load %arg6[%c0_23, %c1, %c0_24, %c0_25] : memref<3x3x128x128xbf16, #tpu.memory_space<vmem>>, vector<1x1x128x128xbf16>
    %43 = vector.shape_cast %42 : vector<1x1x128x128xbf16> to vector<128x128xbf16>
    %cst_26 = arith.constant dense<0.000000e+00> : vector<128x128xf32>
    %44 = tpu.matmul %41, %43, %cst_26 {dimension_numbers = #tpu.dot_dimension_numbers<[1], [0], [0], [1], [0, 0, 1, 1], [], []>} : vector<128x128xbf16>, vector<128x128xbf16>, vector<128x128xf32> -> vector<128x128xf32>
    %45 = arith.addf %40, %44 : vector<128x128xf32>
    %46 = vector.extract_strided_slice %36 {offsets = [0, 0], sizes = [128, 128], strides = [1, 1]} : vector<160x128xbf16> to vector<128x128xbf16>
    %c0_27 = arith.constant 0 : index
    %c2 = arith.constant 2 : index
    %c0_28 = arith.constant 0 : index
    %c0_29 = arith.constant 0 : index
    %47 = vector.load %arg6[%c0_27, %c2, %c0_28, %c0_29] : memref<3x3x128x128xbf16, #tpu.memory_space<vmem>>, vector<1x1x128x128xbf16>
    %48 = vector.shape_cast %47 : vector<1x1x128x128xbf16> to vector<128x128xbf16>
    %cst_30 = arith.constant dense<0.000000e+00> : vector<128x128xf32>
    %49 = tpu.matmul %46, %48, %cst_30 {dimension_numbers = #tpu.dot_dimension_numbers<[1], [0], [0], [1], [0, 0, 1, 1], [], []>} : vector<128x128xbf16>, vector<128x128xbf16>, vector<128x128xf32> -> vector<128x128xf32>
    %50 = arith.addf %45, %49 : vector<128x128xf32>
    %51 = vector.extract_strided_slice %33 {offsets = [16, 0], sizes = [128, 128], strides = [1, 1]} : vector<160x128xbf16> to vector<128x128xbf16>
    %c1_31 = arith.constant 1 : index
    %c0_32 = arith.constant 0 : index
    %c0_33 = arith.constant 0 : index
    %c0_34 = arith.constant 0 : index
    %52 = vector.load %arg6[%c1_31, %c0_32, %c0_33, %c0_34] : memref<3x3x128x128xbf16, #tpu.memory_space<vmem>>, vector<1x1x128x128xbf16>
    %53 = vector.shape_cast %52 : vector<1x1x128x128xbf16> to vector<128x128xbf16>
    %cst_35 = arith.constant dense<0.000000e+00> : vector<128x128xf32>
    %54 = tpu.matmul %51, %53, %cst_35 {dimension_numbers = #tpu.dot_dimension_numbers<[1], [0], [0], [1], [0, 0, 1, 1], [], []>} : vector<128x128xbf16>, vector<128x128xbf16>, vector<128x128xf32> -> vector<128x128xf32>
    %55 = arith.addf %50, %54 : vector<128x128xf32>
    %56 = vector.extract_strided_slice %28 {offsets = [16, 0], sizes = [128, 128], strides = [1, 1]} : vector<160x128xbf16> to vector<128x128xbf16>
    %c1_36 = arith.constant 1 : index
    %c1_37 = arith.constant 1 : index
    %c0_38 = arith.constant 0 : index
    %c0_39 = arith.constant 0 : index
    %57 = vector.load %arg6[%c1_36, %c1_37, %c0_38, %c0_39] : memref<3x3x128x128xbf16, #tpu.memory_space<vmem>>, vector<1x1x128x128xbf16>
    %58 = vector.shape_cast %57 : vector<1x1x128x128xbf16> to vector<128x128xbf16>
    %cst_40 = arith.constant dense<0.000000e+00> : vector<128x128xf32>
    %59 = tpu.matmul %56, %58, %cst_40 {dimension_numbers = #tpu.dot_dimension_numbers<[1], [0], [0], [1], [0, 0, 1, 1], [], []>} : vector<128x128xbf16>, vector<128x128xbf16>, vector<128x128xf32> -> vector<128x128xf32>
    %60 = arith.addf %55, %59 : vector<128x128xf32>
    %61 = vector.extract_strided_slice %36 {offsets = [16, 0], sizes = [128, 128], strides = [1, 1]} : vector<160x128xbf16> to vector<128x128xbf16>
    %c1_41 = arith.constant 1 : index
    %c2_42 = arith.constant 2 : index
    %c0_43 = arith.constant 0 : index
    %c0_44 = arith.constant 0 : index
    %62 = vector.load %arg6[%c1_41, %c2_42, %c0_43, %c0_44] : memref<3x3x128x128xbf16, #tpu.memory_space<vmem>>, vector<1x1x128x128xbf16>
    %63 = vector.shape_cast %62 : vector<1x1x128x128xbf16> to vector<128x128xbf16>
    %cst_45 = arith.constant dense<0.000000e+00> : vector<128x128xf32>
    %64 = tpu.matmul %61, %63, %cst_45 {dimension_numbers = #tpu.dot_dimension_numbers<[1], [0], [0], [1], [0, 0, 1, 1], [], []>} : vector<128x128xbf16>, vector<128x128xbf16>, vector<128x128xf32> -> vector<128x128xf32>
    %65 = arith.addf %60, %64 : vector<128x128xf32>
    %66 = vector.extract_strided_slice %33 {offsets = [32, 0], sizes = [128, 128], strides = [1, 1]} : vector<160x128xbf16> to vector<128x128xbf16>
    %c2_46 = arith.constant 2 : index
    %c0_47 = arith.constant 0 : index
    %c0_48 = arith.constant 0 : index
    %c0_49 = arith.constant 0 : index
    %67 = vector.load %arg6[%c2_46, %c0_47, %c0_48, %c0_49] : memref<3x3x128x128xbf16, #tpu.memory_space<vmem>>, vector<1x1x128x128xbf16>
    %68 = vector.shape_cast %67 : vector<1x1x128x128xbf16> to vector<128x128xbf16>
    %cst_50 = arith.constant dense<0.000000e+00> : vector<128x128xf32>
    %69 = tpu.matmul %66, %68, %cst_50 {dimension_numbers = #tpu.dot_dimension_numbers<[1], [0], [0], [1], [0, 0, 1, 1], [], []>} : vector<128x128xbf16>, vector<128x128xbf16>, vector<128x128xf32> -> vector<128x128xf32>
    %70 = arith.addf %65, %69 : vector<128x128xf32>
    %71 = vector.extract_strided_slice %28 {offsets = [32, 0], sizes = [128, 128], strides = [1, 1]} : vector<160x128xbf16> to vector<128x128xbf16>
    %c2_51 = arith.constant 2 : index
    %c1_52 = arith.constant 1 : index
    %c0_53 = arith.constant 0 : index
    %c0_54 = arith.constant 0 : index
    %72 = vector.load %arg6[%c2_51, %c1_52, %c0_53, %c0_54] : memref<3x3x128x128xbf16, #tpu.memory_space<vmem>>, vector<1x1x128x128xbf16>
    %73 = vector.shape_cast %72 : vector<1x1x128x128xbf16> to vector<128x128xbf16>
    %cst_55 = arith.constant dense<0.000000e+00> : vector<128x128xf32>
    %74 = tpu.matmul %71, %73, %cst_55 {dimension_numbers = #tpu.dot_dimension_numbers<[1], [0], [0], [1], [0, 0, 1, 1], [], []>} : vector<128x128xbf16>, vector<128x128xbf16>, vector<128x128xf32> -> vector<128x128xf32>
    %75 = arith.addf %70, %74 : vector<128x128xf32>
    %76 = vector.extract_strided_slice %36 {offsets = [32, 0], sizes = [128, 128], strides = [1, 1]} : vector<160x128xbf16> to vector<128x128xbf16>
    %c2_56 = arith.constant 2 : index
    %c2_57 = arith.constant 2 : index
    %c0_58 = arith.constant 0 : index
    %c0_59 = arith.constant 0 : index
    %77 = vector.load %arg6[%c2_56, %c2_57, %c0_58, %c0_59] : memref<3x3x128x128xbf16, #tpu.memory_space<vmem>>, vector<1x1x128x128xbf16>
    %78 = vector.shape_cast %77 : vector<1x1x128x128xbf16> to vector<128x128xbf16>
    %cst_60 = arith.constant dense<0.000000e+00> : vector<128x128xf32>
    %79 = tpu.matmul %76, %78, %cst_60 {dimension_numbers = #tpu.dot_dimension_numbers<[1], [0], [0], [1], [0, 0, 1, 1], [], []>} : vector<128x128xbf16>, vector<128x128xbf16>, vector<128x128xf32> -> vector<128x128xf32>
    %80 = arith.addf %75, %79 : vector<128x128xf32>
    %c0_61 = arith.constant 0 : index
    %c0_62 = arith.constant 0 : index
    %81 = vector.load %arg10[%c0_61, %c0_62] : memref<1x128xf32, #tpu.memory_space<vmem>>, vector<1x128xf32>
    %82 = vector.broadcast %81 : vector<1x128xf32> to vector<128x128xf32>
    %83 = arith.addf %80, %82 : vector<128x128xf32>
    %cst_63 = arith.constant 0.000000e+00 : f32
    %84 = vector.broadcast %cst_63 : f32 to vector<128x128xf32>
    %85 = arith.maximumf %83, %84 : vector<128x128xf32>
    %86 = arith.truncf %85 : vector<128x128xf32> to vector<128x128xbf16>
    %c0_64 = arith.constant 0 : index
    %c0_65 = arith.constant 0 : index
    %87 = vector.load %arg7[%c0_64, %c0_65] : memref<128x128xbf16, #tpu.memory_space<vmem>>, vector<128x128xbf16>
    %cst_66 = arith.constant dense<0.000000e+00> : vector<128x128xf32>
    %88 = tpu.matmul %86, %87, %cst_66 {dimension_numbers = #tpu.dot_dimension_numbers<[1], [0], [0], [1], [0, 0, 1, 1], [], []>} : vector<128x128xbf16>, vector<128x128xbf16>, vector<128x128xf32> -> vector<128x128xf32>
    %c0_67 = arith.constant 0 : index
    %c0_68 = arith.constant 0 : index
    %89 = vector.load %arg8[%c0_67, %c0_68] : memref<128x128xbf16, #tpu.memory_space<vmem>>, vector<128x128xbf16>
    %cst_69 = arith.constant dense<0.000000e+00> : vector<128x128xf32>
    %90 = tpu.matmul %1, %89, %cst_69 {dimension_numbers = #tpu.dot_dimension_numbers<[1], [0], [0], [1], [0, 0, 1, 1], [], []>} : vector<128x128xbf16>, vector<128x128xbf16>, vector<128x128xf32> -> vector<128x128xf32>
    %91 = arith.addf %88, %90 : vector<128x128xf32>
    %c0_70 = arith.constant 0 : index
    %c0_71 = arith.constant 0 : index
    %92 = vector.load %arg11[%c0_70, %c0_71] : memref<1x128xf32, #tpu.memory_space<vmem>>, vector<1x128xf32>
    %93 = vector.broadcast %92 : vector<1x128xf32> to vector<128x128xf32>
    %94 = arith.addf %91, %93 : vector<128x128xf32>
    %cst_72 = arith.constant 0.000000e+00 : f32
    %95 = vector.broadcast %cst_72 : f32 to vector<128x128xf32>
    %96 = arith.maximumf %94, %95 : vector<128x128xf32>
    %97 = vector.shape_cast %96 : vector<128x128xf32> to vector<1x8x16x128xf32>
    %c0_73 = arith.constant 0 : index
    %c0_74 = arith.constant 0 : index
    %c0_75 = arith.constant 0 : index
    %c0_76 = arith.constant 0 : index
    %98 = vector.load %arg12[%c0_73, %c0_74, %c0_75, %c0_76] : memref<1x8x16x128xf32, #tpu.memory_space<vmem>>, vector<1x8x16x128xf32>
    tpu.vector_store %arg12[%c0_73, %c0_74, %c0_75, %c0_76], %97 {strides = array<i32>} : memref<1x8x16x128xf32, #tpu.memory_space<vmem>>, vector<1x8x16x128xf32>,
    return
  }
  func.func @transform_0(%arg0: i32, %arg1: i32) -> (i32, i32, i32, i32) {
    %c0_i32 = arith.constant 0 : i32
    %c0_i32_0 = arith.constant 0 : i32
    %c0_i32_1 = arith.constant 0 : i32
    return %arg0, %arg1, %c0_i32, %c0_i32_0 : i32, i32, i32, i32
  }
  func.func @transform_1(%arg0: i32, %arg1: i32) -> (i32, i32, i32, i32) {
    %c8_i32 = arith.constant 8 : i32
    %0 = arith.muli %arg1, %c8_i32 : i32
    %c1_i32 = arith.constant 1 : i32
    %1 = arith.subi %0, %c1_i32 : i32
    %c0_i32 = arith.constant 0 : i32
    %2 = arith.maxsi %1, %c0_i32 : i32
    %c0_i32_0 = arith.constant 0 : i32
    %c0_i32_1 = arith.constant 0 : i32
    %c0_i32_2 = arith.constant 0 : i32
    return %arg0, %2, %c0_i32_0, %c0_i32_1 : i32, i32, i32, i32
  }
  func.func @transform_2(%arg0: i32, %arg1: i32) -> (i32, i32, i32, i32) {
    %c8_i32 = arith.constant 8 : i32
    %0 = arith.muli %arg1, %c8_i32 : i32
    %c8_i32_0 = arith.constant 8 : i32
    %1 = arith.addi %0, %c8_i32_0 : i32
    %c15_i32 = arith.constant 15 : i32
    %2 = arith.minsi %1, %c15_i32 : i32
    %c0_i32 = arith.constant 0 : i32
    %c0_i32_1 = arith.constant 0 : i32
    %c0_i32_2 = arith.constant 0 : i32
    return %arg0, %2, %c0_i32, %c0_i32_1 : i32, i32, i32, i32
  }
  func.func @transform_3(%arg0: i32, %arg1: i32) -> (i32, i32) {
    %c0_i32 = arith.constant 0 : i32
    %c0_i32_0 = arith.constant 0 : i32
    %c0_i32_1 = arith.constant 0 : i32
    return %c0_i32, %c0_i32_0 : i32, i32
  }
  func.func @transform_4(%arg0: i32, %arg1: i32) -> (i32, i32, i32, i32) {
    %c0_i32 = arith.constant 0 : i32
    %c0_i32_0 = arith.constant 0 : i32
    %c0_i32_1 = arith.constant 0 : i32
    %c0_i32_2 = arith.constant 0 : i32
    %c0_i32_3 = arith.constant 0 : i32
    return %c0_i32, %c0_i32_0, %c0_i32_1, %c0_i32_2 : i32, i32, i32, i32
  }
  func.func @transform_5(%arg0: i32, %arg1: i32) -> (i32, i32) {
    %c0_i32 = arith.constant 0 : i32
    %c0_i32_0 = arith.constant 0 : i32
    %c0_i32_1 = arith.constant 0 : i32
    return %c0_i32, %c0_i32_0 : i32, i32
  }
  func.func @transform_6(%arg0: i32, %arg1: i32) -> (i32, i32) {
    %c0_i32 = arith.constant 0 : i32
    %c0_i32_0 = arith.constant 0 : i32
    %c0_i32_1 = arith.constant 0 : i32
    return %c0_i32, %c0_i32_0 : i32, i32
  }
  func.func @transform_7(%arg0: i32, %arg1: i32) -> (i32, i32) {
    %c0_i32 = arith.constant 0 : i32
    %c0_i32_0 = arith.constant 0 : i32
    %c0_i32_1 = arith.constant 0 : i32
    return %c0_i32, %c0_i32_0 : i32, i32
  }
  func.func @transform_8(%arg0: i32, %arg1: i32) -> (i32, i32) {
    %c0_i32 = arith.constant 0 : i32
    %c0_i32_0 = arith.constant 0 : i32
    %c0_i32_1 = arith.constant 0 : i32
    return %c0_i32, %c0_i32_0 : i32, i32
  }
  func.func @transform_9(%arg0: i32, %arg1: i32) -> (i32, i32) {
    %c0_i32 = arith.constant 0 : i32
    %c0_i32_0 = arith.constant 0 : i32
    %c0_i32_1 = arith.constant 0 : i32
    return %c0_i32, %c0_i32_0 : i32, i32
  }
  func.func @transform_10(%arg0: i32, %arg1: i32) -> (i32, i32, i32, i32) {
    %c0_i32 = arith.constant 0 : i32
    %c0_i32_0 = arith.constant 0 : i32
    %c0_i32_1 = arith.constant 0 : i32
    return %arg0, %arg1, %c0_i32, %c0_i32_0 : i32, i32, i32, i32
  }
}

module attributes {stable_mosaic.version = 11 : i64} {
  func.func @_bottleneck_kernel(%arg0: i32, %arg1: i32, %arg2: memref<1x8x16x128xbf16, #tpu.memory_space<vmem>>, %arg3: memref<1x1x16x128xbf16, #tpu.memory_space<vmem>>, %arg4: memref<1x1x16x128xbf16, #tpu.memory_space<vmem>>, %arg5: memref<128x128xbf16, #tpu.memory_space<vmem>>, %arg6: memref<3x3x128x128xbf16, #tpu.memory_space<vmem>>, %arg7: memref<128x128xbf16, #tpu.memory_space<vmem>>, %arg8: memref<128x128xbf16, #tpu.memory_space<vmem>>, %arg9: memref<1x128xf32, #tpu.memory_space<vmem>>, %arg10: memref<1x128xf32, #tpu.memory_space<vmem>>, %arg11: memref<1x128xf32, #tpu.memory_space<vmem>>, %arg12: memref<1x8x16x128xf32, #tpu.memory_space<vmem>>) attributes {dimension_semantics = [#tpu.dimension_semantics<parallel>, #tpu.dimension_semantics<parallel>], iteration_bounds = array<i64: 2, 2>, scalar_prefetch = 0 : i64, scratch_operands = 0 : i64, tpu.core_type = #tpu.core_type<tc>, window_params = [{transform_indices = @transform_0, window_bounds = array<i64: 1, 8, 16, 128>}, {transform_indices = @transform_1, window_bounds = array<i64: 1, 1, 16, 128>}, {transform_indices = @transform_2, window_bounds = array<i64: 1, 1, 16, 128>}, {pipeline_mode = #tpu.pipeline_mode<synchronous>, transform_indices = @transform_3, window_bounds = array<i64: 128, 128>}, {pipeline_mode = #tpu.pipeline_mode<synchronous>, transform_indices = @transform_4, window_bounds = array<i64: 3, 3, 128, 128>}, {pipeline_mode = #tpu.pipeline_mode<synchronous>, transform_indices = @transform_5, window_bounds = array<i64: 128, 128>}, {pipeline_mode = #tpu.pipeline_mode<synchronous>, transform_indices = @transform_6, window_bounds = array<i64: 128, 128>}, {pipeline_mode = #tpu.pipeline_mode<synchronous>, transform_indices = @transform_7, window_bounds = array<i64: 1, 128>}, {pipeline_mode = #tpu.pipeline_mode<synchronous>, transform_indices = @transform_8, window_bounds = array<i64: 1, 128>}, {pipeline_mode = #tpu.pipeline_mode<synchronous>, transform_indices = @transform_9, window_bounds = array<i64: 1, 128>}, {transform_indices = @transform_10, window_bounds = array<i64: 1, 8, 16, 128>}]} {
    %c0 = arith.constant 0 : index
    %c0_0 = arith.constant 0 : index
    %c0_1 = arith.constant 0 : index
    %c0_2 = arith.constant 0 : index
    %0 = vector.load %arg2[%c0, %c0_0, %c0_1, %c0_2] : memref<1x8x16x128xbf16, #tpu.memory_space<vmem>>, vector<1x8x16x128xbf16>
    %1 = vector.shape_cast %0 : vector<1x8x16x128xbf16> to vector<128x128xbf16>
    %c0_3 = arith.constant 0 : index
    %c0_4 = arith.constant 0 : index
    %c0_5 = arith.constant 0 : index
    %c0_6 = arith.constant 0 : index
    %2 = vector.load %arg3[%c0_3, %c0_4, %c0_5, %c0_6] : memref<1x1x16x128xbf16, #tpu.memory_space<vmem>>, vector<1x1x16x128xbf16>
    %3 = vector.shape_cast %2 : vector<1x1x16x128xbf16> to vector<16x128xbf16>
    %c0_7 = arith.constant 0 : index
    %c0_8 = arith.constant 0 : index
    %c0_9 = arith.constant 0 : index
    %c0_10 = arith.constant 0 : index
    %4 = vector.load %arg4[%c0_7, %c0_8, %c0_9, %c0_10] : memref<1x1x16x128xbf16, #tpu.memory_space<vmem>>, vector<1x1x16x128xbf16>
    %5 = vector.shape_cast %4 : vector<1x1x16x128xbf16> to vector<16x128xbf16>
    %6 = tpu.concatenate %3, %1, %5 in 0 : vector<16x128xbf16>, vector<128x128xbf16>, vector<16x128xbf16> -> vector<160x128xbf16>
    %c0_11 = arith.constant 0 : index
    %c0_12 = arith.constant 0 : index
    %7 = vector.load %arg5[%c0_11, %c0_12] : memref<128x128xbf16, #tpu.memory_space<vmem>>, vector<128x128xbf16>
    %cst = arith.constant dense<0.000000e+00> : vector<160x128xf32>
    %8 = tpu.matmul %6, %7, %cst {dimension_numbers = #tpu.dot_dimension_numbers<[1], [0], [0], [1], [0, 0, 1, 1], [], []>} : vector<160x128xbf16>, vector<128x128xbf16>, vector<160x128xf32> -> vector<160x128xf32>
    %c0_13 = arith.constant 0 : index
    %c0_14 = arith.constant 0 : index
    %9 = vector.load %arg9[%c0_13, %c0_14] : memref<1x128xf32, #tpu.memory_space<vmem>>, vector<1x128xf32>
    %10 = vector.broadcast %9 : vector<1x128xf32> to vector<160x128xf32>
    %11 = arith.addf %8, %10 : vector<160x128xf32>
    %12 = tpu.iota {dimensions = array<i32: 0>} : vector<160x128xi32>
    %c16_i32 = arith.constant 16 : i32
    %13 = vector.broadcast %c16_i32 : i32 to vector<160x128xi32>
    %14 = arith.cmpi slt, %12, %13 : vector<160x128xi32>
    %c0_i32 = arith.constant 0 : i32
    %15 = arith.cmpi eq, %arg1, %c0_i32 : i32
    %16 = vector.broadcast %15 : i1 to vector<160x128xi1>
    %17 = arith.andi %14, %16 : vector<160x128xi1>
    %c144_i32 = arith.constant 144 : i32
    %18 = vector.broadcast %c144_i32 : i32 to vector<160x128xi32>
    %19 = arith.cmpi sge, %12, %18 : vector<160x128xi32>
    %c1_i32 = arith.constant 1 : i32
    %20 = arith.cmpi eq, %arg1, %c1_i32 : i32
    %21 = vector.broadcast %20 : i1 to vector<160x128xi1>
    %22 = arith.andi %19, %21 : vector<160x128xi1>
    %23 = arith.ori %17, %22 : vector<160x128xi1>
    %cst_15 = arith.constant 0.000000e+00 : f32
    %24 = vector.broadcast %cst_15 : f32 to vector<160x128xf32>
    %25 = arith.maximumf %11, %24 : vector<160x128xf32>
    %cst_16 = arith.constant 0.000000e+00 : f32
    %26 = vector.broadcast %cst_16 : f32 to vector<160x128xf32>
    %27 = arith.select %23, %26, %25 : vector<160x128xi1>, vector<160x128xf32>
    %28 = arith.truncf %27 : vector<160x128xf32> to vector<160x128xbf16>
    %29 = vector.shape_cast %28 : vector<160x128xbf16> to vector<10x16x128xbf16>
    %cst_17 = arith.constant 0.000000e+00 : bf16
    %30 = vector.broadcast %cst_17 : bf16 to vector<10x1x128xbf16>
    %31 = vector.extract_strided_slice %29 {offsets = [0, 0, 0], sizes = [10, 15, 128], strides = [1, 1, 1]} : vector<10x16x128xbf16> to vector<10x15x128xbf16>
    %32 = tpu.concatenate %30, %31 in 1 : vector<10x1x128xbf16>, vector<10x15x128xbf16> -> vector<10x16x128xbf16>
    %33 = vector.shape_cast %32 : vector<10x16x128xbf16> to vector<160x128xbf16>
    %34 = vector.extract_strided_slice %29 {offsets = [0, 1, 0], sizes = [10, 15, 128], strides = [1, 1, 1]} : vector<10x16x128xbf16> to vector<10x15x128xbf16>
    %35 = tpu.concatenate %34, %30 in 1 : vector<10x15x128xbf16>, vector<10x1x128xbf16> -> vector<10x16x128xbf16>
    %36 = vector.shape_cast %35 : vector<10x16x128xbf16> to vector<160x128xbf16>
    %37 = vector.extract_strided_slice %33 {offsets = [0, 0], sizes = [128, 128], strides = [1, 1]} : vector<160x128xbf16> to vector<128x128xbf16>
    %c0_18 = arith.constant 0 : index
    %c0_19 = arith.constant 0 : index
    %c0_20 = arith.constant 0 : index
    %c0_21 = arith.constant 0 : index
    %38 = vector.load %arg6[%c0_18, %c0_19, %c0_20, %c0_21] : memref<3x3x128x128xbf16, #tpu.memory_space<vmem>>, vector<1x1x128x128xbf16>
    %39 = vector.shape_cast %38 : vector<1x1x128x128xbf16> to vector<128x128xbf16>
    %cst_22 = arith.constant dense<0.000000e+00> : vector<128x128xf32>
    %40 = tpu.matmul %37, %39, %cst_22 {dimension_numbers = #tpu.dot_dimension_numbers<[1], [0], [0], [1], [0, 0, 1, 1], [], []>} : vector<128x128xbf16>, vector<128x128xbf16>, vector<128x128xf32> -> vector<128x128xf32>
    %41 = vector.extract_strided_slice %28 {offsets = [0, 0], sizes = [128, 128], strides = [1, 1]} : vector<160x128xbf16> to vector<128x128xbf16>
    %c0_23 = arith.constant 0 : index
    %c1 = arith.constant 1 : index
    %c0_24 = arith.constant 0 : index
    %c0_25 = arith.constant 0 : index
    %42 = vector.load %arg6[%c0_23, %c1, %c0_24, %c0_25] : memref<3x3x128x128xbf16, #tpu.memory_space<vmem>>, vector<1x1x128x128xbf16>
    %43 = vector.shape_cast %42 : vector<1x1x128x128xbf16> to vector<128x128xbf16>
    %cst_26 = arith.constant dense<0.000000e+00> : vector<128x128xf32>
    %44 = tpu.matmul %41, %43, %cst_26 {dimension_numbers = #tpu.dot_dimension_numbers<[1], [0], [0], [1], [0, 0, 1, 1], [], []>} : vector<128x128xbf16>, vector<128x128xbf16>, vector<128x128xf32> -> vector<128x128xf32>
    %45 = arith.addf %40, %44 : vector<128x128xf32>
    %46 = vector.extract_strided_slice %36 {offsets = [0, 0], sizes = [128, 128], strides = [1, 1]} : vector<160x128xbf16> to vector<128x128xbf16>
    %c0_27 = arith.constant 0 : index
    %c2 = arith.constant 2 : index
    %c0_28 = arith.constant 0 : index
    %c0_29 = arith.constant 0 : index
    %47 = vector.load %arg6[%c0_27, %c2, %c0_28, %c0_29] : memref<3x3x128x128xbf16, #tpu.memory_space<vmem>>, vector<1x1x128x128xbf16>
    %48 = vector.shape_cast %47 : vector<1x1x128x128xbf16> to vector<128x128xbf16>
    %cst_30 = arith.constant dense<0.000000e+00> : vector<128x128xf32>
    %49 = tpu.matmul %46, %48, %cst_30 {dimension_numbers = #tpu.dot_dimension_numbers<[1], [0], [0], [1], [0, 0, 1, 1], [], []>} : vector<128x128xbf16>, vector<128x128xbf16>, vector<128x128xf32> -> vector<128x128xf32>
    %50 = arith.addf %45, %49 : vector<128x128xf32>
    %51 = vector.extract_strided_slice %33 {offsets = [16, 0], sizes = [128, 128], strides = [1, 1]} : vector<160x128xbf16> to vector<128x128xbf16>
    %c1_31 = arith.constant 1 : index
    %c0_32 = arith.constant 0 : index
    %c0_33 = arith.constant 0 : index
    %c0_34 = arith.constant 0 : index
    %52 = vector.load %arg6[%c1_31, %c0_32, %c0_33, %c0_34] : memref<3x3x128x128xbf16, #tpu.memory_space<vmem>>, vector<1x1x128x128xbf16>
    %53 = vector.shape_cast %52 : vector<1x1x128x128xbf16> to vector<128x128xbf16>
    %cst_35 = arith.constant dense<0.000000e+00> : vector<128x128xf32>
    %54 = tpu.matmul %51, %53, %cst_35 {dimension_numbers = #tpu.dot_dimension_numbers<[1], [0], [0], [1], [0, 0, 1, 1], [], []>} : vector<128x128xbf16>, vector<128x128xbf16>, vector<128x128xf32> -> vector<128x128xf32>
    %55 = arith.addf %50, %54 : vector<128x128xf32>
    %56 = vector.extract_strided_slice %28 {offsets = [16, 0], sizes = [128, 128], strides = [1, 1]} : vector<160x128xbf16> to vector<128x128xbf16>
    %c1_36 = arith.constant 1 : index
    %c1_37 = arith.constant 1 : index
    %c0_38 = arith.constant 0 : index
    %c0_39 = arith.constant 0 : index
    %57 = vector.load %arg6[%c1_36, %c1_37, %c0_38, %c0_39] : memref<3x3x128x128xbf16, #tpu.memory_space<vmem>>, vector<1x1x128x128xbf16>
    %58 = vector.shape_cast %57 : vector<1x1x128x128xbf16> to vector<128x128xbf16>
    %cst_40 = arith.constant dense<0.000000e+00> : vector<128x128xf32>
    %59 = tpu.matmul %56, %58, %cst_40 {dimension_numbers = #tpu.dot_dimension_numbers<[1], [0], [0], [1], [0, 0, 1, 1], [], []>} : vector<128x128xbf16>, vector<128x128xbf16>, vector<128x128xf32> -> vector<128x128xf32>
    %60 = arith.addf %55, %59 : vector<128x128xf32>
    %61 = vector.extract_strided_slice %36 {offsets = [16, 0], sizes = [128, 128], strides = [1, 1]} : vector<160x128xbf16> to vector<128x128xbf16>
    %c1_41 = arith.constant 1 : index
    %c2_42 = arith.constant 2 : index
    %c0_43 = arith.constant 0 : index
    %c0_44 = arith.constant 0 : index
    %62 = vector.load %arg6[%c1_41, %c2_42, %c0_43, %c0_44] : memref<3x3x128x128xbf16, #tpu.memory_space<vmem>>, vector<1x1x128x128xbf16>
    %63 = vector.shape_cast %62 : vector<1x1x128x128xbf16> to vector<128x128xbf16>
    %cst_45 = arith.constant dense<0.000000e+00> : vector<128x128xf32>
    %64 = tpu.matmul %61, %63, %cst_45 {dimension_numbers = #tpu.dot_dimension_numbers<[1], [0], [0], [1], [0, 0, 1, 1], [], []>} : vector<128x128xbf16>, vector<128x128xbf16>, vector<128x128xf32> -> vector<128x128xf32>
    %65 = arith.addf %60, %64 : vector<128x128xf32>
    %66 = vector.extract_strided_slice %33 {offsets = [32, 0], sizes = [128, 128], strides = [1, 1]} : vector<160x128xbf16> to vector<128x128xbf16>
    %c2_46 = arith.constant 2 : index
    %c0_47 = arith.constant 0 : index
    %c0_48 = arith.constant 0 : index
    %c0_49 = arith.constant 0 : index
    %67 = vector.load %arg6[%c2_46, %c0_47, %c0_48, %c0_49] : memref<3x3x128x128xbf16, #tpu.memory_space<vmem>>, vector<1x1x128x128xbf16>
    %68 = vector.shape_cast %67 : vector<1x1x128x128xbf16> to vector<128x128xbf16>
    %cst_50 = arith.constant dense<0.000000e+00> : vector<128x128xf32>
    %69 = tpu.matmul %66, %68, %cst_50 {dimension_numbers = #tpu.dot_dimension_numbers<[1], [0], [0], [1], [0, 0, 1, 1], [], []>} : vector<128x128xbf16>, vector<128x128xbf16>, vector<128x128xf32> -> vector<128x128xf32>
    %70 = arith.addf %65, %69 : vector<128x128xf32>
    %71 = vector.extract_strided_slice %28 {offsets = [32, 0], sizes = [128, 128], strides = [1, 1]} : vector<160x128xbf16> to vector<128x128xbf16>
    %c2_51 = arith.constant 2 : index
    %c1_52 = arith.constant 1 : index
    %c0_53 = arith.constant 0 : index
    %c0_54 = arith.constant 0 : index
    %72 = vector.load %arg6[%c2_51, %c1_52, %c0_53, %c0_54] : memref<3x3x128x128xbf16, #tpu.memory_space<vmem>>, vector<1x1x128x128xbf16>
    %73 = vector.shape_cast %72 : vector<1x1x128x128xbf16> to vector<128x128xbf16>
    %cst_55 = arith.constant dense<0.000000e+00> : vector<128x128xf32>
    %74 = tpu.matmul %71, %73, %cst_55 {dimension_numbers = #tpu.dot_dimension_numbers<[1], [0], [0], [1], [0, 0, 1, 1], [], []>} : vector<128x128xbf16>, vector<128x128xbf16>, vector<128x128xf32> -> vector<128x128xf32>
    %75 = arith.addf %70, %74 : vector<128x128xf32>
    %76 = vector.extract_strided_slice %36 {offsets = [32, 0], sizes = [128, 128], strides = [1, 1]} : vector<160x128xbf16> to vector<128x128xbf16>
    %c2_56 = arith.constant 2 : index
    %c2_57 = arith.constant 2 : index
    %c0_58 = arith.constant 0 : index
    %c0_59 = arith.constant 0 : index
    %77 = vector.load %arg6[%c2_56, %c2_57, %c0_58, %c0_59] : memref<3x3x128x128xbf16, #tpu.memory_space<vmem>>, vector<1x1x128x128xbf16>
    %78 = vector.shape_cast %77 : vector<1x1x128x128xbf16> to vector<128x128xbf16>
    %cst_60 = arith.constant dense<0.000000e+00> : vector<128x128xf32>
    %79 = tpu.matmul %76, %78, %cst_60 {dimension_numbers = #tpu.dot_dimension_numbers<[1], [0], [0], [1], [0, 0, 1, 1], [], []>} : vector<128x128xbf16>, vector<128x128xbf16>, vector<128x128xf32> -> vector<128x128xf32>
    %80 = arith.addf %75, %79 : vector<128x128xf32>
    %c0_61 = arith.constant 0 : index
    %c0_62 = arith.constant 0 : index
    %81 = vector.load %arg10[%c0_61, %c0_62] : memref<1x128xf32, #tpu.memory_space<vmem>>, vector<1x128xf32>
    %82 = vector.broadcast %81 : vector<1x128xf32> to vector<128x128xf32>
    %83 = arith.addf %80, %82 : vector<128x128xf32>
    %cst_63 = arith.constant 0.000000e+00 : f32
    %84 = vector.broadcast %cst_63 : f32 to vector<128x128xf32>
    %85 = arith.maximumf %83, %84 : vector<128x128xf32>
    %86 = arith.truncf %85 : vector<128x128xf32> to vector<128x128xbf16>
    %c0_64 = arith.constant 0 : index
    %c0_65 = arith.constant 0 : index
    %87 = vector.load %arg7[%c0_64, %c0_65] : memref<128x128xbf16, #tpu.memory_space<vmem>>, vector<128x128xbf16>
    %cst_66 = arith.constant dense<0.000000e+00> : vector<128x128xf32>
    %88 = tpu.matmul %86, %87, %cst_66 {dimension_numbers = #tpu.dot_dimension_numbers<[1], [0], [0], [1], [0, 0, 1, 1], [], []>} : vector<128x128xbf16>, vector<128x128xbf16>, vector<128x128xf32> -> vector<128x128xf32>
    %c0_67 = arith.constant 0 : index
    %c0_68 = arith.constant 0 : index
    %89 = vector.load %arg8[%c0_67, %c0_68] : memref<128x128xbf16, #tpu.memory_space<vmem>>, vector<128x128xbf16>
    %cst_69 = arith.constant dense<0.000000e+00> : vector<128x128xf32>
    %90 = tpu.matmul %1, %89, %cst_69 {dimension_numbers = #tpu.dot_dimension_numbers<[1], [0], [0], [1], [0, 0, 1, 1], [], []>} : vector<128x128xbf16>, vector<128x128xbf16>, vector<128x128xf32> -> vector<128x128xf32>
    %91 = arith.addf %88, %90 : vector<128x128xf32>
    %c0_70 = arith.constant 0 : index
    %c0_71 = arith.constant 0 : index
    %92 = vector.load %arg11[%c0_70, %c0_71] : memref<1x128xf32, #tpu.memory_space<vmem>>, vector<1x128xf32>
    %93 = vector.broadcast %92 : vector<1x128xf32> to vector<128x128xf32>
    %94 = arith.addf %91, %93 : vector<128x128xf32>
    %cst_72 = arith.constant 0.000000e+00 : f32
    %95 = vector.broadcast %cst_72 : f32 to vector<128x128xf32>
    %96 = arith.maximumf %94, %95 : vector<128x128xf32>
    %97 = vector.shape_cast %96 : vector<128x128xf32> to vector<1x8x16x128xf32>
    %c0_73 = arith.constant 0 : index
    %c0_74 = arith.constant 0 : index
    %c0_75 = arith.constant 0 : index
    %c0_76 = arith.constant 0 : index
    %98 = vector.load %arg12[%c0_73, %c0_74, %c0_75, %c0_76] : memref<1x8x16x128xf32, #tpu.memory_space<vmem>>, vector<1x8x16x128xf32>
    tpu.vector_store %arg12[%c0_73, %c0_74, %c0_75, %c0_76], %97 {strides = array<i32>} : memref<1x8x16x128xf32, #tpu.memory_space<vmem>>, vector<1x8x16x128xf32>,
    return
  }
  func.func @transform_0(%arg0: i32, %arg1: i32) -> (i32, i32, i32, i32) {
    %c0_i32 = arith.constant 0 : i32
    %c0_i32_0 = arith.constant 0 : i32
    %c0_i32_1 = arith.constant 0 : i32
    return %arg0, %arg1, %c0_i32, %c0_i32_0 : i32, i32, i32, i32
  }
  func.func @transform_1(%arg0: i32, %arg1: i32) -> (i32, i32, i32, i32) {
    %c8_i32 = arith.constant 8 : i32
    %0 = arith.muli %arg1, %c8_i32 : i32
    %c1_i32 = arith.constant 1 : i32
    %1 = arith.subi %0, %c1_i32 : i32
    %c0_i32 = arith.constant 0 : i32
    %2 = arith.maxsi %1, %c0_i32 : i32
    %c0_i32_0 = arith.constant 0 : i32
    %c0_i32_1 = arith.constant 0 : i32
    %c0_i32_2 = arith.constant 0 : i32
    return %arg0, %2, %c0_i32_0, %c0_i32_1 : i32, i32, i32, i32
  }
  func.func @transform_2(%arg0: i32, %arg1: i32) -> (i32, i32, i32, i32) {
    %c8_i32 = arith.constant 8 : i32
    %0 = arith.muli %arg1, %c8_i32 : i32
    %c8_i32_0 = arith.constant 8 : i32
    %1 = arith.addi %0, %c8_i32_0 : i32
    %c15_i32 = arith.constant 15 : i32
    %2 = arith.minsi %1, %c15_i32 : i32
    %c0_i32 = arith.constant 0 : i32
    %c0_i32_1 = arith.constant 0 : i32
    %c0_i32_2 = arith.constant 0 : i32
    return %arg0, %2, %c0_i32, %c0_i32_1 : i32, i32, i32, i32
  }
  func.func @transform_3(%arg0: i32, %arg1: i32) -> (i32, i32) {
    %c0_i32 = arith.constant 0 : i32
    %c0_i32_0 = arith.constant 0 : i32
    %c0_i32_1 = arith.constant 0 : i32
    return %c0_i32, %c0_i32_0 : i32, i32
  }
  func.func @transform_4(%arg0: i32, %arg1: i32) -> (i32, i32, i32, i32) {
    %c0_i32 = arith.constant 0 : i32
    %c0_i32_0 = arith.constant 0 : i32
    %c0_i32_1 = arith.constant 0 : i32
    %c0_i32_2 = arith.constant 0 : i32
    %c0_i32_3 = arith.constant 0 : i32
    return %c0_i32, %c0_i32_0, %c0_i32_1, %c0_i32_2 : i32, i32, i32, i32
  }
  func.func @transform_5(%arg0: i32, %arg1: i32) -> (i32, i32) {
    %c0_i32 = arith.constant 0 : i32
    %c0_i32_0 = arith.constant 0 : i32
    %c0_i32_1 = arith.constant 0 : i32
    return %c0_i32, %c0_i32_0 : i32, i32
  }
  func.func @transform_6(%arg0: i32, %arg1: i32) -> (i32, i32) {
    %c0_i32 = arith.constant 0 : i32
    %c0_i32_0 = arith.constant 0 : i32
    %c0_i32_1 = arith.constant 0 : i32
    return %c0_i32, %c0_i32_0 : i32, i32
  }
  func.func @transform_7(%arg0: i32, %arg1: i32) -> (i32, i32) {
    %c0_i32 = arith.constant 0 : i32
    %c0_i32_0 = arith.constant 0 : i32
    %c0_i32_1 = arith.constant 0 : i32
    return %c0_i32, %c0_i32_0 : i32, i32
  }
  func.func @transform_8(%arg0: i32, %arg1: i32) -> (i32, i32) {
    %c0_i32 = arith.constant 0 : i32
    %c0_i32_0 = arith.constant 0 : i32
    %c0_i32_1 = arith.constant 0 : i32
    return %c0_i32, %c0_i32_0 : i32, i32
  }
  func.func @transform_9(%arg0: i32, %arg1: i32) -> (i32, i32) {
    %c0_i32 = arith.constant 0 : i32
    %c0_i32_0 = arith.constant 0 : i32
    %c0_i32_1 = arith.constant 0 : i32
    return %c0_i32, %c0_i32_0 : i32, i32
  }
  func.func @transform_10(%arg0: i32, %arg1: i32) -> (i32, i32, i32, i32) {
    %c0_i32 = arith.constant 0 : i32
    %c0_i32_0 = arith.constant 0 : i32
    %c0_i32_1 = arith.constant 0 : i32
    return %arg0, %arg1, %c0_i32, %c0_i32_0 : i32, i32, i32, i32
  }
}

</mosaic_0001>

<bundles_post_ra>
// kernel: tpu_custom_call.1
= control target key start
LH: loop header
LB: loop body
LE: loop exit
PB: predicated region body
PF: predicated region fallthrough
CT: control target
= control target key end

     0   :  { %s5886_s0 = inlined_call_operand.hbm [shape: bf16[2,16,16,128], index: 0, kind: input, shape index: {}]   ;;  %s5887_s1 = inlined_call_operand.hbm [shape: bf16[2,16,16,128], index: 1, kind: input, shape index: {}]   ;;  %s5888_s2 = inlined_call_operand.hbm [shape: bf16[2,16,16,128], index: 2, kind: input, shape index: {}]   ;;  %s5889_s3 = inlined_call_operand.hbm [shape: bf16[128,128], index: 3, kind: input, shape index: {}]   ;;  %s5890_s4 = inlined_call_operand.hbm [shape: bf16[3,3,128,128], index: 4, kind: input, shape index: {}]   ;;  %s5891_s5 = inlined_call_operand.hbm [shape: bf16[128,128], index: 5, kind: input, shape index: {}]   ;;  %s5892_s6 = inlined_call_operand.hbm [shape: bf16[128,128], index: 6, kind: input, shape index: {}]   ;;  %s5893_s7 = inlined_call_operand.vmem [shape: f32[1,128], index: 7, kind: input, shape index: {}]   ;;  %s5894_s8 = inlined_call_operand.vmem [shape: f32[1,128], index: 8, kind: input, shape index: {}]   ;;  %s5895_s9 = inlined_call_operand.vmem [shape: f32[1,128], index: 9, kind: input, shape index: {}]   ;;  %s5896_s10 = inlined_call_operand.hbm [shape: f32[2,16,16,128], index: 10, kind: output, shape index: {}]  }
   0x1   :  { %5921 = sst [smem:[#allocation59_spill]] %s5886_s0 }
   0x2   :  { %5922 = sst [smem:[#allocation60_spill]] %s5887_s1 }
   0x3   :  { %5923 = sst [smem:[#allocation61_spill]] %s5888_s2 }
   0x4   :  { %5924 = sst [smem:[#allocation62_spill]] %s5889_s3 }
   0x5   :  { %5925 = sst [smem:[#allocation63_spill]] %s5890_s4 }
   0x6   :  { %5926 = sst [smem:[#allocation64_spill]] %s5891_s5 }
   0x7   :  { %5927 = sst [smem:[#allocation65_spill]] %s5892_s6 }
   0x8   :  { %5928 = sst [smem:[#allocation66_spill]] %s5893_s7 }
   0x9   :  { %5929 = sst [smem:[#allocation67_spill]] %s5894_s8 }
   0xa   :  { %5930 = sst [smem:[#allocation68_spill]] %s5895_s9 }
   0xb   :  { %5931 = sst [smem:[#allocation69_spill]] %s5896_s10 }
   0xc   :  { %15 = vsyncpa [#allocation3], 0 }
   0xd   :  { %17 = vsyncpa [#allocation3 + $0x1], 0 }
   0xe   :  { %18 = vsyncpa [#allocation6], 0 }
   0xf   :  { %20 = vsyncpa [#allocation6 + $0x1], 0 }
  0x10   :  { %21 = vsyncpa [#allocation9], 0 }
  0x11   :  { %22 = vsyncpa [#allocation12], 0 }
  0x12   :  { %23 = vsyncpa [#allocation4], 0 }
  0x13   :  { %25 = vsyncpa [#allocation4 + $0x1], 0  ;;  %s4802_s13 = smov 0   ;;  %s4804_s14 = smov 0  }
  0x14   :  { %s4806_s15 = smov 0   ;;  %s4808_s16 = smov 0  }
  0x15   :  { %s4810_s17 = smov 0   ;;  %s4812_s18 = smov 0  }
  0x16   :  { %s4814_s19 = smov 0   ;;  %s4816_s20 = smov 0  }
  0x17   :  { %s4818_s21 = smov 0   ;;  %s4820_s22 = smov 0  }
  0x18   :  { %s4822_s23 = smov 0   ;;  %s4824_s24 = smov 0  }
  0x19   :  { %s4826_s25 = smov 0   ;;  %s4828_s26 = smov 0  }
  0x1a LB: > { %5932 = sst [smem:[#allocation21_spill]] %s4681_s13  ;;  %s4873_s27 = sadd.s32 4294967295, %s4733_s26   ;;  %s4733_s26 = sphi %s4828_s26, %s31_s26   ;;  %s4729_s25 = sphi %s4826_s25, %s6062_s25   ;;  %s4725_s24 = sphi %s4824_s24, %s6061_s24   ;;  %s4721_s23 = sphi %s4822_s23, %s6060_s23   ;;  %s4717_s22 = sphi %s4820_s22, %s6059_s22   ;;  %s4713_s21 = sphi %s4818_s21, %s6069_s21   ;;  %s4709_s20 = sphi %s4816_s20, %s6068_s20   ;;  %s4705_s19 = sphi %s4814_s19, %s6067_s19   ;;  %s4701_s18 = sphi %s4812_s18, %s6066_s18   ;;  %s4697_s17 = sphi %s4810_s17, %s6065_s17   ;;  %s4693_s16 = sphi %s4808_s16, %s6056_s16   ;;  %s4689_s15 = sphi %s4806_s15, %s6064_s15   ;;  %s4685_s14 = sphi %s4804_s14, %s6055_s14   ;;  %s4681_s13 = sphi %s4802_s13, %s6063_s13  }
  0x1b   : > { %5933 = sst [smem:[#allocation22_spill]] %s4685_s14  ;;  %p3349_p0 = scmp.ge.s32.totalorder %s4733_s26, 1 }
  0x1c   : > { %5934 = sst [smem:[#allocation23_spill]] %s4689_s15  ;;  %p5916_p1 = scmp.eq.s32.totalorder %s4873_s27, 0 }
  0x1d   : > { %5935 = sst [smem:[#allocation24_spill]] %s4697_s17  ;;  %p323_p2 = scmp.lt.s32.totalorder %s4733_s26, 5 }
  0x1e   : > { %5936 = sst [smem:[#allocation25_spill]] %s4717_s22  ;;  %s4735_s29 = smov [#allocation8]  }
  0x1f   : > { %5937 = sst [smem:[#allocation26_spill]] %s4721_s23  ;;  %p4878_p3 = pnand %p3349_p0, %p323_p2 }
  0x20   : > { %5938 = sst [smem:[#allocation27_spill]] %s4725_s24  ;;  %s335_s30 = sshll.u32 %s4735_s29, 4  ;;  %s336_s30 = int_to_ptr.vmem [resolvable:$true] %s335_s30 }
  0x21   : > { %5939 = sst [smem:[#allocation28_spill]] %s4729_s25  ;;  %p4114_p4 = pneg %p4878_p3 }
  0x22   : > { %s5940_s28 = scalar_select %p4878_p3, 1, 0 }
  0x23   : > { %p4886_p5 = pnand %p4114_p4, %p5916_p1  ;;  %s4736_s12 = smov [#allocation11]  }
  0x24   : > { %5941 = sst [smem:[#allocation29_spill]] %s5940_s28  ;;  %s361_s10 = sshll.u32 %s4736_s12, 4  ;;  %s362_s10 = int_to_ptr.vmem [resolvable:$true] %s361_s10 }
  0x25   : > { %p4387_p6 = pneg %p4886_p5  ;;  %s4396_s23 = scalar_lea.vmem %s336_s30, 1024 }
  0x26   : > { %p4397_p7 = scmp.ne.s32.totalorder %s336_s30, %s4396_s23  ;;  %p4404_p10 = scmp.lt.s32.totalorder %s336_s30, %s336_s30 }
  0x27   : > { %p4405_p11 = scmp.lt.s32.totalorder %s4396_s23, %s4396_s23 }
  0x28   : > { %p4399_p8 = pnand %p4397_p7, %p4387_p6 }
  0x29   : > { %p4406_p12 = por %p4405_p11, %p4404_p10 }
  0x2a   : > { %p4400_p9 = pneg %p4399_p8 }
  0x2c   : > { %p4407_p13 = pnand %p4406_p12, %p4400_p9 }
  0x2e   : > { %4410 = shalt.err (!%p4407_p13)
}
  0x2f   : > { %s5899_s29 = smov 64   ;;  %s5901_s9 = smov 4  }
  0x30   : > { %s5943_s3 = sld [smem:[#allocation62_spill]]  ;;  %s4422_s7 = scalar_lea.vmem %s362_s10, 1024 }
  0x31   : > { %p4423_p0 = scmp.ne.s32.totalorder %s362_s10, %s4422_s7  ;;  %p4430_p7 = scmp.lt.s32.totalorder %s362_s10, %s362_s10 }
  0x32   : > { %p4431_p8 = scmp.lt.s32.totalorder %s4422_s7, %s4422_s7 }
  0x33   : > { %p4425_p2 = pnand %p4423_p0, %p4387_p6 }
  0x34   : > { %p4432_p9 = por %p4431_p8, %p4430_p7 }
  0x35   : > { %p4426_p4 = pneg %p4425_p2 }
  0x36   : > { %4117 = dma.hbm_to_vmem [thread:$0]  (!%p4886_p5), %s5943_s3, 1024, %s336_s30, [#allocation9], %s5899_s29, %s5899_s29, %s5901_s9  }
  0x37   : > { %p4433_p10 = pnand %p4432_p9, %p4426_p4 }
  0x39   : > { %4436 = shalt.err (!%p4433_p10)
}
  0x3a   : > { %s5944_s5 = sld [smem:[#allocation64_spill]]  ;;  %s40_s7 = sadd.s32 1, %s4725_s24 }
  0x3b   : > { %s43_s8 = sadd.s32 1, %s4729_s25  ;;  %p41_p11 = scmp.ge.s32.totalorder %s40_s7, 2 }
  0x3c   : > { %p5917_p12 = scmp.eq.s32.totalorder %s4733_s26, 0  ;;  %s3343_s30 = sshll.u32 %s4725_s24, 3 }
  0x3d   : > { %s88_s12 = sadd.s32 1, %s4701_s18  ;;  %s6071_s7 = smov (%p41_p11, %s40_s7), 0 }
  0x3e   : > { %5945 = sst [smem:[#allocation30_spill]] %s6071_s7  ;;  %s6073_s8 = smov (!%p41_p11, %s43_s8), %s4729_s25 }
  0x3f   : > { %s48_s22 = ssub.s32 %s4725_s24, %s6071_s7  ;;  %s3344_s23 = sadd.s32 4294967295, %s3343_s30 }
  0x40   : > { %4123 = dma.hbm_to_vmem [thread:$0]  (!%p4886_p5), %s5944_s5, 1024, %s362_s10, [#allocation12], %s5899_s29, %s5899_s29, %s5901_s9  }
  0x41   : > { %p45_p13 = scmp.ge.s32.totalorder %s6073_s8, 2  ;;  %p77_p0 = scmp.gt.s32.totalorder %s3344_s23, 0 }
  0x42   : > { %s3345_s10 = sshll.u32 %s6071_s7, 3  ;;  %p95_p2 = scmp.ne.s32.totalorder %s4701_s18, %s4697_s17 }
  0x43   : > { %s6075_s8 = smov (%p45_p13, %s6073_s8), 0  ;;  %s6077_s23 = smov (!%p77_p0, %s3344_s23), 0 }
  0x44   : > { %5946 = sst [smem:[#allocation31_spill]] %s6075_s8  ;;  %s4931_s29 = ssub.s32 %s4729_s25, %s6075_s8 }
  0x45   : > { %5947 = sst [smem:[#allocation32_spill]] %s4931_s29  ;;  %s3346_s9 = sadd.s32 4294967295, %s3345_s10 }
  0x46   : > { %s4934_s3 = sor.u32 %s48_s22, %s4931_s29  ;;  %p81_p4 = scmp.gt.s32.totalorder %s3346_s9, 0 }
  0x47   : > { %p50_p7 = scmp.eq.s32.totalorder %s4934_s3, 0  ;;  %p4939_p8 = por %p95_p2, %p5917_p12 }
  0x48   : > { %s6079_s9 = smov (!%p81_p4, %s3346_s9), 0  ;;  %p101_p9 = scmp.ne.s32.totalorder %s4697_s17, %s4693_s16 }
  0x49   : > { %s4945_s8 = sadd.s32 8, %s3343_s30  ;;  %s84_s7 = ssub.s32 %s6077_s23, %s6079_s9 }
  0x4a   : > { %5949 = sst [smem:[#allocation33_spill]] %s4945_s8  ;;  %s85_s22 = sor.u32 %s84_s7, %s4931_s29 }
  0x4b   : > { %p4951_p11 = por %p101_p9, %p5916_p1  ;;  %p86_p13 = scmp.eq.s32.totalorder %s85_s22, 0 }
  0x4c   : > { %s4955_s2 = sadd.s32 8, %s3345_s10  ;;  %p5915_p2 = scmp.lt.s32.totalorder %s4733_s26, 4 }
  0x4d   : > { %s5950_s28 = scalar_select %p4951_p11, 1, 0 }
  0x4e   : > { %s4960_s16 = scalar_select %p86_p13, %s4701_s18, %s88_s12  }
  0x4f   : > { %5951 = sst [smem:[#allocation34_spill]] %s5950_s28  ;;  %s4963_s30 = sshll.u32 %s4729_s25, 5 }
  0x50   : > { %5952 = sst [smem:[#allocation35_spill]] %s4960_s16  ;;  %s421_s9 = sand.u32 1, %s4733_s26  }
  0x51   : > { %s423_s7 = sand.u32 1, %s4701_s18   ;;  %s3363_s29 = sshll.u32 %s6077_s23, 1 }
  0x52   : > { %s3360_s17 = sshll.u32 %s423_s7, 3  ;;  %s435_s13 = sadd.s32 %s3363_s29, %s4963_s30 }
  0x53   : > { %s3365_s14 = sshll.u32 %s435_s13, 6  ;;  %s425_s28 = scalar_lea.vmem [#allocation5], %s3360_s17 }
  0x54   : > { %s438_s22 = sshll.u32 %s425_s28, 4  ;;  %s5953_s1 = sld [smem:[#allocation60_spill]]  ;;  %s439_s22 = int_to_ptr.vmem [resolvable:$true] %s438_s22 }
  0x55   : > { %p4975_p4 = pnand %p5915_p2, %p4939_p8  ;;  %s4739_s25 = smov [#allocation10]  }
  0x56   : > { %s348_s16 = sshll.u32 %s4739_s25, 4  ;;  %s4981_s29 = scalar_lea.sflag [#allocation6], %s421_s9  ;;  %s4979_s16 = int_to_ptr.vmem [resolvable:$true] %s348_s16 }
  0x57   : > { %p4439_p9 = pneg %p4975_p4  ;;  %s4450_s13 = scalar_lea.vmem %s439_s22, 128 }
  0x58   : > { %p4451_p13 = scmp.ne.s32.totalorder %s439_s22, %s4450_s13 }
  0x5a   : > { %s437_s10 = scalar_lea.hbm %s5953_s1, %s3365_s14  ;;  %p4453_p0 = pnand %p4451_p13, %p4439_p9 }
  0x5b   : > { %s4740_s14 = smov [#allocation5]  }
  0x5c   : > { %p4454_p10 = pneg %p4453_p0  ;;  %s4455_s5 = sshll.u32 %s4740_s14, 4  ;;  %s4456_s5 = int_to_ptr.vmem [resolvable:$false] %s4455_s5 }
  0x5d   : > { %s4457_s15 = scalar_lea.vmem %s4456_s5, 256  ;;  %p4458_p8 = scmp.lt.s32.totalorder %s439_s22, %s4456_s5 }
  0x5e   : > { %p4459_p2 = scmp.lt.s32.totalorder %s4457_s15, %s4450_s13 }
  0x60   : > { %p4460_p1 = por %p4459_p2, %p4458_p8 }
  0x62   : > { %p4461_p12 = pnand %p4460_p1, %p4454_p10 }
  0x64   : > { %4464 = shalt.err (!%p4461_p12)
}
  0x65   : > { %s5955_s17 = smov 4   ;;  %s5956_s25 = smov 64  }
  0x66   : > { %4133 = dma.hbm_to_vmem [thread:$0]  (!%p4975_p4), %s437_s10, 128, %s439_s22, %s4981_s29, %s5956_s25, %s5956_s25, %s5955_s17  }
  0x67   : > { %s4476_s28 = scalar_lea.vmem %s4979_s16, 9216  ;;  %p4484_p1 = scmp.lt.s32.totalorder %s4979_s16, %s4979_s16 }
  0x68   : > { %p4477_p0 = scmp.ne.s32.totalorder %s4979_s16, %s4476_s28  ;;  %p4485_p12 = scmp.lt.s32.totalorder %s4476_s28, %s4476_s28 }
  0x6a   : > { %p4479_p9 = pnand %p4477_p0, %p4387_p6  ;;  %p4486_p10 = por %p4485_p12, %p4484_p1 }
  0x6c   : > { %p4480_p13 = pneg %p4479_p9 }
  0x6e   : > { %p4487_p2 = pnand %p4486_p10, %p4480_p13 }
  0x70   : > { %4490 = shalt.err (!%p4487_p2)
}
  0x71   : > { %s5957_s4 = sld [smem:[#allocation63_spill]]  ;;  %s4741_s9 = smov [#allocation13]  }
  0x72   : > { %s374_s7 = sshll.u32 %s4741_s9, 4  ;;  %s375_s7 = int_to_ptr.vmem [resolvable:$true] %s374_s7 }
  0x73   : > { %s4502_s22 = scalar_lea.vmem %s375_s7, 1024  ;;  %p4510_p9 = scmp.lt.s32.totalorder %s375_s7, %s375_s7 }
  0x74   : > { %p4503_p4 = scmp.ne.s32.totalorder %s375_s7, %s4502_s22  ;;  %p4511_p13 = scmp.lt.s32.totalorder %s4502_s22, %s4502_s22 }
  0x76   : > { %p4505_p8 = pnand %p4503_p4, %p4387_p6  ;;  %p4512_p1 = por %p4511_p13, %p4510_p9 }
  0x77   : > { %4120 = dma.hbm_to_vmem [thread:$0]  (!%p4886_p5), %s5957_s4, 9216, %s4979_s16, [#allocation9], %s5956_s25, %s5956_s25, %s5955_s17  }
  0x78   : > { %p4506_p0 = pneg %p4505_p8 }
  0x7a   : > { %p4513_p12 = pnand %p4512_p1, %p4506_p0 }
  0x7c   : > { %4516 = shalt.err (!%p4513_p12)
}
  0x7d   : > { %s5958_s6 = sld [smem:[#allocation65_spill]]  ;;  %s3342_s11 = sadd.s32 4294967294, %s4733_s26  }
  0x7e   : > { %s52_s12 = sadd.s32 1, %s4713_s21  ;;  %p59_p6 = scmp.ne.s32.totalorder %s4713_s21, %s4709_s20 }
  0x7f   : > { %s5023_s13 = scalar_select %p50_p7, %s4713_s21, %s52_s12  }
  0x80   : > { %p65_p10 = scmp.ne.s32.totalorder %s4709_s20, %s4705_s19  ;;  %p310_p2 = scmp.eq.s32.totalorder %s4873_s27, 3 }
  0x81   : > { %p316_p4 = scmp.eq.s32.totalorder %s3342_s11, 3  ;;  %p5959_p8 = scmp.eq.s32.totalorder %s4733_s26, 0 }
  0x82   : > { %p5961_p9 = scmp.eq.s32.totalorder %s4873_s27, 0  ;;  %s397_s28 = sand.u32 1, %s4713_s21  }
  0x83   : > { %4126 = dma.hbm_to_vmem [thread:$0]  (!%p4886_p5), %s5958_s6, 1024, %s375_s7, [#allocation12], %s5956_s25, %s5956_s25, %s5955_s17  }
  0x84   : > { %p5032_p0 = por %p5959_p8, %p59_p6  ;;  %p5038_p13 = por %p5961_p9, %p65_p10 }
  0x85   : > { %p5042_p5 = por %p310_p2, %p59_p6  ;;  %p5046_p7 = por %p316_p4, %p65_p10 }
  0x86   : > { %s3506_s8 = sshll.u32 %s4725_s24, 4  ;;  %s3355_s23 = sshll.u32 %s397_s28, 6 }
  0x87   : > { %s5963_s3 = scalar_select %p5042_p5, 1, 0 }
  0x88   : > { %s5964_s15 = scalar_select %p5046_p7, 1, 0 }
  0x89   : > { %s408_s9 = sadd.s32 %s3506_s8, %s4963_s30  ;;  %s401_s22 = scalar_lea.vmem [#allocation2], %s3355_s23 }
  0x8a   : > { %s3359_s7 = sshll.u32 %s408_s9, 6  ;;  %s411_s16 = sshll.u32 %s401_s22, 4  ;;  %s412_s16 = int_to_ptr.vmem [resolvable:$true] %s411_s16 }
  0x8b   : > { %s5965_s0 = sld [smem:[#allocation59_spill]]  ;;  %p5966_p1 = scmp.lt.s32.totalorder %s4733_s26, 4 }
  0x8c   : > { %s398_s4 = scalar_lea.sflag [#allocation3], %s397_s28  ;;  %s4530_s6 = scalar_lea.vmem %s412_s16, 1024 }
  0x8d   : > { %p5060_p12 = pnand %p5966_p1, %p5032_p0  ;;  %p4531_p10 = scmp.ne.s32.totalorder %s412_s16, %s4530_s6 }
  0x8e   : > { %s4742_s8 = smov [#allocation2]  }
  0x8f   : > { %p4519_p6 = pneg %p5060_p12  ;;  %s4535_s23 = sshll.u32 %s4742_s8, 4  ;;  %s4536_s23 = int_to_ptr.vmem [resolvable:$false] %s4535_s23 }
  0x90   : > { %s4537_s9 = scalar_lea.vmem %s4536_s23, 2048  ;;  %p4538_p8 = scmp.lt.s32.totalorder %s412_s16, %s4536_s23 }
  0x91   : > { %s410_s12 = scalar_lea.hbm %s5965_s0, %s3359_s7  ;;  %p4533_p2 = pnand %p4531_p10, %p4519_p6 }
  0x92   : > { %p4539_p9 = scmp.lt.s32.totalorder %s4537_s9, %s4530_s6 }
  0x93   : > { %p4534_p4 = pneg %p4533_p2 }
  0x94   : > { %p4540_p7 = por %p4539_p9, %p4538_p8 }
  0x96   : > { %p4541_p5 = pnand %p4540_p7, %p4534_p4 }
  0x98   : > { %4544 = shalt.err (!%p4541_p5)
}
  0x99   : > { %s5968_s14 = sld [smem:[#allocation33_spill]]  ;;  %p5974_p5 = scmp.lt.s32.totalorder %s4955_s2, 15 }
  0x9a   : > { %s5969_s28 = sld [smem:[#allocation23_spill]]  ;;  %p5975_p6 = scmp.eq.s32.totalorder %s4733_s26, 0 }
  0x9b   : > { %s5970_s7 = sld [smem:[#allocation22_spill]]  ;;  %s6083_s2 = smov (!%p5974_p5, %s4955_s2), 15 }
  0x9c   : > { %s5971_s22 = sld [smem:[#allocation21_spill]]  ;;  %p5977_p4 = scmp.eq.s32.totalorder %s4873_s27, 0 }
  0x9d   : > { %s5972_s10 = sld [smem:[#allocation32_spill]] }
  0x9e   : > { %4130 = dma.hbm_to_vmem [thread:$0]  (!%p5060_p12), %s410_s12, 1024, %s412_s16, %s398_s4, %s5956_s25, %s5956_s25, %s5955_s17  }
  0x9f   : > { %p5973_p0 = scmp.lt.s32.totalorder %s5968_s14, 15  ;;  %p5980_p12 = scmp.lt.s32.totalorder %s4733_s26, 4 }
  0xa0   : > { %s124_s1 = sadd.s32 1, %s5969_s28  ;;  %s450_s16 = sand.u32 1, %s5969_s28  }
  0xa1   : > { %s6081_s14 = smov (!%p5973_p0, %s5968_s14), 15  ;;  %p131_p7 = scmp.ne.s32.totalorder %s5969_s28, %s5970_s7 }
  0xa2   : > { %s120_s6 = ssub.s32 %s6081_s14, %s6083_s2  ;;  %p137_p1 = scmp.ne.s32.totalorder %s5970_s7, %s5971_s22 }
  0xa3   : > { %s121_s11 = sor.u32 %s120_s6, %s5972_s10  ;;  %p5085_p10 = por %p131_p7, %p5975_p6 }
  0xa4   : > { %p122_p2 = scmp.eq.s32.totalorder %s121_s11, 0  ;;  %p5091_p8 = por %p137_p1, %p5977_p4 }
  0xa5   : > { %s3368_s12 = sshll.u32 %s6081_s14, 1  ;;  %s3366_s2 = sshll.u32 %s450_s16, 3 }
  0xa6   : > { %s5978_s4 = scalar_select %p5091_p8, 1, 0 }
  0xa7   : > { %s6085_s28 = smov (!%p122_p2, %s5969_s28), %s124_s1  ;;  %s462_s23 = sadd.s32 %s3368_s12, %s4963_s30 }
  0xa8   : > { %s3370_s9 = sshll.u32 %s462_s23, 6  ;;  %s5979_s10 = sld [smem:[#allocation61_spill]] }
  0xa9   : > { %s452_s0 = scalar_lea.vmem [#allocation7], %s3366_s2  ;;  %p5107_p9 = pnand %p5980_p12, %p5085_p10 }
  0xaa   : > { %s465_s24 = sshll.u32 %s452_s0, 4  ;;  %s4743_s30 = smov [#allocation7]   ;;  %s466_s24 = int_to_ptr.vmem [resolvable:$true] %s465_s24 }
  0xab   : > { %p4547_p0 = pneg %p5107_p9  ;;  %s4558_s14 = scalar_lea.vmem %s466_s24, 128 }
  0xac   : > { %p4559_p5 = scmp.ne.s32.totalorder %s466_s24, %s4558_s14  ;;  %s4563_s1 = sshll.u32 %s4743_s30, 4  ;;  %s4564_s1 = int_to_ptr.vmem [resolvable:$false] %s4563_s1 }
  0xad   : > { %s4565_s16 = scalar_lea.vmem %s4564_s1, 256  ;;  %p4566_p6 = scmp.lt.s32.totalorder %s466_s24, %s4564_s1 }
  0xae   : > { %s464_s6 = scalar_lea.hbm %s5979_s10, %s3370_s9  ;;  %p4561_p7 = pnand %p4559_p5, %p4547_p0 }
  0xaf   : > { %p4567_p2 = scmp.lt.s32.totalorder %s4565_s16, %s4558_s14 }
  0xb0   : > { %p4562_p1 = pneg %p4561_p7 }
  0xb1   : > { %p4568_p4 = por %p4567_p2, %p4566_p6 }
  0xb3   : > { %p4569_p8 = pnand %p4568_p4, %p4562_p1 }
  0xb5   : > { %4572 = shalt.err (!%p4569_p8)
}
  0xb6   : > { %4136 = dma.hbm_to_vmem [thread:$0]  (!%p5107_p9), %s464_s6, 128, %s466_s24, %s4981_s29, %s5956_s25, %s5956_s25, %s5955_s17  }
  0xb7   : > { %477 = sbr.rel (%p4878_p3) target bundleno = 1039 (0x40f), region = 60 }
  0xbc   : > { %s5122_s8 = sand.u32 1, %s4709_s20  }
  0xbd   : > { %s3372_s12 = sshll.u32 %s5122_s8, 6  ;;  %s480_s2 = scalar_lea.sflag [#allocation3], %s5122_s8 }
  0xbe   : > { %s5126_s23 = scalar_lea.vmem [#allocation2], %s3372_s12 }
  0xbf   : > { %4656 = dma.done.wait (%p5038_p13), %s480_s2, 1024  }
  0xc0   : > { %4658 = vsyncadd (%p5038_p13), %s480_s2, 4294966272  ;;  %s5983_s24 = sld [smem:[#allocation24_spill]]  ;;  %s488_s17 = sand.u32 1, %s4873_s27  }
  0xc1   : > { %s489_s7 = scalar_lea.sflag [#allocation6], %s488_s17 }
  0xc6   : > { %s490_s25 = sand.u32 1, %s5983_s24  }
  0xc7   : > { %s3373_s9 = sshll.u32 %s490_s25, 3 }
  0xc8   : > { %s492_s22 = scalar_lea.vmem [#allocation5], %s3373_s9 }
  0xc9   : > { %4660 = dma.done.wait (%p4951_p11), %s489_s7, 128  }
  0xca   : > { %4662 = vsyncadd (%p4951_p11), %s489_s7, 4294967168  ;;  %s5985_s10 = sld [smem:[#allocation22_spill]]  ;;  %p5986_p3 = scmp.ne.s32.totalorder %s5978_s4, 0 }
  0xd0   : > { %s499_s6 = sand.u32 1, %s5985_s10  }
  0xd1   : > { %s5139_s11 = sshll.u32 %s499_s6, 3 }
  0xd2   : > { %s501_s5 = scalar_lea.vmem [#allocation7], %s5139_s11 }
  0xd3   : > { %4664 = dma.done.wait (%p5986_p3), %s489_s7, 128  }
  0xd4   : > { %4666 = vsyncadd (%p5986_p3), %s489_s7, 4294967168  ;;  %p5987_p13 = scmp.eq.s32.totalorder %s4873_s27, 0 }
  0xd6   : > { %4668 = dma.done.wait (%p5987_p13), [#allocation9], 10240   ;;  %p5988_p10 = pmov %p5987_p13 }
  0xd8   : > { %4670 = vsyncadd (%p5988_p10), [#allocation9], 4294957056  ;;  %p5989_p11 = pmov %p5988_p10 }
  0xd9   : > { %p5990_p8 = pmov %p5988_p10 }
  0xda   : > { %4672 = dma.done.wait (%p5989_p11), [#allocation12], 2048  }
  0xdb   : > { %4674 = vsyncadd (%p5990_p8), [#allocation12], 4294965248  ;;  %v4271_v0 = vld [vmem:[#allocation8 + $0x38] sm:$0xff]   ;;  %v4272_v1 = vld [vmem:[#allocation8 + $0x30] sm:$0xff]   ;;  %s5991_s27 = sld [smem:[#allocation25_spill]]  ;;  %vm1141_vm3 = vcmask 1047552  }
  0xdc   : > { %3702 = vmatprep.subr.bf16.mxu0 %v4271_v0  ;;  %v4273_v2 = vld [vmem:[#allocation8 + $0x28] sm:$0xff]   ;;  %v4274_v3 = vld [vmem:[#allocation8 + $0x20] sm:$0xff]   ;;  %v4275_v5 = vld [vmem:[#allocation8 + $0x18] sm:$0xff]   ;;  %s5992_s1 = sld [smem:[#allocation66_spill]]  ;;  %vm1142_vm4 = vsmask.f32 7424 }
  0xdd   : > { %3703 = vmatpush3.bf16.msra.mxu0 %v4271_v0  ;;  %v4279_v4 = vld [vmem:[%s492_s22] sm:$0xff]   ;;  %v4276_v6 = vld [vmem:[#allocation8 + $0x10] sm:$0xff]   ;;  %v4289_v7 = vld [vmem:[#allocation10 + $0x78] sm:$0xff]   ;;  %vm1098_vm6 = vcmask 1040384   ;;  %vm1099_vm7 = vsmask.f32 256 }
  0xde   : > { %3704 = vmatprep.subr.bf16.mxu0 %v4272_v1  ;;  %3718 = vmatprep.mubr.bf16.mxu0 %v4279_v4  ;;  %v4290_v8 = vld [vmem:[#allocation10 + $0x70] sm:$0xff]   ;;  %v4277_v9 = vld [vmem:[#allocation8 + $0x8] sm:$0xff]   ;;  %v4278_v11 = vld [vmem:[#allocation8] sm:$0xff]   ;;  %s6024_s2 = sld [smem:[#allocation67_spill]]  ;;  %s3379_s17 = sshll.u32 %s5122_s8, 7 }
  0xdf   : > { %3738 = vmatprep.subr.bf16.mxu1 %v4289_v7  ;;  %v4291_v10 = vld [vmem:[#allocation10 + $0x68] sm:$0xff]   ;;  %v4293_v12 = vld [vmem:[#allocation10 + $0x60] sm:$0xff]   ;;  %v4292_v13 = vld [vmem:[#allocation10 + $0xb8] sm:$0xff]   ;;  %s6048_s29 = sld [smem:[#allocation68_spill]]  ;;  %s5769_s25 = scalar_lea.vmem [#allocation14], %s3379_s17 }
  0xe0   : > { %3739 = vmatpush3.bf16.msra.mxu1 %v4289_v7  ;;  %v4280_v14 = vld [vmem:[%s5126_s23] sm:$0xff]   ;;  %v4295_v15 = vld [vmem:[#allocation10 + $0x58] sm:$0xff]   ;;  %v4281_v16 = vld [vmem:[%s5126_s23 + $0x8] sm:$0xff]   ;;  %s6049_s9 = sld [smem:[#allocation26_spill]]  ;;  %s3164_s11 = sshll.u32 %s5769_s25, 4  ;;  %s5807_s11 = int_to_ptr.vmem [resolvable:$true] %s3164_s11 }
  0xe1   : > { %3705 = vmatpush3.bf16.msra.mxu0 %v4272_v1  ;;  %3740 = vmatprep.subr.bf16.mxu1 %v4290_v8  ;;  %v4294_v17 = vld [vmem:[#allocation10 + $0xb0] sm:$0xff]   ;;  %v4296_v18 = vld [vmem:[#allocation10 + $0xa8] sm:$0xff]   ;;  %v4283_v20 = vld [vmem:[%s5126_s23 + $0x18] sm:$0xff]   ;;  %p880_p12 = scmp.eq.s32.totalorder %s5991_s27, 0  ;;  %p924_p9 = scmp.eq.s32.totalorder %s5991_s27, 1 }
  0xe2   : > { %3706 = vmatprep.subr.bf16.mxu0 %v4273_v2  ;;  %v4282_v19 = vld [vmem:[%s5126_s23 + $0x10] sm:$0xff]   ;;  %v4284_v21 = vld [vmem:[%s5126_s23 + $0x20] sm:$0xff]   ;;  %v4285_v22 = vld [vmem:[%s5126_s23 + $0x28] sm:$0xff]   ;;  %s3507_s7 = sshll.u32 %s5991_s27, 4  ;;  %s3148_s30 = scalar_lea.sflag [#allocation4], %s5122_s8 }
  0xe3   : > { %v4286_v23 = vld [vmem:[%s5126_s23 + $0x30] sm:$0xff]   ;;  %v4287_v24 = vld [vmem:[%s5126_s23 + $0x38] sm:$0xff]   ;;  %v4298_v27 = vld [vmem:[#allocation10 + $0xa0] sm:$0xff]   ;;  %s881_s4 = scalar_select %p880_p12, 1, 0 }
  0xe4   : > { %3741 = vmatpush3.bf16.msra.mxu1 %v4290_v8  ;;  %v4288_v25 = vld [vmem:[%s501_s5] sm:$0xff]   ;;  %v4299_v28 = vld [vmem:[#allocation10 + $0x48] sm:$0xff]   ;;  %v4301_v30 = vld [vmem:[#allocation10 + $0x40] sm:$0xff]   ;;  %s5256_s16 = scalar_select %p924_p9, 1, 0 }
  0xe5   : > { %3707 = vmatpush3.bf16.msra.mxu0 %v4273_v2  ;;  %3742 = vmatprep.subr.bf16.mxu1 %v4291_v10  ;;  %v4297_v26 = vld [vmem:[#allocation10 + $0x50] sm:$0xff]   ;;  %v4300_v29 = vld [vmem:[#allocation10 + $0x98] sm:$0xff]   ;;  %v4304_v33 = vld [vmem:[#allocation10 + $0x88] sm:$0xff]   ;;  %v882_v41 = vstv %s881_s4  ;;  %s6050_s4 = sld [smem:[#allocation69_spill]]  ;;  %p6051_p5 = scmp.ne.s32.totalorder %s5963_s3, 0 }
  0xe6   : > { %3708 = vmatprep.subr.bf16.mxu0 %v4274_v3  ;;  %v4302_v31 = vld [vmem:[#allocation10 + $0x90] sm:$0xff]   ;;  %v4303_v32 = vld [vmem:[#allocation10 + $0x38] sm:$0xff]   ;;  %v4306_v34 = vld [vmem:[#allocation10 + $0x80] sm:$0xff]   ;;  %vm5176_vm0 = vcmp.eq.s32.totalorder %v882_v41, 1  ;;  %s3502_s22 = sshll.u32 %s6049_s9, 5 }
  0xe7   : > { %v5164_v35 = vld [vmem:[#allocation10 + $0x138] sm:$0xff]   ;;  %v5171_v37 = vld [vmem:[%s5992_s1] ss:$0 sm:$0xff]  ;;  %vm3407_vm1 = vmneg %vm5176_vm0  ;;  %s3161_s10 = sadd.s32 %s3507_s7, %s3502_s22  ;;  %s4573_s1 = scalar_lea.vmem %s5807_s11, 2048 }
  0xe8   : > { %3743 = vmatpush3.bf16.msra.mxu1 %v4291_v10  ;;  %vm3409_vm2 = vmpackc.low %vm3407_vm1, %vm3407_vm1  ;;  %v4305_v63 = vld [vmem:[#allocation10 + $0x30] sm:$0xff]   ;;  %s3503_s6 = sshll.u32 %s3161_s10, 7  ;;  %p4574_p0 = scmp.ne.s32.totalorder %s5807_s11, %s4573_s1 }
  0xe9   : > { %3709 = vmatpush3.bf16.msra.mxu0 %v4274_v3  ;;  %3744 = vmatprep.subr.bf16.mxu1 %v4293_v12  ;;  %vm5214_vm5 = vmand %vm1141_vm3, %vm1142_vm4 }
  0xea   : > { %3710 = vmatprep.subr.bf16.mxu0 %v4275_v5  ;;  %vm5307_vm9 = vmand %vm1098_vm6, %vm1099_vm7  ;;  %p4575_p7 = pnand %p4574_p0, %p6051_p5 }
  0xeb   : > { %s5805_s14 = scalar_lea.hbm %s6050_s4, %s3503_s6 }
  0xec   : > { %3745 = vmatpush3.bf16.msra.mxu1 %v4293_v12  ;;  %p4576_p1 = pneg %p4575_p7 }
  0xed   : > { %3711 = vmatpush3.bf16.msra.mxu0 %v4275_v5  ;;  %3746 = vmatprep.subr.bf16.mxu1 %v4295_v15 }
  0xee   : > { %3712 = vmatprep.subr.bf16.mxu0 %v4276_v6 }
  0xf0   : > { %3747 = vmatpush3.bf16.msra.mxu1 %v4295_v15 }
  0xf1   : > { %3713 = vmatpush3.bf16.msra.mxu0 %v4276_v6  ;;  %3748 = vmatprep.subr.bf16.mxu1 %v4297_v26 }
  0xf2   : > { %3714 = vmatprep.subr.bf16.mxu0 %v4277_v9 }
  0xf4   : > { %3749 = vmatpush3.bf16.msra.mxu1 %v4297_v26  ;;  %v4310_v26 = vld [vmem:[#allocation10 + $0x130] sm:$0xff]  }
  0xf5   : > { %3715 = vmatpush3.bf16.msra.mxu0 %v4277_v9  ;;  %3750 = vmatprep.subr.bf16.mxu1 %v4299_v28 }
  0xf6   : > { %3716 = vmatprep.subr.bf16.mxu0 %v4278_v11 }
  0xf8   : > { %3751 = vmatpush3.bf16.msra.mxu1 %v4299_v28 }
  0xf9   : > { %3717 = vmatpush3.bf16.msra.mxu0 %v4278_v11  ;;  %3752 = vmatprep.subr.bf16.mxu1 %v4301_v30 }
  0xfa   : > { %3802 = vmatprep.subr.bf16.mxu0 %v4292_v13 }
  0xfc   : > { %3719 = vmatmul.mubr.bf16.vlgmr.msra.gmra.mxu0 %v4280_v14  ;;  %3753 = vmatpush3.bf16.msra.mxu1 %v4301_v30 }
  0xfd   : > { %3722 = vmatprep.mubr.bf16.mxu0 %v4281_v16  ;;  %3803 = vmatpush3.bf16.msra.mxu0 %v4292_v13  ;;  %v4307_v13 = vld [vmem:[#allocation10 + $0x28] sm:$0xff]  }
  0xfe   : > { %3804 = vmatprep.subr.bf16.mxu0 %v4294_v17  ;;  %3770 = vmatprep.subr.bf16.mxu1 %v4303_v32 }
 0x101   : > { %3805 = vmatpush3.bf16.msra.mxu0 %v4294_v17 }
 0x102   : > { %3806 = vmatprep.subr.bf16.mxu0 %v4296_v18 }
 0x104   : > { %3723 = vmatmul.mubr.bf16.gmra.mxu0 %v4282_v19  ;;  %v4361_v19 = vld [vmem:[#allocation13 + $0x38] sm:$0xff]  }
 0x105   : > { %3726 = vmatprep.mubr.bf16.mxu0 %v4283_v20  ;;  %3807 = vmatpush3.bf16.msra.mxu0 %v4296_v18 }
 0x106   : > { %3808 = vmatprep.subr.bf16.mxu0 %v4298_v27 }
 0x109   : > { %3809 = vmatpush3.bf16.msra.mxu0 %v4298_v27 }
 0x10a   : > { %3810 = vmatprep.subr.bf16.mxu0 %v4300_v29 }
 0x10c   : > { %3727 = vmatmul.mubr.bf16.gmra.mxu0 %v4284_v21 }
 0x10d   : > { %3730 = vmatprep.mubr.bf16.mxu0 %v4285_v22  ;;  %3811 = vmatpush3.bf16.msra.mxu0 %v4300_v29 }
 0x10e   : > { %3812 = vmatprep.subr.bf16.mxu0 %v4302_v31 }
 0x111   : > { %3813 = vmatpush3.bf16.msra.mxu0 %v4302_v31 }
 0x112   : > { %3814 = vmatprep.subr.bf16.mxu0 %v4304_v33 }
 0x114   : > { %3731 = vmatmul.mubr.bf16.gmra.mxu0 %v4286_v23 }
 0x115   : > { %3734 = vmatprep.mubr.bf16.mxu0 %v4287_v24  ;;  %3815 = vmatpush3.bf16.msra.mxu0 %v4304_v33 }
 0x116   : > { %3816 = vmatprep.subr.bf16.mxu0 %v4306_v34 }
 0x119   : > { %3817 = vmatpush3.bf16.msra.mxu0 %v4306_v34 }
 0x11a   : > { %3866 = vmatprep.subr.bf16.mxu0 %v5164_v35 }
 0x11c   : > { %3735 = vmatmul.mubr.bf16.gmra.mxu0 %v4288_v25  ;;  %v4309_v25 = vld [vmem:[#allocation10 + $0x20] sm:$0xff]  }
 0x1bc   : > { %v3720_v36 = vpop.f32.mrf.mxu0 }
 0x1bd   : > { %v769_v39 = vadd.f32 %v3720_v36, %v5171_v37 }
 0x1be   : > { %v760_v38 = vpop.f32.mrf.mxu0 }
 0x1bf   : > { %v761_v40 = vadd.f32 %v5171_v37, %v760_v38  ;;  %v970_v46 = vmax.f32 %v769_v39, 0.0 }
 0x1c0   : > { %v3721_v42 = vpop.f32.mrf.mxu0 }
 0x1c1   : > { %v772_v43 = vadd.f32 %v3721_v42, %v5171_v37  ;;  %v968_v47 = vmax.f32 %v761_v40, 0.0 }
 0x1c2   : > { %v763_v45 = vpop.f32.mrf.mxu0 }
 0x1c3   : > { %v971_v48 = vmax.f32 %v772_v43, 0.0  ;;  %v764_v49 = vadd.f32 %v5171_v37, %v763_v45  ;;  %v988_v54 = vsel %vm5176_vm0, 0.0, %v968_v47 }
 0x1c4   : > { %v3724_v50 = vpop.f32.mrf.mxu0 }
 0x1c5   : > { %v5183_v51 = vpack.c.bf16 %v971_v48, %v970_v46  ;;  %v969_v52 = vmax.f32 %v764_v49, 0.0  ;;  %v785_v57 = vadd.f32 %v3724_v50, %v5171_v37  ;;  %v4311_v46 = vld [vmem:[#allocation10 + $0x18] sm:$0xff]  }
 0x1c6   : > { %v776_v53 = vpop.f32.mrf.mxu0 }
 0x1c7   : > { %v1029_v55 = vshll.u32 %v5183_v51, 16  ;;  %v989_v56 = vsel %vm5176_vm0, 0.0, %v969_v52  ;;  %v3410_v60 = vpack.c.bf16 %v969_v52, %v968_v47  ;;  %v777_v61 = vadd.f32 %v5171_v37, %v776_v53  ;;  %v4312_v47 = vld [vmem:[#allocation10 + $0x128] sm:$0xff]  }
 0x1c8   : > { %v5191_v58 = vpack.c.bf16 %v989_v56, %v988_v54  ;;  %v3725_v59 = vpop.f32.mrf.mxu0  ;;  %v974_v3 = vmax.f32 %v785_v57, 0.0  ;;  %v1026_v9 = vshrl.u32 %v5183_v51, 16  ;;  %v4313_v56 = vld [vmem:[#allocation10 + $0x10] sm:$0xff]   ;;  %v4314_v57 = vld [vmem:[#allocation10 + $0x120] sm:$0xff]  }
 0x1c9   : > { %v788_v62 = vadd.f32 %v3725_v59, %v5171_v37  ;;  %3754 = vmatprep.mubr.msk.bf16.mxu1 %vm3409_vm2, %v3410_v60  ;;  %v1113_v2 = vrot.slane %v1029_v55, 1  ;;  %v972_v10 = vmax.f32 %v777_v61, 0.0 }
 0x1ca   : > { %v1022_v0 = vshll.u32 %v5191_v58, 16  ;;  %v779_v1 = vpop.f32.mrf.mxu0  ;;  %3755 = vmatmul.mubr.bf16.vlgmr.msra.gmra.mxu1 %v5183_v51  ;;  %v1019_v7 = vshrl.u32 %v5191_v58, 16 }
 0x1cb   : > { %v975_v4 = vmax.f32 %v788_v62, 0.0  ;;  %v780_v5 = vadd.f32 %v5171_v37, %v779_v1  ;;  %3771 = vmatpush3.bf16.msra.mxu1 %v4303_v32  ;;  %v1114_v17 = vor.u32 %v1113_v2, %v1026_v9 }
 0x1cc   : > { %v3728_v6 = vpop.f32.mrf.mxu0  ;;  %v1111_v8 = vrot.slane %v1022_v0, 1  ;;  %3772 = vmatprep.subr.bf16.mxu1 %v4305_v63  ;;  %v1021_v1 = vrot.slane %v1019_v7, 7 }
 0x1cd   : > { %v5204_v11 = vpack.c.bf16 %v975_v4, %v974_v3  ;;  %v973_v12 = vmax.f32 %v780_v5, 0.0  ;;  %v801_v14 = vadd.f32 %v3728_v6, %v5171_v37  ;;  %v5227_v30 = vsel %vm5214_vm5, %v1114_v17, 0  ;;  %v4316_v17 = vld [vmem:[#allocation10 + $0x118] sm:$0xff]  }
 0x1ce   : > { %v792_v15 = vpop.f32.mrf.mxu0  ;;  %v1112_v16 = vor.u32 %v1111_v8, %v1019_v7 }
 0x1cf   : > { %v5211_v18 = vpack.c.bf16 %v973_v12, %v972_v10  ;;  %3773 = vmatpush3.bf16.msra.mxu1 %v4305_v63  ;;  %v1043_v22 = vshll.u32 %v5204_v11, 16  ;;  %v793_v23 = vadd.f32 %v5171_v37, %v792_v15  ;;  %v978_v28 = vmax.f32 %v801_v14, 0.0  ;;  %v4315_v15 = vld [vmem:[#allocation10 + $0x8] sm:$0xff]  }
 0x1d0   : > { %v3729_v20 = vpop.f32.mrf.mxu0  ;;  %v1144_v21 = vsel %vm5214_vm5, %v1112_v16, 0  ;;  %3774 = vmatprep.subr.bf16.mxu1 %v4307_v13  ;;  %v1040_v39 = vshrl.u32 %v5204_v11, 16  ;;  %v926_v10 = vstv %s5256_s16  ;;  %s4744_s16 = smov [#allocation14]  }
 0x1d1   : > { %v804_v24 = vadd.f32 %v3729_v20, %v5171_v37  ;;  %3758 = vmatprep.mubr.bf16.mxu1 %v5211_v18  ;;  %v1036_v27 = vshll.u32 %v5211_v18, 16  ;;  %3818 = vmatprep.mubr.bf16.mxu0 %v1144_v21  ;;  %v1117_v31 = vrot.slane %v1043_v22, 1  ;;  %v1033_v34 = vshrl.u32 %v5211_v18, 16  ;;  %s4577_s0 = sshll.u32 %s4744_s16, 4  ;;  %s4578_s0 = int_to_ptr.vmem [resolvable:$false] %s4577_s0 }
 0x1d2   : > { %v795_v29 = vpop.f32.mrf.mxu0  ;;  %3759 = vmatmul.mubr.bf16.gmra.mxu1 %v5204_v11  ;;  %3819 = vmatmul.mubr.bf16.vlgmr.msra.gmra.mxu0 %v5227_v30  ;;  %v976_v40 = vmax.f32 %v793_v23, 0.0  ;;  %v1024_v20 = vor.u32 %v1022_v0, %v1021_v1  ;;  %vm5299_vm8 = vcmp.eq.s32.totalorder %v926_v10, 1  ;;  %s4579_s12 = scalar_lea.vmem %s4578_s0, 4096  ;;  %p4580_p6 = scmp.lt.s32.totalorder %s5807_s11, %s4578_s0 }
 0x1d3   : > { %v979_v32 = vmax.f32 %v804_v24, 0.0  ;;  %v796_v33 = vadd.f32 %v5171_v37, %v795_v29  ;;  %v1115_v36 = vrot.slane %v1036_v27, 1  ;;  %3775 = vmatpush3.bf16.msra.mxu1 %v4307_v13  ;;  %3867 = vmatpush3.bf16.msra.mxu0 %v5164_v35  ;;  %v1118_v35 = vor.u32 %v1117_v31, %v1040_v39  ;;  %v4317_v31 = vld [vmem:[#allocation10] sm:$0xff]   ;;  %v4357_v29 = vld [vmem:[#allocation10 + $0x1d8] sm:$0xff]   ;;  %vm3468_vm10 = vmneg %vm5299_vm8  ;;  %p4581_p2 = scmp.lt.s32.totalorder %s4579_s12, %s4573_s1 }
 0x1d4   : > { %v3732_v38 = vpop.f32.mrf.mxu0  ;;  %3776 = vmatprep.subr.bf16.mxu1 %v4309_v25  ;;  %3868 = vmatprep.subr.bf16.mxu0 %v4310_v26  ;;  %vm3470_vm11 = vmpackc.low %vm3468_vm10, %vm3468_vm10 }
 0x1d5   : > { %v5240_v41 = vpack.c.bf16 %v979_v32, %v978_v28  ;;  %v977_v42 = vmax.f32 %v796_v33, 0.0  ;;  %v1116_v43 = vor.u32 %v1115_v36, %v1033_v34  ;;  %v817_v44 = vadd.f32 %v3732_v38, %v5171_v37  ;;  %v4367_v28 = vld [vmem:[#allocation11 + $0x28] sm:$0xff]   ;;  %p4582_p4 = por %p4581_p2, %p4580_p6 }
 0x1d6   : > { %v808_v45 = vpop.f32.mrf.mxu0  ;;  %v5265_v62 = vsel %vm5214_vm5, %v1118_v35, 0  ;;  %v1028_v33 = vrot.slane %v1026_v9, 7 }
 0x1d7   : > { %v5247_v48 = vpack.c.bf16 %v977_v42, %v976_v40  ;;  %v5251_v49 = vsel %vm5214_vm5, %v1116_v43, 0  ;;  %3777 = vmatpush3.bf16.msra.mxu1 %v4309_v25  ;;  %3869 = vmatpush3.bf16.msra.mxu0 %v4310_v26  ;;  %v1057_v52 = vshll.u32 %v5240_v41, 16  ;;  %v809_v53 = vadd.f32 %v5171_v37, %v808_v45  ;;  %v4318_v42 = vld [vmem:[#allocation10 + $0x110] sm:$0xff]   ;;  %p4583_p3 = pnand %p4582_p4, %p4576_p1 }
 0x1d8   : > { %v3733_v50 = vpop.f32.mrf.mxu0  ;;  %3822 = vmatprep.mubr.bf16.mxu0 %v5251_v49  ;;  %v982_v60 = vmax.f32 %v817_v44, 0.0  ;;  %3778 = vmatprep.subr.bf16.mxu1 %v4311_v46  ;;  %v1054_v6 = vshrl.u32 %v5240_v41, 16  ;;  %v1101_v40 = vsel %vm5307_vm9, 0, %v1024_v20  ;;  %v1035_v44 = vrot.slane %v1033_v34, 7  ;;  %v4324_v20 = vld [vmem:[#allocation10 + $0x1b8] sm:$0xff]  }
 0x1d9   : > { %v820_v54 = vadd.f32 %v3733_v50, %v5171_v37  ;;  %3762 = vmatprep.mubr.bf16.mxu1 %v5247_v48  ;;  %v1050_v59 = vshll.u32 %v5247_v48, 16  ;;  %3870 = vmatprep.subr.bf16.mxu0 %v4312_v47  ;;  %v1121_v63 = vrot.slane %v1057_v52, 1  ;;  %v1047_v4 = vshrl.u32 %v5247_v48, 16  ;;  %v4319_v50 = vld [vmem:[#allocation10 + $0xf8] sm:$0xff]  }
 0x1da   : > { %v811_v61 = vpop.f32.mrf.mxu0  ;;  %3763 = vmatmul.mubr.bf16.gmra.mxu1 %v5240_v41  ;;  %3823 = vmatmul.mubr.bf16.gmra.mxu0 %v5265_v62  ;;  %v980_v7 = vmax.f32 %v809_v53, 0.0  ;;  %v1031_v53 = vor.u32 %v1029_v55, %v1028_v33  ;;  %v1056_v33 = vrot.slane %v1054_v6, 7 }
 0x1db   : > { %v983_v2 = vmax.f32 %v820_v54, 0.0  ;;  %v812_v3 = vadd.f32 %v5171_v37, %v811_v61  ;;  %v1119_v5 = vrot.slane %v1050_v59, 1  ;;  %3779 = vmatpush3.bf16.msra.mxu1 %v4311_v46  ;;  %3871 = vmatpush3.bf16.msra.mxu0 %v4312_v47  ;;  %v1122_v16 = vor.u32 %v1121_v63, %v1054_v6 }
 0x1dc   : > { %v3736_v8 = vpop.f32.mrf.mxu0  ;;  %3780 = vmatprep.subr.bf16.mxu1 %v4313_v56  ;;  %3872 = vmatprep.subr.bf16.mxu0 %v4314_v57  ;;  %v1038_v63 = vor.u32 %v1036_v27, %v1035_v44  ;;  %v1042_v27 = vrot.slane %v1040_v39, 7  ;;  %v4323_v39 = vld [vmem:[#allocation10 + $0xe8] sm:$0xff]   ;;  %v1059_v6 = vor.u32 %v1057_v52, %v1056_v33  ;;  %v4330_v52 = vld [vmem:[#allocation10 + $0x1a0] sm:$0xff]  }
 0x1dd   : > { %v5279_v12 = vpack.c.bf16 %v983_v2, %v982_v60  ;;  %v981_v13 = vmax.f32 %v812_v3, 0.0  ;;  %v1120_v14 = vor.u32 %v1119_v5, %v1047_v4  ;;  %v5288_v21 = vadd.f32 %v3736_v8, %v5171_v37  ;;  %v4321_v5 = vld [vmem:[#allocation10 + $0xf0] sm:$0xff]   ;;  %v4322_v8 = vld [vmem:[#allocation10 + $0x100] sm:$0xff]   ;;  %v4328_v44 = vld [vmem:[#allocation10 + $0x1a8] sm:$0xff]  }
 0x1de   : > { %v5290_v23 = vpop.f32.mrf.mxu0  ;;  %v5319_v38 = vsel %vm5214_vm5, %v1122_v16, 0  ;;  %v5357_v2 = vsel %vm5307_vm9, 0, %v1031_v53  ;;  %v4347_v33 = vld [vmem:[#allocation10 + $0x148] sm:$0xff]  }
 0x1df   : > { %v5292_v24 = vpack.c.bf16 %v981_v13, %v980_v7  ;;  %v5296_v25 = vsel %vm5214_vm5, %v1120_v14, 0  ;;  %v1071_v26 = vshll.u32 %v5279_v12, 16  ;;  %3781 = vmatpush3.bf16.msra.mxu1 %v4313_v56  ;;  %3873 = vmatpush3.bf16.msra.mxu0 %v4314_v57  ;;  %v986_v58 = vmax.f32 %v5288_v21, 0.0  ;;  %v4320_v57 = vld [vmem:[#allocation10 + $0x108] sm:$0xff]   ;;  %v4366_v21 = vld [vmem:[#allocation13 + $0x20] sm:$0xff]  }
 0x1e0   : > { %v3737_v0 = vpop.f32.mrf.mxu0  ;;  %3826 = vmatprep.mubr.bf16.mxu0 %v5296_v25  ;;  %3782 = vmatprep.subr.bf16.mxu1 %v4315_v15  ;;  %v1068_v34 = vshrl.u32 %v5279_v12, 16  ;;  %v5369_v13 = vsel %vm5307_vm9, 0, %v1038_v63  ;;  %v1049_v14 = vrot.slane %v1047_v4, 7  ;;  %v4333_v63 = vld [vmem:[#allocation10 + $0xc0] sm:$0xff]  }
 0x1e1   : > { %3766 = vmatprep.mubr.bf16.mxu1 %v5292_v24  ;;  %v1064_v32 = vshll.u32 %v5292_v24, 16  ;;  %v5315_v36 = vadd.f32 %v3737_v0, %v5171_v37  ;;  %3874 = vmatprep.subr.bf16.mxu0 %v4316_v17  ;;  %v1125_v43 = vrot.slane %v1071_v26, 1  ;;  %v1061_v9 = vshrl.u32 %v5292_v24, 16 }
 0x1e2   : > { %3767 = vmatmul.mubr.bf16.gmra.mxu1 %v5279_v12  ;;  %3827 = vmatmul.mubr.bf16.gmra.mxu0 %v5319_v38  ;;  %v1006_v46 = vsel %vm5299_vm8, 0.0, %v986_v58  ;;  %v827_v53 = vpop.f32.mrf.mxu0 }
 0x1e3   : > { %v1123_v45 = vrot.slane %v1064_v32, 1  ;;  %v987_v35 = vmax.f32 %v5315_v36, 0.0  ;;  %3783 = vmatpush3.bf16.msra.mxu1 %v4315_v15  ;;  %3786 = vmatprep.mubr.bf16.mxu1 %v1101_v40  ;;  %v1126_v56 = vor.u32 %v1125_v43, %v1068_v34  ;;  %v4326_v40 = vld [vmem:[#allocation10 + $0x1b0] sm:$0xff]   ;;  %v4327_v43 = vld [vmem:[#allocation10 + $0xd8] sm:$0xff]   ;;  %v4369_v36 = vld [vmem:[#allocation11 + $0x20] sm:$0xff]  }
 0x1e4   : > { %3875 = vmatpush3.bf16.msra.mxu0 %v4316_v17  ;;  %3784 = vmatprep.subr.bf16.mxu1 %v4317_v31  ;;  %v1045_v17 = vor.u32 %v1043_v22, %v1042_v27  ;;  %v4325_v22 = vld [vmem:[#allocation10 + $0xe0] sm:$0xff]  }
 0x1e5   : > { %v1124_v47 = vor.u32 %v1123_v45, %v1061_v9  ;;  %v1007_v54 = vsel %vm5299_vm8, 0.0, %v987_v35  ;;  %3876 = vmatprep.subr.bf16.mxu0 %v4318_v42  ;;  %v5361_v3 = vsel %vm5214_vm5, %v1126_v56, 0  ;;  %v825_v56 = vadd.f32 %v5171_v37, %v5290_v23  ;;  %v4336_v23 = vld [vmem:[#allocation10 + $0x188] sm:$0xff]   ;;  %v4338_v27 = vld [vmem:[#allocation10 + $0x180] sm:$0xff]  }
 0x1e6   : > { %v1017_v60 = vpack.c.bf16 %v1007_v54, %v1006_v46  ;;  %v4329_v46 = vld [vmem:[#allocation10 + $0xd0] sm:$0xff]   ;;  %v4332_v54 = vld [vmem:[#allocation10 + $0x198] sm:$0xff]  }
 0x1e7   : > { %v5350_v61 = vsel %vm5214_vm5, %v1124_v47, 0  ;;  %3785 = vmatpush3.bf16.msra.mxu1 %v4317_v31  ;;  %v1052_v31 = vor.u32 %v1050_v59, %v1049_v14  ;;  %v1070_v47 = vrot.slane %v1068_v34, 7  ;;  %v4342_v14 = vld [vmem:[#allocation10 + $0x230] sm:$0xff]  }
 0x1e8   : > { %3830 = vmatprep.mubr.bf16.mxu0 %v5350_v61  ;;  %v1082_v55 = vshrl.u32 %v1017_v60, 16  ;;  %v1085_v1 = vshll.u32 %v1017_v60, 16  ;;  %3877 = vmatpush3.bf16.msra.mxu0 %v4318_v42  ;;  %v1063_v42 = vrot.slane %v1061_v9, 7  ;;  %v5411_v9 = vsel %vm5307_vm9, 0, %v1059_v6  ;;  %v4350_v6 = vld [vmem:[#allocation10 + $0x210] sm:$0xff]  }
 0x1e9   : > { %3834 = vmatprep.subr.bf16.mxu1 %v4319_v50  ;;  %3878 = vmatprep.subr.bf16.mxu0 %v4320_v57  ;;  %v5399_v59 = vsel %vm5307_vm9, 0, %v1052_v31  ;;  %v1073_v34 = vor.u32 %v1071_v26, %v1070_v47  ;;  %v984_v26 = vmax.f32 %v825_v56, 0.0  ;;  %v4356_v47 = vld [vmem:[#allocation10 + $0x1e0] sm:$0xff]  }
 0x1ea   : > { %v1084_v10 = vrot.slane %v1082_v55, 7  ;;  %v1129_v7 = vrot.slane %v1085_v1, 1  ;;  %3787 = vmatmul.mubr.bf16.vlgmr.msra.gmra.mxu1 %v5357_v2  ;;  %3831 = vmatmul.mubr.bf16.gmra.mxu0 %v5361_v3  ;;  %v1066_v45 = vor.u32 %v1064_v32, %v1063_v42  ;;  %v4349_v42 = vld [vmem:[#allocation10 + $0x140] sm:$0xff]  }
 0x1eb   : > { %3835 = vmatpush3.bf16.msra.mxu1 %v4319_v50  ;;  %3790 = vmatprep.mubr.bf16.mxu1 %v5369_v13  ;;  %v4331_v50 = vld [vmem:[#allocation10 + $0xc8] sm:$0xff]   ;;  %v5430_v60 = vsel %vm5307_vm9, 0, %v1073_v34 }
 0x1ec   : > { %v5374_v15 = vor.u32 %v1085_v1, %v1084_v10  ;;  %v5376_v16 = vor.u32 %v1129_v7, %v1082_v55  ;;  %3879 = vmatpush3.bf16.msra.mxu0 %v4320_v57  ;;  %3882 = vmatprep.mubr.bf16.mxu0 %v5183_v51  ;;  %v5391_v51 = vsel %vm5307_vm9, 0, %v1045_v17  ;;  %v5419_v32 = vsel %vm5307_vm9, 0, %v1066_v45  ;;  %v4334_v55 = vld [vmem:[#allocation10 + $0x190] sm:$0xff]   ;;  %v4340_v10 = vld [vmem:[#allocation10 + $0x238] sm:$0xff]   ;;  %v4341_v7 = vld [vmem:[#allocation10 + $0x160] sm:$0xff]  }
 0x1ed   : > { %3836 = vmatprep.subr.bf16.mxu1 %v4321_v5  ;;  %3880 = vmatprep.subr.bf16.mxu0 %v4322_v8  ;;  %v828_v57 = vadd.f32 %v5171_v37, %v827_v53  ;;  %v4335_v37 = vld [vmem:[#allocation10 + $0x178] sm:$0xff]   ;;  %v4344_v17 = vld [vmem:[#allocation10 + $0x228] sm:$0xff]  }
 0x1ee   : > { %v1110_v0 = vsel %vm5307_vm9, 0, %v5374_v15  ;;  %v1153_v4 = vsel %vm5214_vm5, %v5376_v16, 0  ;;  %v4352_v45 = vld [vmem:[#allocation10 + $0x208] sm:$0xff]   ;;  %v4358_v15 = vld [vmem:[#allocation10 + $0x1d0] sm:$0xff]  }
 0x1ef   : > { %3837 = vmatpush3.bf16.msra.mxu1 %v4321_v5  ;;  %v985_v1 = vmax.f32 %v828_v57, 0.0 }
 0x1f0   : > { %3881 = vmatpush3.bf16.msra.mxu0 %v4322_v8  ;;  %3838 = vmatprep.subr.bf16.mxu1 %v4323_v39  ;;  %v4337_v8 = vld [vmem:[#allocation10 + $0x170] sm:$0xff]  }
 0x1f1   : > { %3930 = vmatprep.subr.bf16.mxu0 %v4324_v20  ;;  %v5436_v5 = vpack.c.bf16 %v985_v1, %v984_v26 }
 0x1f2   : > { %3791 = vmatmul.mubr.bf16.gmra.mxu1 %v5391_v51 }
 0x1f3   : > { %3839 = vmatpush3.bf16.msra.mxu1 %v4323_v39  ;;  %3883 = vmatmul.mubr.bf16.vlgmr.msra.gmra.mxu0 %v5211_v18  ;;  %v1075_v39 = vshrl.u32 %v5436_v5, 16 }
 0x1f4   : > { %3794 = vmatprep.mubr.bf16.mxu1 %v5399_v59  ;;  %3886 = vmatprep.mubr.bf16.mxu0 %v5204_v11 }
 0x1f5   : > { %3931 = vmatpush3.bf16.msra.mxu0 %v4324_v20  ;;  %3840 = vmatprep.subr.bf16.mxu1 %v4325_v22  ;;  %v4345_v20 = vld [vmem:[#allocation10 + $0x150] sm:$0xff]   ;;  %v1077_v31 = vrot.slane %v1075_v39, 7 }
 0x1f6   : > { %3932 = vmatprep.subr.bf16.mxu0 %v4326_v40 }
 0x1f7   : > { %3841 = vmatpush3.bf16.msra.mxu1 %v4325_v22  ;;  %v1078_v22 = vshll.u32 %v5436_v5, 16 }
 0x1f8   : > { %3842 = vmatprep.subr.bf16.mxu1 %v4327_v43 }
 0x1f9   : > { %3933 = vmatpush3.bf16.msra.mxu0 %v4326_v40  ;;  %v1080_v40 = vor.u32 %v1078_v22, %v1077_v31 }
 0x1fa   : > { %3795 = vmatmul.mubr.bf16.gmra.mxu1 %v5411_v9  ;;  %3934 = vmatprep.subr.bf16.mxu0 %v4328_v44 }
 0x1fb   : > { %3843 = vmatpush3.bf16.msra.mxu1 %v4327_v43  ;;  %3887 = vmatmul.mubr.bf16.gmra.mxu0 %v5247_v48  ;;  %v1109_v43 = vsel %vm5307_vm9, 0, %v1080_v40 }
 0x1fc   : > { %3798 = vmatprep.mubr.bf16.mxu1 %v5419_v32  ;;  %3890 = vmatprep.mubr.bf16.mxu0 %v5240_v41 }
 0x1fd   : > { %3935 = vmatpush3.bf16.msra.mxu0 %v4328_v44  ;;  %3844 = vmatprep.subr.bf16.mxu1 %v4329_v46  ;;  %v4351_v44 = vld [vmem:[#allocation10 + $0x1f8] sm:$0xff]  }
 0x1fe   : > { %3936 = vmatprep.subr.bf16.mxu0 %v4330_v52 }
 0x1ff   : > { %3845 = vmatpush3.bf16.msra.mxu1 %v4329_v46  ;;  %v4354_v46 = vld [vmem:[#allocation10 + $0x200] sm:$0xff]  }
 0x200   : > { %3846 = vmatprep.subr.bf16.mxu1 %v4331_v50 }
 0x201   : > { %3937 = vmatpush3.bf16.msra.mxu0 %v4330_v52 }
 0x202   : > { %3799 = vmatmul.mubr.bf16.gmra.mxu1 %v5430_v60  ;;  %3938 = vmatprep.subr.bf16.mxu0 %v4332_v54 }
 0x203   : > { %3847 = vmatpush3.bf16.msra.mxu1 %v4331_v50  ;;  %3891 = vmatmul.mubr.bf16.gmra.mxu0 %v5292_v24  ;;  %v4373_v50 = vld [vmem:[#allocation11 + $0x10] sm:$0xff]  }
 0x204   : > { %3850 = vmatprep.mubr.bf16.mxu1 %v5357_v2  ;;  %3894 = vmatprep.mubr.bf16.mxu0 %v5279_v12  ;;  %v4339_v2 = vld [vmem:[#allocation10 + $0x168] sm:$0xff]  }
 0x205   : > { %3939 = vmatpush3.bf16.msra.mxu0 %v4332_v54  ;;  %3848 = vmatprep.subr.bf16.mxu1 %v4333_v63  ;;  %v4374_v54 = vld [vmem:[#allocation13] sm:$0xff]  }
 0x206   : > { %3940 = vmatprep.subr.bf16.mxu0 %v4334_v55 }
 0x207   : > { %3849 = vmatpush3.bf16.msra.mxu1 %v4333_v63 }
 0x208   : > { %3898 = vmatprep.subr.bf16.mxu1 %v4335_v37 }
 0x209   : > { %3941 = vmatpush3.bf16.msra.mxu0 %v4334_v55 }
 0x20a   : > { %3851 = vmatmul.mubr.bf16.vlgmr.msra.gmra.mxu1 %v5369_v13  ;;  %3942 = vmatprep.subr.bf16.mxu0 %v4336_v23 }
 0x20b   : > { %3895 = vmatmul.mubr.bf16.gmra.mxu0 %v5436_v5  ;;  %3899 = vmatpush3.bf16.msra.mxu1 %v4335_v37  ;;  %v4378_v37 = vld [vmem:[%s5126_s23 + $0x8] sm:$0xff]  }
 0x20c   : > { %3854 = vmatprep.mubr.bf16.mxu1 %v5391_v51  ;;  %3946 = vmatprep.mubr.bf16.mxu0 %v5369_v13  ;;  %v4343_v13 = vld [vmem:[#allocation10 + $0x158] sm:$0xff]  }
 0x20d   : > { %3943 = vmatpush3.bf16.msra.mxu0 %v4336_v23  ;;  %3900 = vmatprep.subr.bf16.mxu1 %v4337_v8  ;;  %v4376_v23 = vld [vmem:[#allocation11] sm:$0xff]  }
 0x20e   : > { %3944 = vmatprep.subr.bf16.mxu0 %v4338_v27 }
 0x20f   : > { %3901 = vmatpush3.bf16.msra.mxu1 %v4337_v8 }
 0x210   : > { %3902 = vmatprep.subr.bf16.mxu1 %v4339_v2 }
 0x211   : > { %3945 = vmatpush3.bf16.msra.mxu0 %v4338_v27 }
 0x212   : > { %3855 = vmatmul.mubr.bf16.gmra.mxu1 %v5399_v59  ;;  %3994 = vmatprep.subr.bf16.mxu0 %v4340_v10 }
 0x213   : > { %3903 = vmatpush3.bf16.msra.mxu1 %v4339_v2  ;;  %3858 = vmatprep.mubr.bf16.mxu1 %v5411_v9 }
 0x214   : > { %3947 = vmatmul.mubr.bf16.vlgmr.msra.gmra.mxu0 %v5391_v51  ;;  %3904 = vmatprep.subr.bf16.mxu1 %v4341_v7  ;;  %v4346_v51 = vld [vmem:[#allocation10 + $0x220] sm:$0xff]  }
 0x215   : > { %3950 = vmatprep.mubr.bf16.mxu0 %v5399_v59  ;;  %3995 = vmatpush3.bf16.msra.mxu0 %v4340_v10  ;;  %v4348_v59 = vld [vmem:[#allocation10 + $0x218] sm:$0xff]  }
 0x216   : > { %3996 = vmatprep.subr.bf16.mxu0 %v4342_v14 }
 0x217   : > { %3905 = vmatpush3.bf16.msra.mxu1 %v4341_v7 }
 0x218   : > { %3906 = vmatprep.subr.bf16.mxu1 %v4343_v13 }
 0x219   : > { %3997 = vmatpush3.bf16.msra.mxu0 %v4342_v14 }
 0x21a   : > { %3859 = vmatmul.mubr.bf16.gmra.mxu1 %v5419_v32  ;;  %3998 = vmatprep.subr.bf16.mxu0 %v4344_v17 }
 0x21b   : > { %3907 = vmatpush3.bf16.msra.mxu1 %v4343_v13  ;;  %3862 = vmatprep.mubr.bf16.mxu1 %v5430_v60 }
 0x21c   : > { %3951 = vmatmul.mubr.bf16.gmra.mxu0 %v5411_v9  ;;  %3908 = vmatprep.subr.bf16.mxu1 %v4345_v20  ;;  %v4353_v9 = vld [vmem:[#allocation10 + $0x1f0] sm:$0xff]  }
 0x21d   : > { %3954 = vmatprep.mubr.bf16.mxu0 %v5419_v32  ;;  %3999 = vmatpush3.bf16.msra.mxu0 %v4344_v17  ;;  %v4380_v17 = vld [vmem:[%s5126_s23 + $0x18] sm:$0xff]  }
 0x21e   : > { %4000 = vmatprep.subr.bf16.mxu0 %v4346_v51 }
 0x21f   : > { %3909 = vmatpush3.bf16.msra.mxu1 %v4345_v20  ;;  %v4381_v20 = vld [vmem:[%s5126_s23 + $0x20] sm:$0xff]  }
 0x220   : > { %3910 = vmatprep.subr.bf16.mxu1 %v4347_v33 }
 0x221   : > { %4001 = vmatpush3.bf16.msra.mxu0 %v4346_v51 }
 0x222   : > { %3863 = vmatmul.mubr.bf16.gmra.mxu1 %v1109_v43  ;;  %4002 = vmatprep.subr.bf16.mxu0 %v4348_v59 }
 0x223   : > { %3911 = vmatpush3.bf16.msra.mxu1 %v4347_v33  ;;  %3914 = vmatprep.mubr.bf16.mxu1 %v5227_v30  ;;  %v4355_v30 = vld [vmem:[#allocation10 + $0x1e8] sm:$0xff]  }
 0x224   : > { %3955 = vmatmul.mubr.bf16.gmra.mxu0 %v5430_v60  ;;  %3912 = vmatprep.subr.bf16.mxu1 %v4349_v42  ;;  %v4375_v60 = vld [vmem:[#allocation11 + $0x8] sm:$0xff]  }
 0x225   : > { %3958 = vmatprep.mubr.bf16.mxu0 %v1109_v43  ;;  %4003 = vmatpush3.bf16.msra.mxu0 %v4348_v59 }
 0x226   : > { %4004 = vmatprep.subr.bf16.mxu0 %v4350_v6 }
 0x227   : > { %3913 = vmatpush3.bf16.msra.mxu1 %v4349_v42 }
 0x228   : > { %3962 = vmatprep.subr.bf16.mxu1 %v4351_v44 }
 0x229   : > { %4005 = vmatpush3.bf16.msra.mxu0 %v4350_v6  ;;  %v4382_v6 = vld [vmem:[%s5126_s23 + $0x28] sm:$0xff]  }
 0x22a   : > { %3915 = vmatmul.mubr.bf16.vlgmr.msra.gmra.mxu1 %v5251_v49  ;;  %4006 = vmatprep.subr.bf16.mxu0 %v4352_v45 }
 0x22b   : > { %3963 = vmatpush3.bf16.msra.mxu1 %v4351_v44  ;;  %3918 = vmatprep.mubr.bf16.mxu1 %v5265_v62  ;;  %v4383_v44 = vld [vmem:[%s5126_s23 + $0x30] sm:$0xff]  }
 0x22c   : > { %3959 = vmatmul.mubr.bf16.gmra.mxu0 %v1110_v0  ;;  %3964 = vmatprep.subr.bf16.mxu1 %v4353_v9  ;;  %v4359_v0 = vld [vmem:[#allocation10 + $0x1c8] sm:$0xff]  }
 0x22d   : > { %4007 = vmatpush3.bf16.msra.mxu0 %v4352_v45  ;;  %4010 = vmatprep.mubr.bf16.mxu0 %v5251_v49  ;;  %v1127_v49 = vrot.slane %v1078_v22, 1 }
 0x22e   : > { %4008 = vmatprep.subr.bf16.mxu0 %v4354_v46 }
 0x22f   : > { %3965 = vmatpush3.bf16.msra.mxu1 %v4353_v9 }
 0x230   : > { %3966 = vmatprep.subr.bf16.mxu1 %v4355_v30 }
 0x231   : > { %4009 = vmatpush3.bf16.msra.mxu0 %v4354_v46 }
 0x232   : > { %3919 = vmatmul.mubr.bf16.gmra.mxu1 %v5296_v25 }
 0x233   : > { %3967 = vmatpush3.bf16.msra.mxu1 %v4355_v30  ;;  %3922 = vmatprep.mubr.bf16.mxu1 %v5319_v38 }
 0x234   : > { %4011 = vmatmul.mubr.bf16.vlgmr.msra.gmra.mxu0 %v5265_v62  ;;  %3968 = vmatprep.subr.bf16.mxu1 %v4356_v47  ;;  %v1128_v62 = vor.u32 %v1127_v49, %v1075_v39 }
 0x235   : > { %4014 = vmatprep.mubr.bf16.mxu0 %v5296_v25  ;;  %v4360_v25 = vld [vmem:[#allocation10 + $0x1c0] sm:$0xff]  }
 0x236   : > { %v1152_v52 = vsel %vm5214_vm5, %v1128_v62, 0 }
 0x237   : > { %3969 = vmatpush3.bf16.msra.mxu1 %v4356_v47 }
 0x238   : > { %3970 = vmatprep.subr.bf16.mxu1 %v4357_v29 }
 0x23a   : > { %3923 = vmatmul.mubr.bf16.gmra.mxu1 %v5350_v61 }
 0x23b   : > { %3971 = vmatpush3.bf16.msra.mxu1 %v4357_v29  ;;  %3926 = vmatprep.mubr.bf16.mxu1 %v5361_v3 }
 0x23c   : > { %4015 = vmatmul.mubr.bf16.gmra.mxu0 %v5319_v38  ;;  %3972 = vmatprep.subr.bf16.mxu1 %v4358_v15 }
 0x23d   : > { %4018 = vmatprep.mubr.bf16.mxu0 %v5350_v61 }
 0x23f   : > { %3973 = vmatpush3.bf16.msra.mxu1 %v4358_v15 }
 0x240   : > { %3974 = vmatprep.subr.bf16.mxu1 %v4359_v0 }
 0x242   : > { %3927 = vmatmul.mubr.bf16.gmra.mxu1 %v1152_v52 }
 0x243   : > { %3975 = vmatpush3.bf16.msra.mxu1 %v4359_v0  ;;  %3978 = vmatprep.mubr.bf16.mxu1 %v5211_v18  ;;  %v4377_v18 = vld [vmem:[%s5126_s23] sm:$0xff]  }
 0x244   : > { %4019 = vmatmul.mubr.bf16.gmra.mxu0 %v5361_v3  ;;  %3976 = vmatprep.subr.bf16.mxu1 %v4360_v25  ;;  %v4371_v3 = vld [vmem:[#allocation11 + $0x18] sm:$0xff]  }
 0x245   : > { %4022 = vmatprep.mubr.bf16.mxu0 %v1152_v52 }
 0x247   : > { %3977 = vmatpush3.bf16.msra.mxu1 %v4360_v25 }
 0x248   : > { %4026 = vmatprep.subr.bf16.mxu1 %v4361_v19 }
 0x24a   : > { %3979 = vmatmul.mubr.bf16.vlgmr.msra.gmra.mxu1 %v5204_v11  ;;  %v3471_v11 = vpack.c.bf16 %v987_v35, %v986_v58  ;;  %v4368_v58 = vld [vmem:[#allocation13 + $0x18] sm:$0xff]   ;;  %v4370_v35 = vld [vmem:[#allocation13 + $0x10] sm:$0xff]  }
 0x24b   : > { %3982 = vmatprep.mubr.bf16.mxu1 %v5247_v48  ;;  %4027 = vmatpush3.bf16.msra.mxu1 %v4361_v19  ;;  %v4363_v48 = vld [vmem:[#allocation11 + $0x38] sm:$0xff]  }
 0x24c   : > { %4023 = vmatmul.mubr.bf16.gmra.mxu0 %v1153_v4  ;;  %4058 = vmatprep.subr.bf16.mxu0 %v4363_v48  ;;  %v4372_v4 = vld [vmem:[#allocation13 + $0x8] sm:$0xff]  }
 0x24d   : > { %4059 = vmatpush3.bf16.msra.mxu0 %v4363_v48 }
 0x252   : > { %3983 = vmatmul.mubr.bf16.gmra.mxu1 %v5240_v41  ;;  %v4362_v41 = vld [vmem:[#allocation13 + $0x30] sm:$0xff]  }
 0x253   : > { %3986 = vmatprep.mubr.bf16.mxu1 %v5292_v24  ;;  %4028 = vmatprep.subr.bf16.mxu1 %v4362_v41  ;;  %v4365_v24 = vld [vmem:[#allocation11 + $0x30] sm:$0xff]  }
 0x254   : > { %4029 = vmatpush3.bf16.msra.mxu1 %v4362_v41  ;;  %4060 = vmatprep.subr.bf16.mxu0 %v4365_v24 }
 0x255   : > { %4061 = vmatpush3.bf16.msra.mxu0 %v4365_v24 }
 0x256   : > { %4062 = vmatprep.subr.bf16.mxu0 %v4367_v28 }
 0x259   : > { %4063 = vmatpush3.bf16.msra.mxu0 %v4367_v28 }
 0x25a   : > { %3987 = vmatmul.mubr.bf16.gmra.mxu1 %v5279_v12  ;;  %v4364_v12 = vld [vmem:[#allocation13 + $0x28] sm:$0xff]   ;;  %4064 = vmatprep.subr.bf16.mxu0 %v4369_v36 }
 0x25b   : > { %3990 = vmatprep.mubr.bf16.mxu1 %v5436_v5  ;;  %4030 = vmatprep.subr.bf16.mxu1 %v4364_v12  ;;  %v4379_v5 = vld [vmem:[%s5126_s23 + $0x10] sm:$0xff]  }
 0x25c   : > { %4031 = vmatpush3.bf16.msra.mxu1 %v4364_v12 }
 0x25d   : > { %4032 = vmatprep.subr.bf16.mxu1 %v4366_v21  ;;  %4065 = vmatpush3.bf16.msra.mxu0 %v4369_v36 }
 0x25e   : > { %4066 = vmatprep.subr.bf16.mxu0 %v4371_v3 }
 0x260   : > { %4033 = vmatpush3.bf16.msra.mxu1 %v4366_v21 }
 0x261   : > { %4034 = vmatprep.subr.bf16.mxu1 %v4368_v58  ;;  %4067 = vmatpush3.bf16.msra.mxu0 %v4371_v3 }
 0x262   : > { %3991 = vmatmul.mubr.msk.bf16.gmra.mxu1 %vm3470_vm11, %v3471_v11  ;;  %4068 = vmatprep.subr.bf16.mxu0 %v4373_v50 }
 0x263   : > { %4042 = vmatprep.mubr.bf16.mxu1 %v4377_v18  ;;  %v4384_v18 = vld [vmem:[%s5126_s23 + $0x38] sm:$0xff]  }
 0x264   : > { %4035 = vmatpush3.bf16.msra.mxu1 %v4368_v58 }
 0x265   : > { %4036 = vmatprep.subr.bf16.mxu1 %v4370_v35  ;;  %4069 = vmatpush3.bf16.msra.mxu0 %v4373_v50 }
 0x266   : > { %4070 = vmatprep.subr.bf16.mxu0 %v4375_v60 }
 0x268   : > { %4037 = vmatpush3.bf16.msra.mxu1 %v4370_v35 }
 0x269   : > { %4038 = vmatprep.subr.bf16.mxu1 %v4372_v4  ;;  %4071 = vmatpush3.bf16.msra.mxu0 %v4375_v60 }
 0x26a   : > { %4072 = vmatprep.subr.bf16.mxu0 %v4376_v23 }
 0x26c   : > { %4039 = vmatpush3.bf16.msra.mxu1 %v4372_v4 }
 0x26d   : > { %4040 = vmatprep.subr.bf16.mxu1 %v4374_v54  ;;  %4073 = vmatpush3.bf16.msra.mxu0 %v4376_v23 }
 0x270   : > { %4041 = vmatpush3.bf16.msra.mxu1 %v4374_v54 }
 0x273   : > { %4043 = vmatmul.mubr.bf16.vlgmr.msra.gmra.mxu1 %v4378_v37 }
 0x274   : > { %4046 = vmatprep.mubr.bf16.mxu1 %v4379_v5 }
 0x27b   : > { %4047 = vmatmul.mubr.bf16.gmra.mxu1 %v4380_v17 }
 0x27c   : > { %4050 = vmatprep.mubr.bf16.mxu1 %v4381_v20 }
 0x283   : > { %4051 = vmatmul.mubr.bf16.gmra.mxu1 %v4382_v6 }
 0x284   : > { %4054 = vmatprep.mubr.bf16.mxu1 %v4383_v44 }
 0x28a   : > { %v5496_v38 = vpop.f32.mrf.mxu1 }
 0x28b   : > { %4055 = vmatmul.mubr.bf16.gmra.mxu1 %v4384_v18 }
 0x28c   : > { %v5498_v61 = vpop.f32.mrf.mxu1 }
 0x28e   : > { %v5500_v16 = vpop.f32.mrf.mxu1 }
 0x290   : > { %v5502_v32 = vpop.f32.mrf.mxu1 }
 0x292   : > { %v5504_v53 = vpop.f32.mrf.mxu1  ;;  %v3820_v34 = vpop.f32.mrf.mxu0 }
 0x294   : > { %v5506_v56 = vpop.f32.mrf.mxu1  ;;  %v1576_v57 = vpop.f32.mrf.mxu0 }
 0x296   : > { %v5508_v63 = vpop.f32.mrf.mxu1  ;;  %v3821_v55 = vpop.f32.mrf.mxu0 }
 0x298   : > { %v5510_v26 = vpop.f32.mrf.mxu1  ;;  %v1579_v1 = vpop.f32.mrf.mxu0 }
 0x29a   : > { %v3764_v8 = vpop.f32.mrf.mxu1  ;;  %v3824_v27 = vpop.f32.mrf.mxu0 }
 0x29c   : > { %v1301_v2 = vpop.f32.mrf.mxu1  ;;  %v1592_v10 = vpop.f32.mrf.mxu0 }
 0x29e   : > { %v3765_v7 = vpop.f32.mrf.mxu1  ;;  %v3825_v14 = vpop.f32.mrf.mxu0 }
 0x2a0   : > { %v5514_v13 = vpop.f32.mrf.mxu1  ;;  %v1595_v39 = vpop.f32.mrf.mxu0 }
 0x2a2   : > { %v3768_v31 = vpop.f32.mrf.mxu1  ;;  %v3828_v51 = vpop.f32.mrf.mxu0 }
 0x2a4   : > { %v5518_v22 = vpop.f32.mrf.mxu1  ;;  %v1608_v33 = vpop.f32.mrf.mxu0 }
 0x2a6   : > { %v5520_v40 = vpop.f32.mrf.mxu1  ;;  %v3829_v59 = vpop.f32.mrf.mxu0 }
 0x2a8   : > { %v5522_v42 = vpop.f32.mrf.mxu1  ;;  %v1611_v43 = vpop.f32.mrf.mxu0 }
 0x2aa   : > { %v3788_v45 = vpop.f32.mrf.mxu1  ;;  %v3832_v9 = vpop.f32.mrf.mxu0 }
 0x2ab   : > { %v1423_v46 = vadd.f32 %v3788_v45, %v5496_v38 }
 0x2ac   : > { %v1414_v30 = vpop.f32.mrf.mxu1  ;;  %v1624_v47 = vpop.f32.mrf.mxu0 }
 0x2ad   : > { %v1415_v29 = vadd.f32 %v1414_v30, %v5498_v61  ;;  %v5528_v15 = vadd.f32 %v3820_v34, %v1423_v46 }
 0x2ae   : > { %v3789_v49 = vpop.f32.mrf.mxu1  ;;  %v3833_v0 = vpop.f32.mrf.mxu0 }
 0x2af   : > { %v1426_v62 = vadd.f32 %v3789_v49, %v5500_v16  ;;  %v5531_v25 = vadd.f32 %v1576_v57, %v1415_v29 }
 0x2b0   : > { %v1417_v52 = vpop.f32.mrf.mxu1  ;;  %v1627_v11 = vpop.f32.mrf.mxu0 }
 0x2b1   : > { %v1418_v19 = vadd.f32 %v1417_v52, %v5502_v32  ;;  %v5535_v41 = vadd.f32 %v3821_v55, %v1426_v62 }
 0x2b2   : > { %v3792_v48 = vpop.f32.mrf.mxu1 }
 0x2b3   : > { %v1439_v12 = vadd.f32 %v3792_v48, %v5504_v53  ;;  %v5538_v24 = vpop.f32.mrf.mxu0  ;;  %v5540_v21 = vadd.f32 %v1579_v1, %v1418_v19 }
 0x2b4   : > { %v1430_v28 = vpop.f32.mrf.mxu1 }
 0x2b5   : > { %v1431_v58 = vadd.f32 %v1430_v28, %v5506_v56  ;;  %v5543_v36 = vpop.f32.mrf.mxu0  ;;  %v1645_v38 = vadd.f32 %v3824_v27, %v1439_v12 }
 0x2b6   : > { %v3793_v35 = vpop.f32.mrf.mxu1 }
 0x2b7   : > { %v1442_v61 = vadd.f32 %v3793_v35, %v5508_v63  ;;  %v5546_v3 = vpop.f32.mrf.mxu0  ;;  %v5548_v16 = vadd.f32 %v1592_v10, %v1431_v58 }
 0x2b8   : > { %v1433_v4 = vpop.f32.mrf.mxu1 }
 0x2b9   : > { %v1434_v32 = vadd.f32 %v1433_v4, %v5510_v26  ;;  %v5551_v50 = vpop.f32.mrf.mxu0  ;;  %v5553_v53 = vadd.f32 %v3825_v14, %v1442_v61 }
 0x2ba   : > { %v3796_v34 = vpop.f32.mrf.mxu1 }
 0x2bb   : > { %v1455_v54 = vadd.f32 %v3796_v34, %v3764_v8  ;;  %v3888_v56 = vpop.f32.mrf.mxu0  ;;  %v5555_v57 = vadd.f32 %v1595_v39, %v1434_v32 }
 0x2bc   : > { %v1446_v60 = vpop.f32.mrf.mxu1 }
 0x2bd   : > { %v1447_v55 = vadd.f32 %v1446_v60, %v1301_v2  ;;  %v5557_v1 = vpop.f32.mrf.mxu0  ;;  %v1649_v63 = vadd.f32 %v3828_v51, %v1455_v54 }
 0x2be   : > { %v3797_v37 = vpop.f32.mrf.mxu1 }
 0x2bf   : > { %v1458_v23 = vadd.f32 %v3797_v37, %v3765_v7  ;;  %v5559_v5 = vpop.f32.mrf.mxu0  ;;  %v5561_v27 = vadd.f32 %v1608_v33, %v1447_v55 }
 0x2c0   : > { %v1449_v26 = vpop.f32.mrf.mxu1 }
 0x2c1   : > { %v1450_v10 = vadd.f32 %v1449_v26, %v5514_v13  ;;  %v5564_v14 = vpop.f32.mrf.mxu0  ;;  %v5566_v8 = vadd.f32 %v3829_v59, %v1458_v23 }
 0x2c2   : > { %v3800_v39 = vpop.f32.mrf.mxu1 }
 0x2c3   : > { %v1471_v17 = vadd.f32 %v3800_v39, %v3768_v31  ;;  %v3892_v20 = vpop.f32.mrf.mxu0  ;;  %v5568_v2 = vadd.f32 %v1611_v43, %v1450_v10 }
 0x2c4   : > { %v1462_v6 = vpop.f32.mrf.mxu1 }
 0x2c5   : > { %v1463_v51 = vadd.f32 %v1462_v6, %v5518_v22  ;;  %v5571_v7 = vpop.f32.mrf.mxu0  ;;  %v1653_v44 = vadd.f32 %v3832_v9, %v1471_v17 }
 0x2c6   : > { %v3801_v33 = vpop.f32.mrf.mxu1 }
 0x2c7   : > { %v1474_v45 = vadd.f32 %v3801_v33, %v5520_v40  ;;  %v5574_v46 = vpop.f32.mrf.mxu0  ;;  %v5576_v13 = vadd.f32 %v1624_v47, %v1463_v51 }
 0x2c8   : > { %v1465_v59 = vpop.f32.mrf.mxu1 }
 0x2c9   : > { %v1466_v30 = vadd.f32 %v1465_v59, %v5522_v42  ;;  %v5579_v31 = vpop.f32.mrf.mxu0  ;;  %v5581_v43 = vadd.f32 %v3833_v0, %v1474_v45 }
 0x2ca   : > { %6001 = vst [vmem:[#allocation36_spill] sm:$0xff] %v5579_v31  ;;  %v3852_v29 = vpop.f32.mrf.mxu1 }
 0x2cb   : > { %6002 = vst [vmem:[#allocation37_spill] sm:$0xff] %v5581_v43  ;;  %v3896_v49 = vpop.f32.mrf.mxu0  ;;  %v5583_v22 = vadd.f32 %v1627_v11, %v1466_v30 }
 0x2cc   : > { %v1754_v62 = vpop.f32.mrf.mxu1 }
 0x2cd   : > { %6003 = vst [vmem:[#allocation38_spill] sm:$0xff] %v5583_v22  ;;  %v5585_v9 = vpop.f32.mrf.mxu0 }
 0x2ce   : > { %6004 = vst [vmem:[#allocation39_spill] sm:$0xff] %v5585_v9  ;;  %v3853_v52 = vpop.f32.mrf.mxu1 }
 0x2cf   : > { %v5587_v40 = vpop.f32.mrf.mxu0 }
 0x2d0   : > { %6005 = vst [vmem:[#allocation40_spill] sm:$0xff] %v5587_v40  ;;  %v1757_v18 = vpop.f32.mrf.mxu1 }
 0x2d1   : > { %v5589_v47 = vpop.f32.mrf.mxu0 }
 0x2d2   : > { %6006 = vst [vmem:[#allocation41_spill] sm:$0xff] %v5589_v47  ;;  %v3856_v19 = vpop.f32.mrf.mxu1 }
 0x2d3   : > { %v1823_v48 = vadd.f32 %v3856_v19, %v1645_v38 }
 0x2d4   : > { %v5591_v42 = vpop.f32.mrf.mxu0  ;;  %v1770_v12 = vpop.f32.mrf.mxu1 }
 0x2d5   : > { %v5593_v0 = vadd.f32 %v3888_v56, %v1823_v48 }
 0x2d6   : > { %v5595_v28 = vpop.f32.mrf.mxu0  ;;  %v5597_v11 = vpop.f32.mrf.mxu1 }
 0x2d8   : > { %v5599_v58 = vpop.f32.mrf.mxu0  ;;  %v5601_v35 = vpop.f32.mrf.mxu1 }
 0x2da   : > { %v5603_v61 = vpop.f32.mrf.mxu0  ;;  %v3860_v4 = vpop.f32.mrf.mxu1 }
 0x2db   : > { %v1827_v32 = vadd.f32 %v3860_v4, %v1649_v63 }
 0x2dc   : > { %v5605_v34 = vpop.f32.mrf.mxu0  ;;  %v5607_v38 = vpop.f32.mrf.mxu1 }
 0x2dd   : > { %v5609_v54 = vadd.f32 %v3892_v20, %v1827_v32 }
 0x2de   : > { %v5611_v56 = vpop.f32.mrf.mxu0  ;;  %v5613_v60 = vpop.f32.mrf.mxu1 }
 0x2e0   : > { %v5615_v55 = vpop.f32.mrf.mxu0  ;;  %v5617_v37 = vpop.f32.mrf.mxu1 }
 0x2e1   : > { %6007 = vst [vmem:[#allocation42_spill] sm:$0xff] %v5615_v55 }
 0x2e2   : > { %v5619_v23 = vpop.f32.mrf.mxu0  ;;  %v3864_v26 = vpop.f32.mrf.mxu1 }
 0x2e3   : > { %6008 = vst [vmem:[#allocation43_spill] sm:$0xff] %v5619_v23  ;;  %v1831_v10 = vadd.f32 %v3864_v26, %v1653_v44 }
 0x2e4   : > { %v5621_v39 = vpop.f32.mrf.mxu0  ;;  %v5623_v63 = vpop.f32.mrf.mxu1 }
 0x2e5   : > { %6009 = vst [vmem:[#allocation44_spill] sm:$0xff] %v5621_v39  ;;  %v5625_v17 = vadd.f32 %v3896_v49, %v1831_v10 }
 0x2e6   : > { %v5627_v20 = vpop.f32.mrf.mxu0  ;;  %v5629_v6 = vpop.f32.mrf.mxu1 }
 0x2e7   : > { %6010 = vst [vmem:[#allocation45_spill] sm:$0xff] %v5625_v17  ;;  %6011 = vst [vmem:[#allocation46_spill] sm:$0xff] %v5627_v20 }
 0x2e8   : > { %6012 = vst [vmem:[#allocation47_spill] sm:$0xff] %v5629_v6  ;;  %v5631_v51 = vpop.f32.mrf.mxu0  ;;  %v5633_v33 = vpop.f32.mrf.mxu1  ;;  %v1820_v6 = vadd.f32 %v3853_v52, %v5535_v41 }
 0x2e9   : > { %6013 = vst [vmem:[#allocation48_spill] sm:$0xff] %v5631_v51  ;;  %6014 = vst [vmem:[#allocation49_spill] sm:$0xff] %v5633_v33 }
 0x2ea   : > { %v5635_v45 = vpop.f32.mrf.mxu0  ;;  %v3916_v59 = vpop.f32.mrf.mxu1 }
 0x2eb   : > { %6015 = vst [vmem:[#allocation50_spill] sm:$0xff] %v5635_v45 }
 0x2ec   : > { %v5637_v30 = vpop.f32.mrf.mxu0  ;;  %v2110_v44 = vpop.f32.mrf.mxu1 }
 0x2ed   : > { %6016 = vst [vmem:[#allocation51_spill] sm:$0xff] %v5637_v30 }
 0x2ee   : > { %v5639_v19 = vpop.f32.mrf.mxu0  ;;  %v3917_v48 = vpop.f32.mrf.mxu1 }
 0x2ef   : > { %6017 = vst [vmem:[#allocation52_spill] sm:$0xff] %v5639_v19 }
 0x2f0   : > { %v5641_v4 = vpop.f32.mrf.mxu0  ;;  %v2113_v49 = vpop.f32.mrf.mxu1 }
 0x2f1   : > { %6018 = vst [vmem:[#allocation53_spill] sm:$0xff] %v5641_v4  ;;  %v1819_v4 = vadd.f32 %v3852_v29, %v5528_v15 }
 0x2f2   : > { %v5643_v32 = vpop.f32.mrf.mxu0  ;;  %v3920_v26 = vpop.f32.mrf.mxu1 }
 0x2f3   : > { %6019 = vst [vmem:[#allocation54_spill] sm:$0xff] %v5643_v32  ;;  %v1817_v32 = vadd.f32 %v1754_v62, %v5531_v25  ;;  %v1997_v43 = vadd.f32 %v5538_v24, %v1819_v4  ;;  %v1998_v62 = vadd.f32 %v5546_v3, %v1820_v6  ;;  %v1822_v3 = vadd.f32 %v5601_v35, %v5555_v57 }
 0x2f4   : > { %v4012_v10 = vpop.f32.mrf.mxu0  ;;  %v2126_v47 = vpop.f32.mrf.mxu1 }
 0x2f5   : > { %v2175_v55 = vadd.f32 %v3916_v59, %v1997_v43  ;;  %v2176_v41 = vadd.f32 %v3917_v48, %v1998_v62 }
 0x2f6   : > { %v2644_v51 = vpop.f32.mrf.mxu0  ;;  %v3921_v17 = vpop.f32.mrf.mxu1 }
 0x2f7   : > { %v2353_v52 = vadd.f32 %v5591_v42, %v2175_v55  ;;  %v2354_v55 = vadd.f32 %v5599_v58, %v2176_v41  ;;  %v2000_v58 = vadd.f32 %v5564_v14, %v1822_v3  ;;  %v6029_v3 = vld [vmem:[#allocation47_spill] sm:$0xff] }
 0x2f8   : > { %v4013_v40 = vpop.f32.mrf.mxu0  ;;  %v2129_v33 = vpop.f32.mrf.mxu1 }
 0x2fa   : > { %v2647_v45 = vpop.f32.mrf.mxu0  ;;  %v5645_v22 = vpop.f32.mrf.mxu1 }
 0x2fc   : > { %v5647_v30 = vpop.f32.mrf.mxu1  ;;  %v5649_v20 = vpop.f32.mrf.mxu0 }
 0x2fd   : > { %6020 = vst [vmem:[#allocation55_spill] sm:$0xff] %v5647_v30  ;;  %v1818_v30 = vadd.f32 %v1757_v18, %v5540_v21 }
 0x2fe   : > { %v5651_v19 = vpop.f32.mrf.mxu1  ;;  %v5657_v39 = vpop.f32.mrf.mxu0 }
 0x2ff   : > { %6021 = vst [vmem:[#allocation56_spill] sm:$0xff] %v5651_v19  ;;  %v1995_v19 = vadd.f32 %v5543_v36, %v1817_v32  ;;  %v1996_v24 = vadd.f32 %v5551_v50, %v1818_v30  ;;  %v2179_v50 = vadd.f32 %v3920_v26, %v5593_v0  ;;  %v1828_v0 = vadd.f32 %v5613_v60, %v5566_v8 }
 0x300   : > { %v5654_v9 = vpop.f32.mrf.mxu1  ;;  %v5667_v15 = vpop.f32.mrf.mxu0  ;;  %v2178_v26 = vadd.f32 %v2129_v33, %v2000_v58  ;;  %v1826_v60 = vadd.f32 %v5617_v37, %v5568_v2  ;;  %v6025_v2 = vld [vmem:[#allocation42_spill] sm:$0xff] }
 0x301   : > { %6022 = vst [vmem:[#allocation57_spill] sm:$0xff] %v5654_v9  ;;  %v2173_v25 = vadd.f32 %v2110_v44, %v1995_v19  ;;  %v2174_v36 = vadd.f32 %v2113_v49, %v1996_v24  ;;  %v1824_v44 = vadd.f32 %v5597_v11, %v5553_v53 }
 0x302   : > { %v5659_v31 = vpop.f32.mrf.mxu1  ;;  %v5677_v21 = vpop.f32.mrf.mxu0 }
 0x303   : > { %6023 = vst [vmem:[#allocation58_spill] sm:$0xff] %v5659_v31  ;;  %v1821_v31 = vadd.f32 %v1770_v12, %v5548_v16  ;;  %v2351_v59 = vadd.f32 %v5595_v28, %v2173_v25  ;;  %v5692_v28 = vld [vmem:[%s6024_s2] ss:$0 sm:$0xff] }
 0x304   : > { %v5663_v23 = vpop.f32.mrf.mxu1  ;;  %v5687_v19 = vpop.f32.mrf.mxu0 }
 0x305   : > { %v1999_v16 = vadd.f32 %v5557_v1, %v1821_v31  ;;  %v2352_v1 = vadd.f32 %v5603_v61, %v2174_v36  ;;  %v1825_v31 = vadd.f32 %v5607_v38, %v5561_v27 }
 0x306   : > { %v5669_v29 = vpop.f32.mrf.mxu1  ;;  %v5703_v61 = vpop.f32.mrf.mxu0 }
 0x307   : > { %v2177_v30 = vadd.f32 %v2126_v47, %v1999_v16  ;;  %v2002_v47 = vadd.f32 %v5559_v5, %v1824_v44  ;;  %v6028_v44 = vld [vmem:[#allocation37_spill] sm:$0xff] }
 0x308   : > { %v5673_v9 = vpop.f32.mrf.mxu1  ;;  %v4021_v24 = vpop.f32.mrf.mxu0  ;;  %v1832_v16 = vadd.f32 %v6029_v3, %v6028_v44 }
 0x309   : > { %v2180_v32 = vadd.f32 %v3921_v17, %v2002_v47  ;;  %v2355_v27 = vadd.f32 %v5611_v56, %v2177_v30  ;;  %v2006_v17 = vadd.f32 %v5574_v46, %v1828_v0  ;;  %v6032_v30 = vld [vmem:[#allocation44_spill] sm:$0xff] }
 0x30a   : > { %v3980_v43 = vpop.f32.mrf.mxu1 }
 0x30b   : > { %v2531_v18 = vadd.f32 %v3980_v43, %v2353_v52  ;;  %v2358_v37 = vadd.f32 %v6025_v2, %v2180_v32  ;;  %v6036_v32 = vld [vmem:[#allocation38_spill] sm:$0xff] }
 0x30c   : > { %v2466_v12 = vpop.f32.mrf.mxu1 }
 0x30d   : > { %v2709_v6 = vadd.f32 %v4012_v10, %v2531_v18  ;;  %v2529_v42 = vadd.f32 %v2466_v12, %v2351_v59  ;;  %v6030_v12 = vld [vmem:[#allocation36_spill] sm:$0xff] }
 0x30e   : > { %v3981_v53 = vpop.f32.mrf.mxu1 }
 0x30f   : > { %v2707_v11 = vadd.f32 %v2644_v51, %v2529_v42  ;;  %v2532_v57 = vadd.f32 %v3981_v53, %v2354_v55  ;;  %v2732_v48 = vadd.f32 %v5692_v28, %v2709_v6  ;;  %v2357_v51 = vadd.f32 %v5605_v34, %v2179_v50 }
 0x310   : > { %v2469_v35 = vpop.f32.mrf.mxu1  ;;  %v2003_v34 = vadd.f32 %v5571_v7, %v1825_v31  ;;  %v6027_v7 = vld [vmem:[#allocation55_spill] sm:$0xff]  ;;  %v2004_v50 = vadd.f32 %v6030_v12, %v1826_v60  ;;  %v2679_v31 = vpop.f32.mrf.mxu0  ;;  %v6040_v60 = vld [vmem:[#allocation58_spill] sm:$0xff] }
 0x311   : > { %v2710_v4 = vadd.f32 %v4013_v40, %v2532_v57  ;;  %v2530_v49 = vadd.f32 %v2469_v35, %v2352_v1  ;;  %v2730_v8 = vadd.f32 %v5692_v28, %v2707_v11  ;;  %v2183_v40 = vadd.f32 %v5645_v22, %v5609_v54  ;;  %v6026_v22 = vld [vmem:[#allocation43_spill] sm:$0xff]  ;;  %v6034_v35 = vld [vmem:[#allocation57_spill] sm:$0xff] }
 0x312   : > { %v3984_v10 = vpop.f32.mrf.mxu1  ;;  %v2748_v25 = vmax.f32 %v2732_v48, 0.0  ;;  %v2356_v54 = vadd.f32 %v6026_v22, %v2178_v26  ;;  %v2181_v36 = vadd.f32 %v6027_v7, %v2003_v34  ;;  %v6033_v57 = vld [vmem:[#allocation39_spill] sm:$0xff]  ;;  %v2182_v48 = vadd.f32 %v6034_v35, %v2004_v50  ;;  %v6037_v26 = vld [vmem:[#allocation49_spill] sm:$0xff] }
 0x313   : > { %v2733_v5 = vadd.f32 %v5692_v28, %v2710_v4  ;;  %v2708_v38 = vadd.f32 %v2647_v45, %v2530_v49  ;;  %v2535_v14 = vadd.f32 %v3984_v10, %v2357_v51  ;;  %v1829_v45 = vadd.f32 %v5623_v63, %v5576_v13  ;;  %v6035_v49 = vld [vmem:[#allocation46_spill] sm:$0xff] }
 0x314   : > { %v2482_v33 = vpop.f32.mrf.mxu1  ;;  %v2746_v46 = vmax.f32 %v2730_v8, 0.0  ;;  %v2361_v53 = vadd.f32 %v6032_v30, %v2183_v40  ;;  %v2359_v51 = vadd.f32 %v6035_v49, %v2181_v36  ;;  %v1830_v10 = vadd.f32 %v6037_v26, %v6036_v32 }
 0x315   : > { %v2749_v62 = vmax.f32 %v2733_v5, 0.0  ;;  %v2731_v56 = vadd.f32 %v5692_v28, %v2708_v38  ;;  %v2533_v41 = vadd.f32 %v2482_v33, %v2355_v27  ;;  %v2713_v52 = vadd.f32 %v5649_v20, %v2535_v14  ;;  %v6031_v20 = vld [vmem:[#allocation56_spill] sm:$0xff] }
 0x316   : > { %v3985_v43 = vpop.f32.mrf.mxu1  ;;  %v2184_v42 = vadd.f32 %v6031_v20, %v2006_v17  ;;  %v2007_v1 = vadd.f32 %v6033_v57, %v1829_v45  ;;  %v6038_v27 = vld [vmem:[#allocation40_spill] sm:$0xff] }
 0x317   : > { %v2763_v18 = vpack.c.bf16 %v2749_v62, %v2748_v25  ;;  %v2747_v59 = vmax.f32 %v2731_v56, 0.0  ;;  %v2711_v13 = vadd.f32 %v5657_v39, %v2533_v41  ;;  %v2536_v63 = vadd.f32 %v3985_v43, %v2358_v37  ;;  %v6041_v17 = vld [vmem:[#allocation48_spill] sm:$0xff]  ;;  %v4024_v62 = vpop.f32.mrf.mxu0  ;;  %v6042_v43 = vld [vmem:[#allocation50_spill] sm:$0xff] }
 0x318   : > { %v2485_v6 = vpop.f32.mrf.mxu1  ;;  %v2736_v0 = vadd.f32 %v5692_v28, %v2713_v52  ;;  %v2010_v8 = vadd.f32 %v6038_v27, %v1832_v16  ;;  %v2362_v33 = vadd.f32 %v6041_v17, %v2184_v42  ;;  %v2185_v25 = vadd.f32 %v5663_v23, %v2007_v1  ;;  %v6044_v16 = vld [vmem:[#allocation51_spill] sm:$0xff] }
 0x319   : > { %v2534_v55 = vadd.f32 %v2485_v6, %v2356_v54  ;;  %v2762_v11 = vpack.c.bf16 %v2747_v59, %v2746_v46  ;;  %v2714_v47 = vadd.f32 %v5667_v15, %v2536_v63  ;;  %v2734_v5 = vadd.f32 %v5692_v28, %v2711_v13  ;;  %v6039_v15 = vld [vmem:[#allocation45_spill] sm:$0xff]  ;;  %v2692_v50 = vpop.f32.mrf.mxu0  ;;  %v6045_v6 = vld [vmem:[#allocation52_spill] sm:$0xff] }
 0x31a   : > { %v3988_v58 = vpop.f32.mrf.mxu1  ;;  %v2187_v40 = vadd.f32 %v6040_v60, %v6039_v15  ;;  %v2752_v56 = vmax.f32 %v2736_v0, 0.0  ;;  %v2360_v22 = vadd.f32 %v6042_v43, %v2182_v48  ;;  %v2188_v54 = vadd.f32 %v5669_v29, %v2010_v8  ;;  %v6043_v59 = vld [vmem:[#allocation41_spill] sm:$0xff] }
 0x31b   : > { %v2712_v39 = vadd.f32 %v5677_v21, %v2534_v55  ;;  %v2539_v4 = vadd.f32 %v3988_v58, %v2361_v53  ;;  %4074 = vmatprep.mubr.bf16.mxu0 %v2762_v11  ;;  %v2737_v38 = vadd.f32 %v5692_v28, %v2714_v47  ;;  %v2750_v7 = vmax.f32 %v2734_v5, 0.0  ;;  %v6046_v53 = vld [vmem:[#allocation53_spill] sm:$0xff]  ;;  %v4025_v58 = vpop.f32.mrf.mxu0 }
 0x31c   : > { %v2498_v14 = vpop.f32.mrf.mxu1  ;;  %4075 = vmatmul.mubr.bf16.vlgmr.msra.gmra.mxu0 %v2763_v18  ;;  %v2008_v44 = vadd.f32 %v6043_v59, %v1830_v10  ;;  %v2365_v12 = vadd.f32 %v6044_v16, %v2187_v40  ;;  %v2363_v20 = vadd.f32 %v6045_v6, %v2185_v25  ;;  %v2366_v11 = vadd.f32 %v6046_v53, %v2188_v54 }
 0x31d   : > { %v2735_v21 = vadd.f32 %v5692_v28, %v2712_v39  ;;  %v2537_v34 = vadd.f32 %v2498_v14, %v2359_v51  ;;  %v2753_v41 = vmax.f32 %v2737_v38, 0.0  ;;  %v2717_v45 = vadd.f32 %v5687_v19, %v2539_v4  ;;  %v2695_v5 = vpop.f32.mrf.mxu0 }
 0x31e   : > { %v3989_v52 = vpop.f32.mrf.mxu1  ;;  %v2186_v29 = vadd.f32 %v5673_v9, %v2008_v44 }
 0x31f   : > { %v2751_v2 = vmax.f32 %v2735_v21, 0.0  ;;  %v2540_v37 = vadd.f32 %v3989_v52, %v2362_v33  ;;  %v2715_v36 = vadd.f32 %v5703_v61, %v2537_v34  ;;  %v2765_v18 = vpack.c.bf16 %v2753_v41, %v2752_v56 }
 0x320   : > { %v2501_v46 = vpop.f32.mrf.mxu1  ;;  %v2740_v19 = vadd.f32 %v5692_v28, %v2717_v45 }
 0x321   : > { %v2718_v23 = vadd.f32 %v4021_v24, %v2540_v37  ;;  %v2538_v3 = vadd.f32 %v2501_v46, %v2360_v22  ;;  %v2764_v63 = vpack.c.bf16 %v2751_v2, %v2750_v7  ;;  %v2738_v30 = vadd.f32 %v5692_v28, %v2715_v36 }
 0x322   : > { %v3992_v13 = vpop.f32.mrf.mxu1  ;;  %v2756_v35 = vmax.f32 %v2740_v19, 0.0 }
 0x323   : > { %v2741_v42 = vadd.f32 %v5692_v28, %v2718_v23  ;;  %v2716_v61 = vadd.f32 %v2679_v31, %v2538_v3  ;;  %v2543_v55 = vadd.f32 %v3992_v13, %v2365_v12  ;;  %4078 = vmatprep.mubr.bf16.mxu0 %v2764_v63  ;;  %v6047_v31 = vld [vmem:[#allocation54_spill] sm:$0xff]  ;;  %v2754_v51 = vmax.f32 %v2738_v30, 0.0 }
 0x324   : > { %v2514_v24 = vpop.f32.mrf.mxu1  ;;  %4079 = vmatmul.mubr.bf16.gmra.mxu0 %v2765_v18  ;;  %v2364_v49 = vadd.f32 %v6047_v31, %v2186_v29 }
 0x325   : > { %v2757_v57 = vmax.f32 %v2741_v42, 0.0  ;;  %v2739_v1 = vadd.f32 %v5692_v28, %v2716_v61  ;;  %v2721_v0 = vadd.f32 %v4024_v62, %v2543_v55  ;;  %v2541_v47 = vadd.f32 %v2514_v24, %v2363_v20 }
 0x326   : > { %v3993_v48 = vpop.f32.mrf.mxu1 }
 0x327   : > { %v2755_v9 = vmax.f32 %v2739_v1, 0.0  ;;  %v2719_v39 = vadd.f32 %v2692_v50, %v2541_v47  ;;  %v2544_v4 = vadd.f32 %v3993_v48, %v2366_v11  ;;  %v2767_v26 = vpack.c.bf16 %v2757_v57, %v2756_v35 }
 0x328   : > { %v2517_v32 = vpop.f32.mrf.mxu1  ;;  %v2744_v10 = vadd.f32 %v5692_v28, %v2721_v0 }
 0x329   : > { %v2722_v27 = vadd.f32 %v4025_v58, %v2544_v4  ;;  %v2542_v8 = vadd.f32 %v2517_v32, %v2364_v49  ;;  %v2766_v38 = vpack.c.bf16 %v2755_v9, %v2754_v51  ;;  %v2742_v14 = vadd.f32 %v5692_v28, %v2719_v39 }
 0x32a   : > { %v2760_v40 = vmax.f32 %v2744_v10, 0.0 }
 0x32b   : > { %v2745_v15 = vadd.f32 %v5692_v28, %v2722_v27  ;;  %v2720_v60 = vadd.f32 %v2695_v5, %v2542_v8  ;;  %4082 = vmatprep.mubr.bf16.mxu0 %v2766_v38  ;;  %v2758_v17 = vmax.f32 %v2742_v14, 0.0 }
 0x32c   : > { %4083 = vmatmul.mubr.bf16.gmra.mxu0 %v2767_v26 }
 0x32d   : > { %v2761_v21 = vmax.f32 %v2745_v15, 0.0  ;;  %v2743_v34 = vadd.f32 %v5692_v28, %v2720_v60  ;;  %v5764_v28 = vld [vmem:[%s6048_s29] ss:$0 sm:$0xff] }
 0x32f   : > { %v2759_v33 = vmax.f32 %v2743_v34, 0.0  ;;  %v2769_v25 = vpack.c.bf16 %v2761_v21, %v2760_v40 }
 0x331   : > { %v2768_v62 = vpack.c.bf16 %v2759_v33, %v2758_v17 }
 0x333   : > { %4086 = vmatprep.mubr.bf16.mxu0 %v2768_v62  ;;  %v4044_v56 = vpop.f32.mrf.mxu1 }
 0x334   : > { %4087 = vmatmul.mubr.bf16.gmra.mxu0 %v2769_v25 }
 0x335   : > { %v2884_v41 = vpop.f32.mrf.mxu1 }
 0x337   : > { %v4045_v45 = vpop.f32.mrf.mxu1 }
 0x339   : > { %v2887_v52 = vpop.f32.mrf.mxu1 }
 0x33b   : > { %v4048_v2 = vpop.f32.mrf.mxu1 }
 0x33d   : > { %v2900_v37 = vpop.f32.mrf.mxu1 }
 0x33f   : > { %v4049_v43 = vpop.f32.mrf.mxu1 }
 0x341   : > { %v2903_v22 = vpop.f32.mrf.mxu1 }
 0x343   : > { %v4052_v59 = vpop.f32.mrf.mxu1 }
 0x345   : > { %v2916_v63 = vpop.f32.mrf.mxu1 }
 0x347   : > { %v4053_v30 = vpop.f32.mrf.mxu1 }
 0x349   : > { %v2919_v58 = vpop.f32.mrf.mxu1 }
 0x34b   : > { %v4056_v51 = vpop.f32.mrf.mxu1 }
 0x34d   : > { %v2932_v15 = vpop.f32.mrf.mxu1 }
 0x3dc   : > { %v4076_v54 = vpop.f32.mrf.mxu0 }
 0x3dd   : > { %v3038_v7 = vadd.f32 %v4076_v54, %v4044_v56  ;;  %v4057_v56 = vpop.f32.mrf.mxu1 }
 0x3de   : > { %v3029_v36 = vpop.f32.mrf.mxu0 }
 0x3df   : > { %v3101_v46 = vadd.f32 %v5764_v28, %v3038_v7  ;;  %v3030_v18 = vadd.f32 %v3029_v36, %v2884_v41  ;;  %v2935_v7 = vpop.f32.mrf.mxu1 }
 0x3e0   : > { %v4077_v44 = vpop.f32.mrf.mxu0 }
 0x3e1   : > { %v3117_v23 = vmax.f32 %v3101_v46, 0.0  ;;  %v3099_v3 = vadd.f32 %v5764_v28, %v3030_v18  ;;  %v3041_v16 = vadd.f32 %v4077_v44, %v4045_v45 }
 0x3e2   : > { %v3032_v12 = vpop.f32.mrf.mxu0 }
 0x3e3   : > { %3133 = vst [vmem:[%s5769_s25 + $0x10] sm:$0xff] %v3117_v23  ;;  %v3115_v50 = vmax.f32 %v3099_v3, 0.0  ;;  %v3102_v19 = vadd.f32 %v5764_v28, %v3041_v16  ;;  %v3033_v13 = vadd.f32 %v3032_v12, %v2887_v52 }
 0x3e4   : > { %v4080_v29 = vpop.f32.mrf.mxu0 }
 0x3e5   : > { %3131 = vst [vmem:[%s5769_s25] sm:$0xff] %v3115_v50  ;;  %v3118_v6 = vmax.f32 %v3102_v19, 0.0  ;;  %v3100_v20 = vadd.f32 %v5764_v28, %v3033_v13  ;;  %v3054_v42 = vadd.f32 %v4080_v29, %v4048_v2 }
 0x3e6   : > { %v3045_v55 = vpop.f32.mrf.mxu0 }
 0x3e7   : > { %3134 = vst [vmem:[%s5769_s25 + $0x18] sm:$0xff] %v3118_v6  ;;  %v3116_v61 = vmax.f32 %v3100_v20, 0.0  ;;  %v3105_v24 = vadd.f32 %v5764_v28, %v3054_v42  ;;  %v3046_v53 = vadd.f32 %v3045_v55, %v2900_v37 }
 0x3e8   : > { %v4081_v11 = vpop.f32.mrf.mxu0 }
 0x3e9   : > { %3132 = vst [vmem:[%s5769_s25 + $0x8] sm:$0xff] %v3116_v61  ;;  %v3121_v57 = vmax.f32 %v3105_v24, 0.0  ;;  %v3103_v1 = vadd.f32 %v5764_v28, %v3046_v53  ;;  %v3057_v0 = vadd.f32 %v4081_v11, %v4049_v43 }
 0x3ea   : > { %v3048_v47 = vpop.f32.mrf.mxu0 }
 0x3eb   : > { %3137 = vst [vmem:[%s5769_s25 + $0x30] sm:$0xff] %v3121_v57  ;;  %v3119_v35 = vmax.f32 %v3103_v1, 0.0  ;;  %v3106_v48 = vadd.f32 %v5764_v28, %v3057_v0  ;;  %v3049_v9 = vadd.f32 %v3048_v47, %v2903_v22 }
 0x3ec   : > { %v4084_v39 = vpop.f32.mrf.mxu0 }
 0x3ed   : > { %3135 = vst [vmem:[%s5769_s25 + $0x20] sm:$0xff] %v3119_v35  ;;  %v3122_v4 = vmax.f32 %v3106_v48, 0.0  ;;  %v3104_v31 = vadd.f32 %v5764_v28, %v3049_v9  ;;  %v3070_v49 = vadd.f32 %v4084_v39, %v4052_v59 }
 0x3ee   : > { %v3061_v32 = vpop.f32.mrf.mxu0 }
 0x3ef   : > { %3138 = vst [vmem:[%s5769_s25 + $0x38] sm:$0xff] %v3122_v4  ;;  %v3120_v26 = vmax.f32 %v3104_v31, 0.0  ;;  %v3109_v10 = vadd.f32 %v5764_v28, %v3070_v49  ;;  %v3062_v27 = vadd.f32 %v3061_v32, %v2916_v63 }
 0x3f0   : > { %v4085_v8 = vpop.f32.mrf.mxu0 }
 0x3f1   : > { %3136 = vst [vmem:[%s5769_s25 + $0x28] sm:$0xff] %v3120_v26  ;;  %v3125_v5 = vmax.f32 %v3109_v10, 0.0  ;;  %v3107_v38 = vadd.f32 %v5764_v28, %v3062_v27  ;;  %v3073_v14 = vadd.f32 %v4085_v8, %v4053_v30 }
 0x3f2   : > { %v3064_v60 = vpop.f32.mrf.mxu0 }
 0x3f3   : > { %3141 = vst [vmem:[%s5769_s25 + $0x50] sm:$0xff] %v3125_v5  ;;  %v3123_v40 = vmax.f32 %v3107_v38, 0.0  ;;  %v3110_v21 = vadd.f32 %v5764_v28, %v3073_v14  ;;  %v3065_v34 = vadd.f32 %v3064_v60, %v2919_v58 }
 0x3f4   : > { %v4088_v17 = vpop.f32.mrf.mxu0 }
 0x3f5   : > { %3139 = vst [vmem:[%s5769_s25 + $0x40] sm:$0xff] %v3123_v40  ;;  %v3126_v33 = vmax.f32 %v3110_v21, 0.0  ;;  %v3108_v25 = vadd.f32 %v5764_v28, %v3065_v34  ;;  %v3086_v62 = vadd.f32 %v4088_v17, %v4056_v51 }
 0x3f6   : > { %v3077_v41 = vpop.f32.mrf.mxu0 }
 0x3f7   : > { %3142 = vst [vmem:[%s5769_s25 + $0x58] sm:$0xff] %v3126_v33  ;;  %v3124_v45 = vmax.f32 %v3108_v25, 0.0  ;;  %v3113_v52 = vadd.f32 %v5764_v28, %v3086_v62  ;;  %v3078_v2 = vadd.f32 %v3077_v41, %v2932_v15 }
 0x3f8   : > { %v4089_v37 = vpop.f32.mrf.mxu0 }
 0x3f9   : > { %3140 = vst [vmem:[%s5769_s25 + $0x48] sm:$0xff] %v3124_v45  ;;  %v3129_v43 = vmax.f32 %v3113_v52, 0.0  ;;  %v3111_v22 = vadd.f32 %v5764_v28, %v3078_v2  ;;  %v3089_v54 = vadd.f32 %v4089_v37, %v4057_v56 }
 0x3fa   : > { %v3080_v36 = vpop.f32.mrf.mxu0 }
 0x3fb   : > { %3145 = vst [vmem:[%s5769_s25 + $0x70] sm:$0xff] %v3129_v43  ;;  %v3127_v46 = vmax.f32 %v3111_v22, 0.0  ;;  %v3114_v18 = vadd.f32 %v5764_v28, %v3089_v54  ;;  %v3081_v59 = vadd.f32 %v3080_v36, %v2935_v7 }
 0x3fd   : > { %3143 = vst [vmem:[%s5769_s25 + $0x60] sm:$0xff] %v3127_v46  ;;  %v3130_v44 = vmax.f32 %v3114_v18, 0.0  ;;  %v3112_v23 = vadd.f32 %v5764_v28, %v3081_v59 }
 0x3ff   : > { %3146 = vst [vmem:[%s5769_s25 + $0x78] sm:$0xff] %v3130_v44  ;;  %v3128_v3 = vmax.f32 %v3112_v23, 0.0 }
 0x401   : > { %3144 = vst [vmem:[%s5769_s25 + $0x68] sm:$0xff] %v3128_v3 }
 0x402   : > { %4586 = shalt.err (!%p4583_p3)
}
 0x403   : > { %s4587_s2 = scalar_lea.hbm %s5805_s14, 2048  ;;  %s4591_s29 = scalar_lea.hbm %s6050_s4, 8192 }
 0x404   : > { %p4588_p13 = scmp.ne.s32.totalorder %s5805_s14, %s4587_s2  ;;  %p4592_p8 = scmp.lt.s32.totalorder %s5805_s14, %s6050_s4 }
 0x405   : > { %p4593_p12 = scmp.lt.s32.totalorder %s4591_s29, %s4587_s2 }
 0x406   : > { %p4589_p10 = pnand %p4588_p13, %p6051_p5 }
 0x407   : > { %p4594_p9 = por %p4593_p12, %p4592_p8 }
 0x408   : > { %p4590_p11 = pneg %p4589_p10 }
 0x40a   : > { %p4595_p0 = pnand %p4594_p9, %p4590_p11 }
 0x40c   : > { %4598 = shalt.err (!%p4595_p0)
}
 0x40d   : > { %s4745_s9 = smov 128   ;;  %s4746_s7 = smov 8  }
 0x40e   : > { %4112 = dma.vmem_to_hbm [thread:$0]  (%p6051_p5), %s5807_s11, 2048, %s5805_s14, %s3148_s30, %s4745_s9, %s4745_s9, %s4746_s7  }
 0x40f PF: > { %p4150_p7 = scmp.ge.s32.totalorder %s4733_s26, 2  ;;  %s3179_s22 = sand.u32 1, %s4705_s19  }
 0x410   : > { %p6052_p1 = scmp.ne.s32.totalorder %s5964_s15, 0  ;;  %s3180_s10 = scalar_lea.sflag [#allocation4], %s3179_s22 }
 0x412   : > { %p4138_p6 = pnand %p4150_p7, %p6052_p1 }
 0x414   : > { %p4139_p2 = pneg %p4138_p6 }
 0x416   : > { %4676 = dma.done.wait (%p4139_p2), %s3180_s10, 2048  }
 0x417   : > { %4678 = vsyncadd (%p4139_p2), %s3180_s10, 4294965248  ;;  %s31_s26 = sadd.s32 1, %s4733_s26   ;;  %s6054_s3 = sld [smem:[#allocation22_spill]] }
 0x418   : > { %p5839_p4 = scmp.ge.s32.totalorder %s31_s26, 6   ;;  %s6055_s14 = sld [smem:[#allocation23_spill]] }
 0x419   : > { %s6056_s16 = sld [smem:[#allocation24_spill]]  ;;  %s6058_s11 = smov %s5023_s13 }
 0x41a   : > { %s6057_s8 = sld [smem:[#allocation35_spill]]  ;;  %s6064_s15 = smov %s6085_s28 }
 0x41b   : > { %s6059_s22 = sld [smem:[#allocation27_spill]]  ;;  %s6065_s17 = smov %s4701_s18 }
 0x41c   : > { %s6060_s23 = sld [smem:[#allocation28_spill]]  ;;  %s6067_s19 = smov %s4709_s20 }
 0x41d   : > { %s6061_s24 = sld [smem:[#allocation30_spill]]  ;;  %s6063_s13 = smov %s6054_s3 }
 0x41e   : > { %s6062_s25 = sld [smem:[#allocation31_spill]]  ;;  %s6068_s20 = smov %s4713_s21 }
 0x41f   : > { %s6069_s21 = smov %s6058_s11  ;;  %30 = sbr.rel (!%p5839_p4) target bundleno = 26 (0x1a), region = 153 }
 0x420   : > { %s6066_s18 = smov %s6057_s8 }
 0x424   :  { %3185 = vsyncpa [#allocation3], 1 }
 0x425   :  { %3187 = vsyncpa [#allocation3 + $0x1], 1 }
 0x426   :  { %3188 = vsyncpa [#allocation6], 1 }
 0x427   :  { %3190 = vsyncpa [#allocation6 + $0x1], 1 }
 0x428   :  { %3191 = vsyncpa [#allocation9], 1 }
 0x429   :  { %3192 = vsyncpa [#allocation12], 1 }
 0x42a   :  { %3193 = vsyncpa [#allocation4], 1 }
 0x42b   :  { %3195 = vsyncpa [#allocation4 + $0x1], 1 }

// kernel: tpu_custom_call.1
= control target key start
LH: loop header
LB: loop body
LE: loop exit
PB: predicated region body
PF: predicated region fallthrough
CT: control target
= control target key end

     0   :  { %s5886_s0 = inlined_call_operand.hbm [shape: bf16[2,16,16,128], index: 0, kind: input, shape index: {}]   ;;  %s5887_s1 = inlined_call_operand.hbm [shape: bf16[2,16,16,128], index: 1, kind: input, shape index: {}]   ;;  %s5888_s2 = inlined_call_operand.hbm [shape: bf16[2,16,16,128], index: 2, kind: input, shape index: {}]   ;;  %s5889_s3 = inlined_call_operand.hbm [shape: bf16[128,128], index: 3, kind: input, shape index: {}]   ;;  %s5890_s4 = inlined_call_operand.hbm [shape: bf16[3,3,128,128], index: 4, kind: input, shape index: {}]   ;;  %s5891_s5 = inlined_call_operand.hbm [shape: bf16[128,128], index: 5, kind: input, shape index: {}]   ;;  %s5892_s6 = inlined_call_operand.hbm [shape: bf16[128,128], index: 6, kind: input, shape index: {}]   ;;  %s5893_s7 = inlined_call_operand.vmem [shape: f32[1,128], index: 7, kind: input, shape index: {}]   ;;  %s5894_s8 = inlined_call_operand.vmem [shape: f32[1,128], index: 8, kind: input, shape index: {}]   ;;  %s5895_s9 = inlined_call_operand.vmem [shape: f32[1,128], index: 9, kind: input, shape index: {}]   ;;  %s5896_s10 = inlined_call_operand.hbm [shape: f32[2,16,16,128], index: 10, kind: output, shape index: {}]  }
   0x1   :  { %5921 = sst [smem:[#allocation59_spill]] %s5886_s0 }
   0x2   :  { %5922 = sst [smem:[#allocation60_spill]] %s5887_s1 }
   0x3   :  { %5923 = sst [smem:[#allocation61_spill]] %s5888_s2 }
   0x4   :  { %5924 = sst [smem:[#allocation62_spill]] %s5889_s3 }
   0x5   :  { %5925 = sst [smem:[#allocation63_spill]] %s5890_s4 }
   0x6   :  { %5926 = sst [smem:[#allocation64_spill]] %s5891_s5 }
   0x7   :  { %5927 = sst [smem:[#allocation65_spill]] %s5892_s6 }
   0x8   :  { %5928 = sst [smem:[#allocation66_spill]] %s5893_s7 }
   0x9   :  { %5929 = sst [smem:[#allocation67_spill]] %s5894_s8 }
   0xa   :  { %5930 = sst [smem:[#allocation68_spill]] %s5895_s9 }
   0xb   :  { %5931 = sst [smem:[#allocation69_spill]] %s5896_s10 }
   0xc   :  { %15 = vsyncpa [#allocation3], 0 }
   0xd   :  { %17 = vsyncpa [#allocation3 + $0x1], 0 }
   0xe   :  { %18 = vsyncpa [#allocation6], 0 }
   0xf   :  { %20 = vsyncpa [#allocation6 + $0x1], 0 }
  0x10   :  { %21 = vsyncpa [#allocation9], 0 }
  0x11   :  { %22 = vsyncpa [#allocation12], 0 }
  0x12   :  { %23 = vsyncpa [#allocation4], 0 }
  0x13   :  { %25 = vsyncpa [#allocation4 + $0x1], 0  ;;  %s4802_s13 = smov 0   ;;  %s4804_s14 = smov 0  }
  0x14   :  { %s4806_s15 = smov 0   ;;  %s4808_s16 = smov 0  }
  0x15   :  { %s4810_s17 = smov 0   ;;  %s4812_s18 = smov 0  }
  0x16   :  { %s4814_s19 = smov 0   ;;  %s4816_s20 = smov 0  }
  0x17   :  { %s4818_s21 = smov 0   ;;  %s4820_s22 = smov 0  }
  0x18   :  { %s4822_s23 = smov 0   ;;  %s4824_s24 = smov 0  }
  0x19   :  { %s4826_s25 = smov 0   ;;  %s4828_s26 = smov 0  }
  0x1a LB: > { %5932 = sst [smem:[#allocation21_spill]] %s4681_s13  ;;  %s4873_s27 = sadd.s32 4294967295, %s4733_s26   ;;  %s4733_s26 = sphi %s4828_s26, %s31_s26   ;;  %s4729_s25 = sphi %s4826_s25, %s6062_s25   ;;  %s4725_s24 = sphi %s4824_s24, %s6061_s24   ;;  %s4721_s23 = sphi %s4822_s23, %s6060_s23   ;;  %s4717_s22 = sphi %s4820_s22, %s6059_s22   ;;  %s4713_s21 = sphi %s4818_s21, %s6069_s21   ;;  %s4709_s20 = sphi %s4816_s20, %s6068_s20   ;;  %s4705_s19 = sphi %s4814_s19, %s6067_s19   ;;  %s4701_s18 = sphi %s4812_s18, %s6066_s18   ;;  %s4697_s17 = sphi %s4810_s17, %s6065_s17   ;;  %s4693_s16 = sphi %s4808_s16, %s6056_s16   ;;  %s4689_s15 = sphi %s4806_s15, %s6064_s15   ;;  %s4685_s14 = sphi %s4804_s14, %s6055_s14   ;;  %s4681_s13 = sphi %s4802_s13, %s6063_s13  }
  0x1b   : > { %5933 = sst [smem:[#allocation22_spill]] %s4685_s14  ;;  %p3349_p0 = scmp.ge.s32.totalorder %s4733_s26, 1 }
  0x1c   : > { %5934 = sst [smem:[#allocation23_spill]] %s4689_s15  ;;  %p5916_p1 = scmp.eq.s32.totalorder %s4873_s27, 0 }
  0x1d   : > { %5935 = sst [smem:[#allocation24_spill]] %s4697_s17  ;;  %p323_p2 = scmp.lt.s32.totalorder %s4733_s26, 5 }
  0x1e   : > { %5936 = sst [smem:[#allocation25_spill]] %s4717_s22  ;;  %s4735_s29 = smov [#allocation8]  }
  0x1f   : > { %5937 = sst [smem:[#allocation26_spill]] %s4721_s23  ;;  %p4878_p3 = pnand %p3349_p0, %p323_p2 }
  0x20   : > { %5938 = sst [smem:[#allocation27_spill]] %s4725_s24  ;;  %s335_s30 = sshll.u32 %s4735_s29, 4  ;;  %s336_s30 = int_to_ptr.vmem [resolvable:$true] %s335_s30 }
  0x21   : > { %5939 = sst [smem:[#allocation28_spill]] %s4729_s25  ;;  %p4114_p4 = pneg %p4878_p3 }
  0x22   : > { %s5940_s28 = scalar_select %p4878_p3, 1, 0 }
  0x23   : > { %p4886_p5 = pnand %p4114_p4, %p5916_p1  ;;  %s4736_s12 = smov [#allocation11]  }
  0x24   : > { %5941 = sst [smem:[#allocation29_spill]] %s5940_s28  ;;  %s361_s10 = sshll.u32 %s4736_s12, 4  ;;  %s362_s10 = int_to_ptr.vmem [resolvable:$true] %s361_s10 }
  0x25   : > { %p4387_p6 = pneg %p4886_p5  ;;  %s4396_s23 = scalar_lea.vmem %s336_s30, 1024 }
  0x26   : > { %p4397_p7 = scmp.ne.s32.totalorder %s336_s30, %s4396_s23  ;;  %p4404_p10 = scmp.lt.s32.totalorder %s336_s30, %s336_s30 }
  0x27   : > { %p4405_p11 = scmp.lt.s32.totalorder %s4396_s23, %s4396_s23 }
  0x28   : > { %p4399_p8 = pnand %p4397_p7, %p4387_p6 }
  0x29   : > { %p4406_p12 = por %p4405_p11, %p4404_p10 }
  0x2a   : > { %p4400_p9 = pneg %p4399_p8 }
  0x2c   : > { %p4407_p13 = pnand %p4406_p12, %p4400_p9 }
  0x2e   : > { %4410 = shalt.err (!%p4407_p13)
}
  0x2f   : > { %s5899_s29 = smov 64   ;;  %s5901_s9 = smov 4  }
  0x30   : > { %s5943_s3 = sld [smem:[#allocation62_spill]]  ;;  %s4422_s7 = scalar_lea.vmem %s362_s10, 1024 }
  0x31   : > { %p4423_p0 = scmp.ne.s32.totalorder %s362_s10, %s4422_s7  ;;  %p4430_p7 = scmp.lt.s32.totalorder %s362_s10, %s362_s10 }
  0x32   : > { %p4431_p8 = scmp.lt.s32.totalorder %s4422_s7, %s4422_s7 }
  0x33   : > { %p4425_p2 = pnand %p4423_p0, %p4387_p6 }
  0x34   : > { %p4432_p9 = por %p4431_p8, %p4430_p7 }
  0x35   : > { %p4426_p4 = pneg %p4425_p2 }
  0x36   : > { %4117 = dma.hbm_to_vmem [thread:$0]  (!%p4886_p5), %s5943_s3, 1024, %s336_s30, [#allocation9], %s5899_s29, %s5899_s29, %s5901_s9  }
  0x37   : > { %p4433_p10 = pnand %p4432_p9, %p4426_p4 }
  0x39   : > { %4436 = shalt.err (!%p4433_p10)
}
  0x3a   : > { %s5944_s5 = sld [smem:[#allocation64_spill]]  ;;  %s40_s7 = sadd.s32 1, %s4725_s24 }
  0x3b   : > { %s43_s8 = sadd.s32 1, %s4729_s25  ;;  %p41_p11 = scmp.ge.s32.totalorder %s40_s7, 2 }
  0x3c   : > { %p5917_p12 = scmp.eq.s32.totalorder %s4733_s26, 0  ;;  %s3343_s30 = sshll.u32 %s4725_s24, 3 }
  0x3d   : > { %s88_s12 = sadd.s32 1, %s4701_s18  ;;  %s6071_s7 = smov (%p41_p11, %s40_s7), 0 }
  0x3e   : > { %5945 = sst [smem:[#allocation30_spill]] %s6071_s7  ;;  %s6073_s8 = smov (!%p41_p11, %s43_s8), %s4729_s25 }
  0x3f   : > { %s48_s22 = ssub.s32 %s4725_s24, %s6071_s7  ;;  %s3344_s23 = sadd.s32 4294967295, %s3343_s30 }
  0x40   : > { %4123 = dma.hbm_to_vmem [thread:$0]  (!%p4886_p5), %s5944_s5, 1024, %s362_s10, [#allocation12], %s5899_s29, %s5899_s29, %s5901_s9  }
  0x41   : > { %p45_p13 = scmp.ge.s32.totalorder %s6073_s8, 2  ;;  %p77_p0 = scmp.gt.s32.totalorder %s3344_s23, 0 }
  0x42   : > { %s3345_s10 = sshll.u32 %s6071_s7, 3  ;;  %p95_p2 = scmp.ne.s32.totalorder %s4701_s18, %s4697_s17 }
  0x43   : > { %s6075_s8 = smov (%p45_p13, %s6073_s8), 0  ;;  %s6077_s23 = smov (!%p77_p0, %s3344_s23), 0 }
  0x44   : > { %5946 = sst [smem:[#allocation31_spill]] %s6075_s8  ;;  %s4931_s29 = ssub.s32 %s4729_s25, %s6075_s8 }
  0x45   : > { %5947 = sst [smem:[#allocation32_spill]] %s4931_s29  ;;  %s3346_s9 = sadd.s32 4294967295, %s3345_s10 }
  0x46   : > { %s4934_s3 = sor.u32 %s48_s22, %s4931_s29  ;;  %p81_p4 = scmp.gt.s32.totalorder %s3346_s9, 0 }
  0x47   : > { %p50_p7 = scmp.eq.s32.totalorder %s4934_s3, 0  ;;  %p4939_p8 = por %p95_p2, %p5917_p12 }
  0x48   : > { %s6079_s9 = smov (!%p81_p4, %s3346_s9), 0  ;;  %p101_p9 = scmp.ne.s32.totalorder %s4697_s17, %s4693_s16 }
  0x49   : > { %s4945_s8 = sadd.s32 8, %s3343_s30  ;;  %s84_s7 = ssub.s32 %s6077_s23, %s6079_s9 }
  0x4a   : > { %5949 = sst [smem:[#allocation33_spill]] %s4945_s8  ;;  %s85_s22 = sor.u32 %s84_s7, %s4931_s29 }
  0x4b   : > { %p4951_p11 = por %p101_p9, %p5916_p1  ;;  %p86_p13 = scmp.eq.s32.totalorder %s85_s22, 0 }
  0x4c   : > { %s4955_s2 = sadd.s32 8, %s3345_s10  ;;  %p5915_p2 = scmp.lt.s32.totalorder %s4733_s26, 4 }
  0x4d   : > { %s5950_s28 = scalar_select %p4951_p11, 1, 0 }
  0x4e   : > { %s4960_s16 = scalar_select %p86_p13, %s4701_s18, %s88_s12  }
  0x4f   : > { %5951 = sst [smem:[#allocation34_spill]] %s5950_s28  ;;  %s4963_s30 = sshll.u32 %s4729_s25, 5 }
  0x50   : > { %5952 = sst [smem:[#allocation35_spill]] %s4960_s16  ;;  %s421_s9 = sand.u32 1, %s4733_s26  }
  0x51   : > { %s423_s7 = sand.u32 1, %s4701_s18   ;;  %s3363_s29 = sshll.u32 %s6077_s23, 1 }
  0x52   : > { %s3360_s17 = sshll.u32 %s423_s7, 3  ;;  %s435_s13 = sadd.s32 %s3363_s29, %s4963_s30 }
  0x53   : > { %s3365_s14 = sshll.u32 %s435_s13, 6  ;;  %s425_s28 = scalar_lea.vmem [#allocation5], %s3360_s17 }
  0x54   : > { %s438_s22 = sshll.u32 %s425_s28, 4  ;;  %s5953_s1 = sld [smem:[#allocation60_spill]]  ;;  %s439_s22 = int_to_ptr.vmem [resolvable:$true] %s438_s22 }
  0x55   : > { %p4975_p4 = pnand %p5915_p2, %p4939_p8  ;;  %s4739_s25 = smov [#allocation10]  }
  0x56   : > { %s348_s16 = sshll.u32 %s4739_s25, 4  ;;  %s4981_s29 = scalar_lea.sflag [#allocation6], %s421_s9  ;;  %s4979_s16 = int_to_ptr.vmem [resolvable:$true] %s348_s16 }
  0x57   : > { %p4439_p9 = pneg %p4975_p4  ;;  %s4450_s13 = scalar_lea.vmem %s439_s22, 128 }
  0x58   : > { %p4451_p13 = scmp.ne.s32.totalorder %s439_s22, %s4450_s13 }
  0x5a   : > { %s437_s10 = scalar_lea.hbm %s5953_s1, %s3365_s14  ;;  %p4453_p0 = pnand %p4451_p13, %p4439_p9 }
  0x5b   : > { %s4740_s14 = smov [#allocation5]  }
  0x5c   : > { %p4454_p10 = pneg %p4453_p0  ;;  %s4455_s5 = sshll.u32 %s4740_s14, 4  ;;  %s4456_s5 = int_to_ptr.vmem [resolvable:$false] %s4455_s5 }
  0x5d   : > { %s4457_s15 = scalar_lea.vmem %s4456_s5, 256  ;;  %p4458_p8 = scmp.lt.s32.totalorder %s439_s22, %s4456_s5 }
  0x5e   : > { %p4459_p2 = scmp.lt.s32.totalorder %s4457_s15, %s4450_s13 }
  0x60   : > { %p4460_p1 = por %p4459_p2, %p4458_p8 }
  0x62   : > { %p4461_p12 = pnand %p4460_p1, %p4454_p10 }
  0x64   : > { %4464 = shalt.err (!%p4461_p12)
}
  0x65   : > { %s5955_s17 = smov 4   ;;  %s5956_s25 = smov 64  }
  0x66   : > { %4133 = dma.hbm_to_vmem [thread:$0]  (!%p4975_p4), %s437_s10, 128, %s439_s22, %s4981_s29, %s5956_s25, %s5956_s25, %s5955_s17  }
  0x67   : > { %s4476_s28 = scalar_lea.vmem %s4979_s16, 9216  ;;  %p4484_p1 = scmp.lt.s32.totalorder %s4979_s16, %s4979_s16 }
  0x68   : > { %p4477_p0 = scmp.ne.s32.totalorder %s4979_s16, %s4476_s28  ;;  %p4485_p12 = scmp.lt.s32.totalorder %s4476_s28, %s4476_s28 }
  0x6a   : > { %p4479_p9 = pnand %p4477_p0, %p4387_p6  ;;  %p4486_p10 = por %p4485_p12, %p4484_p1 }
  0x6c   : > { %p4480_p13 = pneg %p4479_p9 }
  0x6e   : > { %p4487_p2 = pnand %p4486_p10, %p4480_p13 }
  0x70   : > { %4490 = shalt.err (!%p4487_p2)
}
  0x71   : > { %s5957_s4 = sld [smem:[#allocation63_spill]]  ;;  %s4741_s9 = smov [#allocation13]  }
  0x72   : > { %s374_s7 = sshll.u32 %s4741_s9, 4  ;;  %s375_s7 = int_to_ptr.vmem [resolvable:$true] %s374_s7 }
  0x73   : > { %s4502_s22 = scalar_lea.vmem %s375_s7, 1024  ;;  %p4510_p9 = scmp.lt.s32.totalorder %s375_s7, %s375_s7 }
  0x74   : > { %p4503_p4 = scmp.ne.s32.totalorder %s375_s7, %s4502_s22  ;;  %p4511_p13 = scmp.lt.s32.totalorder %s4502_s22, %s4502_s22 }
  0x76   : > { %p4505_p8 = pnand %p4503_p4, %p4387_p6  ;;  %p4512_p1 = por %p4511_p13, %p4510_p9 }
  0x77   : > { %4120 = dma.hbm_to_vmem [thread:$0]  (!%p4886_p5), %s5957_s4, 9216, %s4979_s16, [#allocation9], %s5956_s25, %s5956_s25, %s5955_s17  }
  0x78   : > { %p4506_p0 = pneg %p4505_p8 }
  0x7a   : > { %p4513_p12 = pnand %p4512_p1, %p4506_p0 }
  0x7c   : > { %4516 = shalt.err (!%p4513_p12)
}
  0x7d   : > { %s5958_s6 = sld [smem:[#allocation65_spill]]  ;;  %s3342_s11 = sadd.s32 4294967294, %s4733_s26  }
  0x7e   : > { %s52_s12 = sadd.s32 1, %s4713_s21  ;;  %p59_p6 = scmp.ne.s32.totalorder %s4713_s21, %s4709_s20 }
  0x7f   : > { %s5023_s13 = scalar_select %p50_p7, %s4713_s21, %s52_s12  }
  0x80   : > { %p65_p10 = scmp.ne.s32.totalorder %s4709_s20, %s4705_s19  ;;  %p310_p2 = scmp.eq.s32.totalorder %s4873_s27, 3 }
  0x81   : > { %p316_p4 = scmp.eq.s32.totalorder %s3342_s11, 3  ;;  %p5959_p8 = scmp.eq.s32.totalorder %s4733_s26, 0 }
  0x82   : > { %p5961_p9 = scmp.eq.s32.totalorder %s4873_s27, 0  ;;  %s397_s28 = sand.u32 1, %s4713_s21  }
  0x83   : > { %4126 = dma.hbm_to_vmem [thread:$0]  (!%p4886_p5), %s5958_s6, 1024, %s375_s7, [#allocation12], %s5956_s25, %s5956_s25, %s5955_s17  }
  0x84   : > { %p5032_p0 = por %p5959_p8, %p59_p6  ;;  %p5038_p13 = por %p5961_p9, %p65_p10 }
  0x85   : > { %p5042_p5 = por %p310_p2, %p59_p6  ;;  %p5046_p7 = por %p316_p4, %p65_p10 }
  0x86   : > { %s3506_s8 = sshll.u32 %s4725_s24, 4  ;;  %s3355_s23 = sshll.u32 %s397_s28, 6 }
  0x87   : > { %s5963_s3 = scalar_select %p5042_p5, 1, 0 }
  0x88   : > { %s5964_s15 = scalar_select %p5046_p7, 1, 0 }
  0x89   : > { %s408_s9 = sadd.s32 %s3506_s8, %s4963_s30  ;;  %s401_s22 = scalar_lea.vmem [#allocation2], %s3355_s23 }
  0x8a   : > { %s3359_s7 = sshll.u32 %s408_s9, 6  ;;  %s411_s16 = sshll.u32 %s401_s22, 4  ;;  %s412_s16 = int_to_ptr.vmem [resolvable:$true] %s411_s16 }
  0x8b   : > { %s5965_s0 = sld [smem:[#allocation59_spill]]  ;;  %p5966_p1 = scmp.lt.s32.totalorder %s4733_s26, 4 }
  0x8c   : > { %s398_s4 = scalar_lea.sflag [#allocation3], %s397_s28  ;;  %s4530_s6 = scalar_lea.vmem %s412_s16, 1024 }
  0x8d   : > { %p5060_p12 = pnand %p5966_p1, %p5032_p0  ;;  %p4531_p10 = scmp.ne.s32.totalorder %s412_s16, %s4530_s6 }
  0x8e   : > { %s4742_s8 = smov [#allocation2]  }
  0x8f   : > { %p4519_p6 = pneg %p5060_p12  ;;  %s4535_s23 = sshll.u32 %s4742_s8, 4  ;;  %s4536_s23 = int_to_ptr.vmem [resolvable:$false] %s4535_s23 }
  0x90   : > { %s4537_s9 = scalar_lea.vmem %s4536_s23, 2048  ;;  %p4538_p8 = scmp.lt.s32.totalorder %s412_s16, %s4536_s23 }
  0x91   : > { %s410_s12 = scalar_lea.hbm %s5965_s0, %s3359_s7  ;;  %p4533_p2 = pnand %p4531_p10, %p4519_p6 }
  0x92   : > { %p4539_p9 = scmp.lt.s32.totalorder %s4537_s9, %s4530_s6 }
  0x93   : > { %p4534_p4 = pneg %p4533_p2 }
  0x94   : > { %p4540_p7 = por %p4539_p9, %p4538_p8 }
  0x96   : > { %p4541_p5 = pnand %p4540_p7, %p4534_p4 }
  0x98   : > { %4544 = shalt.err (!%p4541_p5)
}
  0x99   : > { %s5968_s14 = sld [smem:[#allocation33_spill]]  ;;  %p5974_p5 = scmp.lt.s32.totalorder %s4955_s2, 15 }
  0x9a   : > { %s5969_s28 = sld [smem:[#allocation23_spill]]  ;;  %p5975_p6 = scmp.eq.s32.totalorder %s4733_s26, 0 }
  0x9b   : > { %s5970_s7 = sld [smem:[#allocation22_spill]]  ;;  %s6083_s2 = smov (!%p5974_p5, %s4955_s2), 15 }
  0x9c   : > { %s5971_s22 = sld [smem:[#allocation21_spill]]  ;;  %p5977_p4 = scmp.eq.s32.totalorder %s4873_s27, 0 }
  0x9d   : > { %s5972_s10 = sld [smem:[#allocation32_spill]] }
  0x9e   : > { %4130 = dma.hbm_to_vmem [thread:$0]  (!%p5060_p12), %s410_s12, 1024, %s412_s16, %s398_s4, %s5956_s25, %s5956_s25, %s5955_s17  }
  0x9f   : > { %p5973_p0 = scmp.lt.s32.totalorder %s5968_s14, 15  ;;  %p5980_p12 = scmp.lt.s32.totalorder %s4733_s26, 4 }
  0xa0   : > { %s124_s1 = sadd.s32 1, %s5969_s28  ;;  %s450_s16 = sand.u32 1, %s5969_s28  }
  0xa1   : > { %s6081_s14 = smov (!%p5973_p0, %s5968_s14), 15  ;;  %p131_p7 = scmp.ne.s32.totalorder %s5969_s28, %s5970_s7 }
  0xa2   : > { %s120_s6 = ssub.s32 %s6081_s14, %s6083_s2  ;;  %p137_p1 = scmp.ne.s32.totalorder %s5970_s7, %s5971_s22 }
  0xa3   : > { %s121_s11 = sor.u32 %s120_s6, %s5972_s10  ;;  %p5085_p10 = por %p131_p7, %p5975_p6 }
  0xa4   : > { %p122_p2 = scmp.eq.s32.totalorder %s121_s11, 0  ;;  %p5091_p8 = por %p137_p1, %p5977_p4 }
  0xa5   : > { %s3368_s12 = sshll.u32 %s6081_s14, 1  ;;  %s3366_s2 = sshll.u32 %s450_s16, 3 }
  0xa6   : > { %s5978_s4 = scalar_select %p5091_p8, 1, 0 }
  0xa7   : > { %s6085_s28 = smov (!%p122_p2, %s5969_s28), %s124_s1  ;;  %s462_s23 = sadd.s32 %s3368_s12, %s4963_s30 }
  0xa8   : > { %s3370_s9 = sshll.u32 %s462_s23, 6  ;;  %s5979_s10 = sld [smem:[#allocation61_spill]] }
  0xa9   : > { %s452_s0 = scalar_lea.vmem [#allocation7], %s3366_s2  ;;  %p5107_p9 = pnand %p5980_p12, %p5085_p10 }
  0xaa   : > { %s465_s24 = sshll.u32 %s452_s0, 4  ;;  %s4743_s30 = smov [#allocation7]   ;;  %s466_s24 = int_to_ptr.vmem [resolvable:$true] %s465_s24 }
  0xab   : > { %p4547_p0 = pneg %p5107_p9  ;;  %s4558_s14 = scalar_lea.vmem %s466_s24, 128 }
  0xac   : > { %p4559_p5 = scmp.ne.s32.totalorder %s466_s24, %s4558_s14  ;;  %s4563_s1 = sshll.u32 %s4743_s30, 4  ;;  %s4564_s1 = int_to_ptr.vmem [resolvable:$false] %s4563_s1 }
  0xad   : > { %s4565_s16 = scalar_lea.vmem %s4564_s1, 256  ;;  %p4566_p6 = scmp.lt.s32.totalorder %s466_s24, %s4564_s1 }
  0xae   : > { %s464_s6 = scalar_lea.hbm %s5979_s10, %s3370_s9  ;;  %p4561_p7 = pnand %p4559_p5, %p4547_p0 }
  0xaf   : > { %p4567_p2 = scmp.lt.s32.totalorder %s4565_s16, %s4558_s14 }
  0xb0   : > { %p4562_p1 = pneg %p4561_p7 }
  0xb1   : > { %p4568_p4 = por %p4567_p2, %p4566_p6 }
  0xb3   : > { %p4569_p8 = pnand %p4568_p4, %p4562_p1 }
  0xb5   : > { %4572 = shalt.err (!%p4569_p8)
}
  0xb6   : > { %4136 = dma.hbm_to_vmem [thread:$0]  (!%p5107_p9), %s464_s6, 128, %s466_s24, %s4981_s29, %s5956_s25, %s5956_s25, %s5955_s17  }
  0xb7   : > { %477 = sbr.rel (%p4878_p3) target bundleno = 1039 (0x40f), region = 60 }
  0xbc   : > { %s5122_s8 = sand.u32 1, %s4709_s20  }
  0xbd   : > { %s3372_s12 = sshll.u32 %s5122_s8, 6  ;;  %s480_s2 = scalar_lea.sflag [#allocation3], %s5122_s8 }
  0xbe   : > { %s5126_s23 = scalar_lea.vmem [#allocation2], %s3372_s12 }
  0xbf   : > { %4656 = dma.done.wait (%p5038_p13), %s480_s2, 1024  }
  0xc0   : > { %4658 = vsyncadd (%p5038_p13), %s480_s2, 4294966272  ;;  %s5983_s24 = sld [smem:[#allocation24_spill]]  ;;  %s488_s17 = sand.u32 1, %s4873_s27  }
  0xc1   : > { %s489_s7 = scalar_lea.sflag [#allocation6], %s488_s17 }
  0xc6   : > { %s490_s25 = sand.u32 1, %s5983_s24  }
  0xc7   : > { %s3373_s9 = sshll.u32 %s490_s25, 3 }
  0xc8   : > { %s492_s22 = scalar_lea.vmem [#allocation5], %s3373_s9 }
  0xc9   : > { %4660 = dma.done.wait (%p4951_p11), %s489_s7, 128  }
  0xca   : > { %4662 = vsyncadd (%p4951_p11), %s489_s7, 4294967168  ;;  %s5985_s10 = sld [smem:[#allocation22_spill]]  ;;  %p5986_p3 = scmp.ne.s32.totalorder %s5978_s4, 0 }
  0xd0   : > { %s499_s6 = sand.u32 1, %s5985_s10  }
  0xd1   : > { %s5139_s11 = sshll.u32 %s499_s6, 3 }
  0xd2   : > { %s501_s5 = scalar_lea.vmem [#allocation7], %s5139_s11 }
  0xd3   : > { %4664 = dma.done.wait (%p5986_p3), %s489_s7, 128  }
  0xd4   : > { %4666 = vsyncadd (%p5986_p3), %s489_s7, 4294967168  ;;  %p5987_p13 = scmp.eq.s32.totalorder %s4873_s27, 0 }
  0xd6   : > { %4668 = dma.done.wait (%p5987_p13), [#allocation9], 10240   ;;  %p5988_p10 = pmov %p5987_p13 }
  0xd8   : > { %4670 = vsyncadd (%p5988_p10), [#allocation9], 4294957056  ;;  %p5989_p11 = pmov %p5988_p10 }
  0xd9   : > { %p5990_p8 = pmov %p5988_p10 }
  0xda   : > { %4672 = dma.done.wait (%p5989_p11), [#allocation12], 2048  }
  0xdb   : > { %4674 = vsyncadd (%p5990_p8), [#allocation12], 4294965248  ;;  %v4271_v0 = vld [vmem:[#allocation8 + $0x38] sm:$0xff]   ;;  %v4272_v1 = vld [vmem:[#allocation8 + $0x30] sm:$0xff]   ;;  %s5991_s27 = sld [smem:[#allocation25_spill]]  ;;  %vm1141_vm3 = vcmask 1047552  }
  0xdc   : > { %3702 = vmatprep.subr.bf16.mxu0 %v4271_v0  ;;  %v4273_v2 = vld [vmem:[#allocation8 + $0x28] sm:$0xff]   ;;  %v4274_v3 = vld [vmem:[#allocation8 + $0x20] sm:$0xff]   ;;  %v4275_v5 = vld [vmem:[#allocation8 + $0x18] sm:$0xff]   ;;  %s5992_s1 = sld [smem:[#allocation66_spill]]  ;;  %vm1142_vm4 = vsmask.f32 7424 }
  0xdd   : > { %3703 = vmatpush3.bf16.msra.mxu0 %v4271_v0  ;;  %v4279_v4 = vld [vmem:[%s492_s22] sm:$0xff]   ;;  %v4276_v6 = vld [vmem:[#allocation8 + $0x10] sm:$0xff]   ;;  %v4289_v7 = vld [vmem:[#allocation10 + $0x78] sm:$0xff]   ;;  %vm1098_vm6 = vcmask 1040384   ;;  %vm1099_vm7 = vsmask.f32 256 }
  0xde   : > { %3704 = vmatprep.subr.bf16.mxu0 %v4272_v1  ;;  %3718 = vmatprep.mubr.bf16.mxu0 %v4279_v4  ;;  %v4290_v8 = vld [vmem:[#allocation10 + $0x70] sm:$0xff]   ;;  %v4277_v9 = vld [vmem:[#allocation8 + $0x8] sm:$0xff]   ;;  %v4278_v11 = vld [vmem:[#allocation8] sm:$0xff]   ;;  %s6024_s2 = sld [smem:[#allocation67_spill]]  ;;  %s3379_s17 = sshll.u32 %s5122_s8, 7 }
  0xdf   : > { %3738 = vmatprep.subr.bf16.mxu1 %v4289_v7  ;;  %v4291_v10 = vld [vmem:[#allocation10 + $0x68] sm:$0xff]   ;;  %v4293_v12 = vld [vmem:[#allocation10 + $0x60] sm:$0xff]   ;;  %v4292_v13 = vld [vmem:[#allocation10 + $0xb8] sm:$0xff]   ;;  %s6048_s29 = sld [smem:[#allocation68_spill]]  ;;  %s5769_s25 = scalar_lea.vmem [#allocation14], %s3379_s17 }
  0xe0   : > { %3739 = vmatpush3.bf16.msra.mxu1 %v4289_v7  ;;  %v4280_v14 = vld [vmem:[%s5126_s23] sm:$0xff]   ;;  %v4295_v15 = vld [vmem:[#allocation10 + $0x58] sm:$0xff]   ;;  %v4281_v16 = vld [vmem:[%s5126_s23 + $0x8] sm:$0xff]   ;;  %s6049_s9 = sld [smem:[#allocation26_spill]]  ;;  %s3164_s11 = sshll.u32 %s5769_s25, 4  ;;  %s5807_s11 = int_to_ptr.vmem [resolvable:$true] %s3164_s11 }
  0xe1   : > { %3705 = vmatpush3.bf16.msra.mxu0 %v4272_v1  ;;  %3740 = vmatprep.subr.bf16.mxu1 %v4290_v8  ;;  %v4294_v17 = vld [vmem:[#allocation10 + $0xb0] sm:$0xff]   ;;  %v4296_v18 = vld [vmem:[#allocation10 + $0xa8] sm:$0xff]   ;;  %v4283_v20 = vld [vmem:[%s5126_s23 + $0x18] sm:$0xff]   ;;  %p880_p12 = scmp.eq.s32.totalorder %s5991_s27, 0  ;;  %p924_p9 = scmp.eq.s32.totalorder %s5991_s27, 1 }
  0xe2   : > { %3706 = vmatprep.subr.bf16.mxu0 %v4273_v2  ;;  %v4282_v19 = vld [vmem:[%s5126_s23 + $0x10] sm:$0xff]   ;;  %v4284_v21 = vld [vmem:[%s5126_s23 + $0x20] sm:$0xff]   ;;  %v4285_v22 = vld [vmem:[%s5126_s23 + $0x28] sm:$0xff]   ;;  %s3507_s7 = sshll.u32 %s5991_s27, 4  ;;  %s3148_s30 = scalar_lea.sflag [#allocation4], %s5122_s8 }
  0xe3   : > { %v4286_v23 = vld [vmem:[%s5126_s23 + $0x30] sm:$0xff]   ;;  %v4287_v24 = vld [vmem:[%s5126_s23 + $0x38] sm:$0xff]   ;;  %v4298_v27 = vld [vmem:[#allocation10 + $0xa0] sm:$0xff]   ;;  %s881_s4 = scalar_select %p880_p12, 1, 0 }
  0xe4   : > { %3741 = vmatpush3.bf16.msra.mxu1 %v4290_v8  ;;  %v4288_v25 = vld [vmem:[%s501_s5] sm:$0xff]   ;;  %v4299_v28 = vld [vmem:[#allocation10 + $0x48] sm:$0xff]   ;;  %v4301_v30 = vld [vmem:[#allocation10 + $0x40] sm:$0xff]   ;;  %s5256_s16 = scalar_select %p924_p9, 1, 0 }
  0xe5   : > { %3707 = vmatpush3.bf16.msra.mxu0 %v4273_v2  ;;  %3742 = vmatprep.subr.bf16.mxu1 %v4291_v10  ;;  %v4297_v26 = vld [vmem:[#allocation10 + $0x50] sm:$0xff]   ;;  %v4300_v29 = vld [vmem:[#allocation10 + $0x98] sm:$0xff]   ;;  %v4304_v33 = vld [vmem:[#allocation10 + $0x88] sm:$0xff]   ;;  %v882_v41 = vstv %s881_s4  ;;  %s6050_s4 = sld [smem:[#allocation69_spill]]  ;;  %p6051_p5 = scmp.ne.s32.totalorder %s5963_s3, 0 }
  0xe6   : > { %3708 = vmatprep.subr.bf16.mxu0 %v4274_v3  ;;  %v4302_v31 = vld [vmem:[#allocation10 + $0x90] sm:$0xff]   ;;  %v4303_v32 = vld [vmem:[#allocation10 + $0x38] sm:$0xff]   ;;  %v4306_v34 = vld [vmem:[#allocation10 + $0x80] sm:$0xff]   ;;  %vm5176_vm0 = vcmp.eq.s32.totalorder %v882_v41, 1  ;;  %s3502_s22 = sshll.u32 %s6049_s9, 5 }
  0xe7   : > { %v5164_v35 = vld [vmem:[#allocation10 + $0x138] sm:$0xff]   ;;  %v5171_v37 = vld [vmem:[%s5992_s1] ss:$0 sm:$0xff]  ;;  %vm3407_vm1 = vmneg %vm5176_vm0  ;;  %s3161_s10 = sadd.s32 %s3507_s7, %s3502_s22  ;;  %s4573_s1 = scalar_lea.vmem %s5807_s11, 2048 }
  0xe8   : > { %3743 = vmatpush3.bf16.msra.mxu1 %v4291_v10  ;;  %vm3409_vm2 = vmpackc.low %vm3407_vm1, %vm3407_vm1  ;;  %v4305_v63 = vld [vmem:[#allocation10 + $0x30] sm:$0xff]   ;;  %s3503_s6 = sshll.u32 %s3161_s10, 7  ;;  %p4574_p0 = scmp.ne.s32.totalorder %s5807_s11, %s4573_s1 }
  0xe9   : > { %3709 = vmatpush3.bf16.msra.mxu0 %v4274_v3  ;;  %3744 = vmatprep.subr.bf16.mxu1 %v4293_v12  ;;  %vm5214_vm5 = vmand %vm1141_vm3, %vm1142_vm4 }
  0xea   : > { %3710 = vmatprep.subr.bf16.mxu0 %v4275_v5  ;;  %vm5307_vm9 = vmand %vm1098_vm6, %vm1099_vm7  ;;  %p4575_p7 = pnand %p4574_p0, %p6051_p5 }
  0xeb   : > { %s5805_s14 = scalar_lea.hbm %s6050_s4, %s3503_s6 }
  0xec   : > { %3745 = vmatpush3.bf16.msra.mxu1 %v4293_v12  ;;  %p4576_p1 = pneg %p4575_p7 }
  0xed   : > { %3711 = vmatpush3.bf16.msra.mxu0 %v4275_v5  ;;  %3746 = vmatprep.subr.bf16.mxu1 %v4295_v15 }
  0xee   : > { %3712 = vmatprep.subr.bf16.mxu0 %v4276_v6 }
  0xf0   : > { %3747 = vmatpush3.bf16.msra.mxu1 %v4295_v15 }
  0xf1   : > { %3713 = vmatpush3.bf16.msra.mxu0 %v4276_v6  ;;  %3748 = vmatprep.subr.bf16.mxu1 %v4297_v26 }
  0xf2   : > { %3714 = vmatprep.subr.bf16.mxu0 %v4277_v9 }
  0xf4   : > { %3749 = vmatpush3.bf16.msra.mxu1 %v4297_v26  ;;  %v4310_v26 = vld [vmem:[#allocation10 + $0x130] sm:$0xff]  }
  0xf5   : > { %3715 = vmatpush3.bf16.msra.mxu0 %v4277_v9  ;;  %3750 = vmatprep.subr.bf16.mxu1 %v4299_v28 }
  0xf6   : > { %3716 = vmatprep.subr.bf16.mxu0 %v4278_v11 }
  0xf8   : > { %3751 = vmatpush3.bf16.msra.mxu1 %v4299_v28 }
  0xf9   : > { %3717 = vmatpush3.bf16.msra.mxu0 %v4278_v11  ;;  %3752 = vmatprep.subr.bf16.mxu1 %v4301_v30 }
  0xfa   : > { %3802 = vmatprep.subr.bf16.mxu0 %v4292_v13 }
  0xfc   : > { %3719 = vmatmul.mubr.bf16.vlgmr.msra.gmra.mxu0 %v4280_v14  ;;  %3753 = vmatpush3.bf16.msra.mxu1 %v4301_v30 }
  0xfd   : > { %3722 = vmatprep.mubr.bf16.mxu0 %v4281_v16  ;;  %3803 = vmatpush3.bf16.msra.mxu0 %v4292_v13  ;;  %v4307_v13 = vld [vmem:[#allocation10 + $0x28] sm:$0xff]  }
  0xfe   : > { %3804 = vmatprep.subr.bf16.mxu0 %v4294_v17  ;;  %3770 = vmatprep.subr.bf16.mxu1 %v4303_v32 }
 0x101   : > { %3805 = vmatpush3.bf16.msra.mxu0 %v4294_v17 }
 0x102   : > { %3806 = vmatprep.subr.bf16.mxu0 %v4296_v18 }
 0x104   : > { %3723 = vmatmul.mubr.bf16.gmra.mxu0 %v4282_v19  ;;  %v4361_v19 = vld [vmem:[#allocation13 + $0x38] sm:$0xff]  }
 0x105   : > { %3726 = vmatprep.mubr.bf16.mxu0 %v4283_v20  ;;  %3807 = vmatpush3.bf16.msra.mxu0 %v4296_v18 }
 0x106   : > { %3808 = vmatprep.subr.bf16.mxu0 %v4298_v27 }
 0x109   : > { %3809 = vmatpush3.bf16.msra.mxu0 %v4298_v27 }
 0x10a   : > { %3810 = vmatprep.subr.bf16.mxu0 %v4300_v29 }
 0x10c   : > { %3727 = vmatmul.mubr.bf16.gmra.mxu0 %v4284_v21 }
 0x10d   : > { %3730 = vmatprep.mubr.bf16.mxu0 %v4285_v22  ;;  %3811 = vmatpush3.bf16.msra.mxu0 %v4300_v29 }
 0x10e   : > { %3812 = vmatprep.subr.bf16.mxu0 %v4302_v31 }
 0x111   : > { %3813 = vmatpush3.bf16.msra.mxu0 %v4302_v31 }
 0x112   : > { %3814 = vmatprep.subr.bf16.mxu0 %v4304_v33 }
 0x114   : > { %3731 = vmatmul.mubr.bf16.gmra.mxu0 %v4286_v23 }
 0x115   : > { %3734 = vmatprep.mubr.bf16.mxu0 %v4287_v24  ;;  %3815 = vmatpush3.bf16.msra.mxu0 %v4304_v33 }
 0x116   : > { %3816 = vmatprep.subr.bf16.mxu0 %v4306_v34 }
 0x119   : > { %3817 = vmatpush3.bf16.msra.mxu0 %v4306_v34 }
 0x11a   : > { %3866 = vmatprep.subr.bf16.mxu0 %v5164_v35 }
 0x11c   : > { %3735 = vmatmul.mubr.bf16.gmra.mxu0 %v4288_v25  ;;  %v4309_v25 = vld [vmem:[#allocation10 + $0x20] sm:$0xff]  }
 0x1bc   : > { %v3720_v36 = vpop.f32.mrf.mxu0 }
 0x1bd   : > { %v769_v39 = vadd.f32 %v3720_v36, %v5171_v37 }
 0x1be   : > { %v760_v38 = vpop.f32.mrf.mxu0 }
 0x1bf   : > { %v761_v40 = vadd.f32 %v5171_v37, %v760_v38  ;;  %v970_v46 = vmax.f32 %v769_v39, 0.0 }
 0x1c0   : > { %v3721_v42 = vpop.f32.mrf.mxu0 }
 0x1c1   : > { %v772_v43 = vadd.f32 %v3721_v42, %v5171_v37  ;;  %v968_v47 = vmax.f32 %v761_v40, 0.0 }
 0x1c2   : > { %v763_v45 = vpop.f32.mrf.mxu0 }
 0x1c3   : > { %v971_v48 = vmax.f32 %v772_v43, 0.0  ;;  %v764_v49 = vadd.f32 %v5171_v37, %v763_v45  ;;  %v988_v54 = vsel %vm5176_vm0, 0.0, %v968_v47 }
 0x1c4   : > { %v3724_v50 = vpop.f32.mrf.mxu0 }
 0x1c5   : > { %v5183_v51 = vpack.c.bf16 %v971_v48, %v970_v46  ;;  %v969_v52 = vmax.f32 %v764_v49, 0.0  ;;  %v785_v57 = vadd.f32 %v3724_v50, %v5171_v37  ;;  %v4311_v46 = vld [vmem:[#allocation10 + $0x18] sm:$0xff]  }
 0x1c6   : > { %v776_v53 = vpop.f32.mrf.mxu0 }
 0x1c7   : > { %v1029_v55 = vshll.u32 %v5183_v51, 16  ;;  %v989_v56 = vsel %vm5176_vm0, 0.0, %v969_v52  ;;  %v3410_v60 = vpack.c.bf16 %v969_v52, %v968_v47  ;;  %v777_v61 = vadd.f32 %v5171_v37, %v776_v53  ;;  %v4312_v47 = vld [vmem:[#allocation10 + $0x128] sm:$0xff]  }
 0x1c8   : > { %v5191_v58 = vpack.c.bf16 %v989_v56, %v988_v54  ;;  %v3725_v59 = vpop.f32.mrf.mxu0  ;;  %v974_v3 = vmax.f32 %v785_v57, 0.0  ;;  %v1026_v9 = vshrl.u32 %v5183_v51, 16  ;;  %v4313_v56 = vld [vmem:[#allocation10 + $0x10] sm:$0xff]   ;;  %v4314_v57 = vld [vmem:[#allocation10 + $0x120] sm:$0xff]  }
 0x1c9   : > { %v788_v62 = vadd.f32 %v3725_v59, %v5171_v37  ;;  %3754 = vmatprep.mubr.msk.bf16.mxu1 %vm3409_vm2, %v3410_v60  ;;  %v1113_v2 = vrot.slane %v1029_v55, 1  ;;  %v972_v10 = vmax.f32 %v777_v61, 0.0 }
 0x1ca   : > { %v1022_v0 = vshll.u32 %v5191_v58, 16  ;;  %v779_v1 = vpop.f32.mrf.mxu0  ;;  %3755 = vmatmul.mubr.bf16.vlgmr.msra.gmra.mxu1 %v5183_v51  ;;  %v1019_v7 = vshrl.u32 %v5191_v58, 16 }
 0x1cb   : > { %v975_v4 = vmax.f32 %v788_v62, 0.0  ;;  %v780_v5 = vadd.f32 %v5171_v37, %v779_v1  ;;  %3771 = vmatpush3.bf16.msra.mxu1 %v4303_v32  ;;  %v1114_v17 = vor.u32 %v1113_v2, %v1026_v9 }
 0x1cc   : > { %v3728_v6 = vpop.f32.mrf.mxu0  ;;  %v1111_v8 = vrot.slane %v1022_v0, 1  ;;  %3772 = vmatprep.subr.bf16.mxu1 %v4305_v63  ;;  %v1021_v1 = vrot.slane %v1019_v7, 7 }
 0x1cd   : > { %v5204_v11 = vpack.c.bf16 %v975_v4, %v974_v3  ;;  %v973_v12 = vmax.f32 %v780_v5, 0.0  ;;  %v801_v14 = vadd.f32 %v3728_v6, %v5171_v37  ;;  %v5227_v30 = vsel %vm5214_vm5, %v1114_v17, 0  ;;  %v4316_v17 = vld [vmem:[#allocation10 + $0x118] sm:$0xff]  }
 0x1ce   : > { %v792_v15 = vpop.f32.mrf.mxu0  ;;  %v1112_v16 = vor.u32 %v1111_v8, %v1019_v7 }
 0x1cf   : > { %v5211_v18 = vpack.c.bf16 %v973_v12, %v972_v10  ;;  %3773 = vmatpush3.bf16.msra.mxu1 %v4305_v63  ;;  %v1043_v22 = vshll.u32 %v5204_v11, 16  ;;  %v793_v23 = vadd.f32 %v5171_v37, %v792_v15  ;;  %v978_v28 = vmax.f32 %v801_v14, 0.0  ;;  %v4315_v15 = vld [vmem:[#allocation10 + $0x8] sm:$0xff]  }
 0x1d0   : > { %v3729_v20 = vpop.f32.mrf.mxu0  ;;  %v1144_v21 = vsel %vm5214_vm5, %v1112_v16, 0  ;;  %3774 = vmatprep.subr.bf16.mxu1 %v4307_v13  ;;  %v1040_v39 = vshrl.u32 %v5204_v11, 16  ;;  %v926_v10 = vstv %s5256_s16  ;;  %s4744_s16 = smov [#allocation14]  }
 0x1d1   : > { %v804_v24 = vadd.f32 %v3729_v20, %v5171_v37  ;;  %3758 = vmatprep.mubr.bf16.mxu1 %v5211_v18  ;;  %v1036_v27 = vshll.u32 %v5211_v18, 16  ;;  %3818 = vmatprep.mubr.bf16.mxu0 %v1144_v21  ;;  %v1117_v31 = vrot.slane %v1043_v22, 1  ;;  %v1033_v34 = vshrl.u32 %v5211_v18, 16  ;;  %s4577_s0 = sshll.u32 %s4744_s16, 4  ;;  %s4578_s0 = int_to_ptr.vmem [resolvable:$false] %s4577_s0 }
 0x1d2   : > { %v795_v29 = vpop.f32.mrf.mxu0  ;;  %3759 = vmatmul.mubr.bf16.gmra.mxu1 %v5204_v11  ;;  %3819 = vmatmul.mubr.bf16.vlgmr.msra.gmra.mxu0 %v5227_v30  ;;  %v976_v40 = vmax.f32 %v793_v23, 0.0  ;;  %v1024_v20 = vor.u32 %v1022_v0, %v1021_v1  ;;  %vm5299_vm8 = vcmp.eq.s32.totalorder %v926_v10, 1  ;;  %s4579_s12 = scalar_lea.vmem %s4578_s0, 4096  ;;  %p4580_p6 = scmp.lt.s32.totalorder %s5807_s11, %s4578_s0 }
 0x1d3   : > { %v979_v32 = vmax.f32 %v804_v24, 0.0  ;;  %v796_v33 = vadd.f32 %v5171_v37, %v795_v29  ;;  %v1115_v36 = vrot.slane %v1036_v27, 1  ;;  %3775 = vmatpush3.bf16.msra.mxu1 %v4307_v13  ;;  %3867 = vmatpush3.bf16.msra.mxu0 %v5164_v35  ;;  %v1118_v35 = vor.u32 %v1117_v31, %v1040_v39  ;;  %v4317_v31 = vld [vmem:[#allocation10] sm:$0xff]   ;;  %v4357_v29 = vld [vmem:[#allocation10 + $0x1d8] sm:$0xff]   ;;  %vm3468_vm10 = vmneg %vm5299_vm8  ;;  %p4581_p2 = scmp.lt.s32.totalorder %s4579_s12, %s4573_s1 }
 0x1d4   : > { %v3732_v38 = vpop.f32.mrf.mxu0  ;;  %3776 = vmatprep.subr.bf16.mxu1 %v4309_v25  ;;  %3868 = vmatprep.subr.bf16.mxu0 %v4310_v26  ;;  %vm3470_vm11 = vmpackc.low %vm3468_vm10, %vm3468_vm10 }
 0x1d5   : > { %v5240_v41 = vpack.c.bf16 %v979_v32, %v978_v28  ;;  %v977_v42 = vmax.f32 %v796_v33, 0.0  ;;  %v1116_v43 = vor.u32 %v1115_v36, %v1033_v34  ;;  %v817_v44 = vadd.f32 %v3732_v38, %v5171_v37  ;;  %v4367_v28 = vld [vmem:[#allocation11 + $0x28] sm:$0xff]   ;;  %p4582_p4 = por %p4581_p2, %p4580_p6 }
 0x1d6   : > { %v808_v45 = vpop.f32.mrf.mxu0  ;;  %v5265_v62 = vsel %vm5214_vm5, %v1118_v35, 0  ;;  %v1028_v33 = vrot.slane %v1026_v9, 7 }
 0x1d7   : > { %v5247_v48 = vpack.c.bf16 %v977_v42, %v976_v40  ;;  %v5251_v49 = vsel %vm5214_vm5, %v1116_v43, 0  ;;  %3777 = vmatpush3.bf16.msra.mxu1 %v4309_v25  ;;  %3869 = vmatpush3.bf16.msra.mxu0 %v4310_v26  ;;  %v1057_v52 = vshll.u32 %v5240_v41, 16  ;;  %v809_v53 = vadd.f32 %v5171_v37, %v808_v45  ;;  %v4318_v42 = vld [vmem:[#allocation10 + $0x110] sm:$0xff]   ;;  %p4583_p3 = pnand %p4582_p4, %p4576_p1 }
 0x1d8   : > { %v3733_v50 = vpop.f32.mrf.mxu0  ;;  %3822 = vmatprep.mubr.bf16.mxu0 %v5251_v49  ;;  %v982_v60 = vmax.f32 %v817_v44, 0.0  ;;  %3778 = vmatprep.subr.bf16.mxu1 %v4311_v46  ;;  %v1054_v6 = vshrl.u32 %v5240_v41, 16  ;;  %v1101_v40 = vsel %vm5307_vm9, 0, %v1024_v20  ;;  %v1035_v44 = vrot.slane %v1033_v34, 7  ;;  %v4324_v20 = vld [vmem:[#allocation10 + $0x1b8] sm:$0xff]  }
 0x1d9   : > { %v820_v54 = vadd.f32 %v3733_v50, %v5171_v37  ;;  %3762 = vmatprep.mubr.bf16.mxu1 %v5247_v48  ;;  %v1050_v59 = vshll.u32 %v5247_v48, 16  ;;  %3870 = vmatprep.subr.bf16.mxu0 %v4312_v47  ;;  %v1121_v63 = vrot.slane %v1057_v52, 1  ;;  %v1047_v4 = vshrl.u32 %v5247_v48, 16  ;;  %v4319_v50 = vld [vmem:[#allocation10 + $0xf8] sm:$0xff]  }
 0x1da   : > { %v811_v61 = vpop.f32.mrf.mxu0  ;;  %3763 = vmatmul.mubr.bf16.gmra.mxu1 %v5240_v41  ;;  %3823 = vmatmul.mubr.bf16.gmra.mxu0 %v5265_v62  ;;  %v980_v7 = vmax.f32 %v809_v53, 0.0  ;;  %v1031_v53 = vor.u32 %v1029_v55, %v1028_v33  ;;  %v1056_v33 = vrot.slane %v1054_v6, 7 }
 0x1db   : > { %v983_v2 = vmax.f32 %v820_v54, 0.0  ;;  %v812_v3 = vadd.f32 %v5171_v37, %v811_v61  ;;  %v1119_v5 = vrot.slane %v1050_v59, 1  ;;  %3779 = vmatpush3.bf16.msra.mxu1 %v4311_v46  ;;  %3871 = vmatpush3.bf16.msra.mxu0 %v4312_v47  ;;  %v1122_v16 = vor.u32 %v1121_v63, %v1054_v6 }
 0x1dc   : > { %v3736_v8 = vpop.f32.mrf.mxu0  ;;  %3780 = vmatprep.subr.bf16.mxu1 %v4313_v56  ;;  %3872 = vmatprep.subr.bf16.mxu0 %v4314_v57  ;;  %v1038_v63 = vor.u32 %v1036_v27, %v1035_v44  ;;  %v1042_v27 = vrot.slane %v1040_v39, 7  ;;  %v4323_v39 = vld [vmem:[#allocation10 + $0xe8] sm:$0xff]   ;;  %v1059_v6 = vor.u32 %v1057_v52, %v1056_v33  ;;  %v4330_v52 = vld [vmem:[#allocation10 + $0x1a0] sm:$0xff]  }
 0x1dd   : > { %v5279_v12 = vpack.c.bf16 %v983_v2, %v982_v60  ;;  %v981_v13 = vmax.f32 %v812_v3, 0.0  ;;  %v1120_v14 = vor.u32 %v1119_v5, %v1047_v4  ;;  %v5288_v21 = vadd.f32 %v3736_v8, %v5171_v37  ;;  %v4321_v5 = vld [vmem:[#allocation10 + $0xf0] sm:$0xff]   ;;  %v4322_v8 = vld [vmem:[#allocation10 + $0x100] sm:$0xff]   ;;  %v4328_v44 = vld [vmem:[#allocation10 + $0x1a8] sm:$0xff]  }
 0x1de   : > { %v5290_v23 = vpop.f32.mrf.mxu0  ;;  %v5319_v38 = vsel %vm5214_vm5, %v1122_v16, 0  ;;  %v5357_v2 = vsel %vm5307_vm9, 0, %v1031_v53  ;;  %v4347_v33 = vld [vmem:[#allocation10 + $0x148] sm:$0xff]  }
 0x1df   : > { %v5292_v24 = vpack.c.bf16 %v981_v13, %v980_v7  ;;  %v5296_v25 = vsel %vm5214_vm5, %v1120_v14, 0  ;;  %v1071_v26 = vshll.u32 %v5279_v12, 16  ;;  %3781 = vmatpush3.bf16.msra.mxu1 %v4313_v56  ;;  %3873 = vmatpush3.bf16.msra.mxu0 %v4314_v57  ;;  %v986_v58 = vmax.f32 %v5288_v21, 0.0  ;;  %v4320_v57 = vld [vmem:[#allocation10 + $0x108] sm:$0xff]   ;;  %v4366_v21 = vld [vmem:[#allocation13 + $0x20] sm:$0xff]  }
 0x1e0   : > { %v3737_v0 = vpop.f32.mrf.mxu0  ;;  %3826 = vmatprep.mubr.bf16.mxu0 %v5296_v25  ;;  %3782 = vmatprep.subr.bf16.mxu1 %v4315_v15  ;;  %v1068_v34 = vshrl.u32 %v5279_v12, 16  ;;  %v5369_v13 = vsel %vm5307_vm9, 0, %v1038_v63  ;;  %v1049_v14 = vrot.slane %v1047_v4, 7  ;;  %v4333_v63 = vld [vmem:[#allocation10 + $0xc0] sm:$0xff]  }
 0x1e1   : > { %3766 = vmatprep.mubr.bf16.mxu1 %v5292_v24  ;;  %v1064_v32 = vshll.u32 %v5292_v24, 16  ;;  %v5315_v36 = vadd.f32 %v3737_v0, %v5171_v37  ;;  %3874 = vmatprep.subr.bf16.mxu0 %v4316_v17  ;;  %v1125_v43 = vrot.slane %v1071_v26, 1  ;;  %v1061_v9 = vshrl.u32 %v5292_v24, 16 }
 0x1e2   : > { %3767 = vmatmul.mubr.bf16.gmra.mxu1 %v5279_v12  ;;  %3827 = vmatmul.mubr.bf16.gmra.mxu0 %v5319_v38  ;;  %v1006_v46 = vsel %vm5299_vm8, 0.0, %v986_v58  ;;  %v827_v53 = vpop.f32.mrf.mxu0 }
 0x1e3   : > { %v1123_v45 = vrot.slane %v1064_v32, 1  ;;  %v987_v35 = vmax.f32 %v5315_v36, 0.0  ;;  %3783 = vmatpush3.bf16.msra.mxu1 %v4315_v15  ;;  %3786 = vmatprep.mubr.bf16.mxu1 %v1101_v40  ;;  %v1126_v56 = vor.u32 %v1125_v43, %v1068_v34  ;;  %v4326_v40 = vld [vmem:[#allocation10 + $0x1b0] sm:$0xff]   ;;  %v4327_v43 = vld [vmem:[#allocation10 + $0xd8] sm:$0xff]   ;;  %v4369_v36 = vld [vmem:[#allocation11 + $0x20] sm:$0xff]  }
 0x1e4   : > { %3875 = vmatpush3.bf16.msra.mxu0 %v4316_v17  ;;  %3784 = vmatprep.subr.bf16.mxu1 %v4317_v31  ;;  %v1045_v17 = vor.u32 %v1043_v22, %v1042_v27  ;;  %v4325_v22 = vld [vmem:[#allocation10 + $0xe0] sm:$0xff]  }
 0x1e5   : > { %v1124_v47 = vor.u32 %v1123_v45, %v1061_v9  ;;  %v1007_v54 = vsel %vm5299_vm8, 0.0, %v987_v35  ;;  %3876 = vmatprep.subr.bf16.mxu0 %v4318_v42  ;;  %v5361_v3 = vsel %vm5214_vm5, %v1126_v56, 0  ;;  %v825_v56 = vadd.f32 %v5171_v37, %v5290_v23  ;;  %v4336_v23 = vld [vmem:[#allocation10 + $0x188] sm:$0xff]   ;;  %v4338_v27 = vld [vmem:[#allocation10 + $0x180] sm:$0xff]  }
 0x1e6   : > { %v1017_v60 = vpack.c.bf16 %v1007_v54, %v1006_v46  ;;  %v4329_v46 = vld [vmem:[#allocation10 + $0xd0] sm:$0xff]   ;;  %v4332_v54 = vld [vmem:[#allocation10 + $0x198] sm:$0xff]  }
 0x1e7   : > { %v5350_v61 = vsel %vm5214_vm5, %v1124_v47, 0  ;;  %3785 = vmatpush3.bf16.msra.mxu1 %v4317_v31  ;;  %v1052_v31 = vor.u32 %v1050_v59, %v1049_v14  ;;  %v1070_v47 = vrot.slane %v1068_v34, 7  ;;  %v4342_v14 = vld [vmem:[#allocation10 + $0x230] sm:$0xff]  }
 0x1e8   : > { %3830 = vmatprep.mubr.bf16.mxu0 %v5350_v61  ;;  %v1082_v55 = vshrl.u32 %v1017_v60, 16  ;;  %v1085_v1 = vshll.u32 %v1017_v60, 16  ;;  %3877 = vmatpush3.bf16.msra.mxu0 %v4318_v42  ;;  %v1063_v42 = vrot.slane %v1061_v9, 7  ;;  %v5411_v9 = vsel %vm5307_vm9, 0, %v1059_v6  ;;  %v4350_v6 = vld [vmem:[#allocation10 + $0x210] sm:$0xff]  }
 0x1e9   : > { %3834 = vmatprep.subr.bf16.mxu1 %v4319_v50  ;;  %3878 = vmatprep.subr.bf16.mxu0 %v4320_v57  ;;  %v5399_v59 = vsel %vm5307_vm9, 0, %v1052_v31  ;;  %v1073_v34 = vor.u32 %v1071_v26, %v1070_v47  ;;  %v984_v26 = vmax.f32 %v825_v56, 0.0  ;;  %v4356_v47 = vld [vmem:[#allocation10 + $0x1e0] sm:$0xff]  }
 0x1ea   : > { %v1084_v10 = vrot.slane %v1082_v55, 7  ;;  %v1129_v7 = vrot.slane %v1085_v1, 1  ;;  %3787 = vmatmul.mubr.bf16.vlgmr.msra.gmra.mxu1 %v5357_v2  ;;  %3831 = vmatmul.mubr.bf16.gmra.mxu0 %v5361_v3  ;;  %v1066_v45 = vor.u32 %v1064_v32, %v1063_v42  ;;  %v4349_v42 = vld [vmem:[#allocation10 + $0x140] sm:$0xff]  }
 0x1eb   : > { %3835 = vmatpush3.bf16.msra.mxu1 %v4319_v50  ;;  %3790 = vmatprep.mubr.bf16.mxu1 %v5369_v13  ;;  %v4331_v50 = vld [vmem:[#allocation10 + $0xc8] sm:$0xff]   ;;  %v5430_v60 = vsel %vm5307_vm9, 0, %v1073_v34 }
 0x1ec   : > { %v5374_v15 = vor.u32 %v1085_v1, %v1084_v10  ;;  %v5376_v16 = vor.u32 %v1129_v7, %v1082_v55  ;;  %3879 = vmatpush3.bf16.msra.mxu0 %v4320_v57  ;;  %3882 = vmatprep.mubr.bf16.mxu0 %v5183_v51  ;;  %v5391_v51 = vsel %vm5307_vm9, 0, %v1045_v17  ;;  %v5419_v32 = vsel %vm5307_vm9, 0, %v1066_v45  ;;  %v4334_v55 = vld [vmem:[#allocation10 + $0x190] sm:$0xff]   ;;  %v4340_v10 = vld [vmem:[#allocation10 + $0x238] sm:$0xff]   ;;  %v4341_v7 = vld [vmem:[#allocation10 + $0x160] sm:$0xff]  }
 0x1ed   : > { %3836 = vmatprep.subr.bf16.mxu1 %v4321_v5  ;;  %3880 = vmatprep.subr.bf16.mxu0 %v4322_v8  ;;  %v828_v57 = vadd.f32 %v5171_v37, %v827_v53  ;;  %v4335_v37 = vld [vmem:[#allocation10 + $0x178] sm:$0xff]   ;;  %v4344_v17 = vld [vmem:[#allocation10 + $0x228] sm:$0xff]  }
 0x1ee   : > { %v1110_v0 = vsel %vm5307_vm9, 0, %v5374_v15  ;;  %v1153_v4 = vsel %vm5214_vm5, %v5376_v16, 0  ;;  %v4352_v45 = vld [vmem:[#allocation10 + $0x208] sm:$0xff]   ;;  %v4358_v15 = vld [vmem:[#allocation10 + $0x1d0] sm:$0xff]  }
 0x1ef   : > { %3837 = vmatpush3.bf16.msra.mxu1 %v4321_v5  ;;  %v985_v1 = vmax.f32 %v828_v57, 0.0 }
 0x1f0   : > { %3881 = vmatpush3.bf16.msra.mxu0 %v4322_v8  ;;  %3838 = vmatprep.subr.bf16.mxu1 %v4323_v39  ;;  %v4337_v8 = vld [vmem:[#allocation10 + $0x170] sm:$0xff]  }
 0x1f1   : > { %3930 = vmatprep.subr.bf16.mxu0 %v4324_v20  ;;  %v5436_v5 = vpack.c.bf16 %v985_v1, %v984_v26 }
 0x1f2   : > { %3791 = vmatmul.mubr.bf16.gmra.mxu1 %v5391_v51 }
 0x1f3   : > { %3839 = vmatpush3.bf16.msra.mxu1 %v4323_v39  ;;  %3883 = vmatmul.mubr.bf16.vlgmr.msra.gmra.mxu0 %v5211_v18  ;;  %v1075_v39 = vshrl.u32 %v5436_v5, 16 }
 0x1f4   : > { %3794 = vmatprep.mubr.bf16.mxu1 %v5399_v59  ;;  %3886 = vmatprep.mubr.bf16.mxu0 %v5204_v11 }
 0x1f5   : > { %3931 = vmatpush3.bf16.msra.mxu0 %v4324_v20  ;;  %3840 = vmatprep.subr.bf16.mxu1 %v4325_v22  ;;  %v4345_v20 = vld [vmem:[#allocation10 + $0x150] sm:$0xff]   ;;  %v1077_v31 = vrot.slane %v1075_v39, 7 }
 0x1f6   : > { %3932 = vmatprep.subr.bf16.mxu0 %v4326_v40 }
 0x1f7   : > { %3841 = vmatpush3.bf16.msra.mxu1 %v4325_v22  ;;  %v1078_v22 = vshll.u32 %v5436_v5, 16 }
 0x1f8   : > { %3842 = vmatprep.subr.bf16.mxu1 %v4327_v43 }
 0x1f9   : > { %3933 = vmatpush3.bf16.msra.mxu0 %v4326_v40  ;;  %v1080_v40 = vor.u32 %v1078_v22, %v1077_v31 }
 0x1fa   : > { %3795 = vmatmul.mubr.bf16.gmra.mxu1 %v5411_v9  ;;  %3934 = vmatprep.subr.bf16.mxu0 %v4328_v44 }
 0x1fb   : > { %3843 = vmatpush3.bf16.msra.mxu1 %v4327_v43  ;;  %3887 = vmatmul.mubr.bf16.gmra.mxu0 %v5247_v48  ;;  %v1109_v43 = vsel %vm5307_vm9, 0, %v1080_v40 }
 0x1fc   : > { %3798 = vmatprep.mubr.bf16.mxu1 %v5419_v32  ;;  %3890 = vmatprep.mubr.bf16.mxu0 %v5240_v41 }
 0x1fd   : > { %3935 = vmatpush3.bf16.msra.mxu0 %v4328_v44  ;;  %3844 = vmatprep.subr.bf16.mxu1 %v4329_v46  ;;  %v4351_v44 = vld [vmem:[#allocation10 + $0x1f8] sm:$0xff]  }
 0x1fe   : > { %3936 = vmatprep.subr.bf16.mxu0 %v4330_v52 }
 0x1ff   : > { %3845 = vmatpush3.bf16.msra.mxu1 %v4329_v46  ;;  %v4354_v46 = vld [vmem:[#allocation10 + $0x200] sm:$0xff]  }
 0x200   : > { %3846 = vmatprep.subr.bf16.mxu1 %v4331_v50 }
 0x201   : > { %3937 = vmatpush3.bf16.msra.mxu0 %v4330_v52 }
 0x202   : > { %3799 = vmatmul.mubr.bf16.gmra.mxu1 %v5430_v60  ;;  %3938 = vmatprep.subr.bf16.mxu0 %v4332_v54 }
 0x203   : > { %3847 = vmatpush3.bf16.msra.mxu1 %v4331_v50  ;;  %3891 = vmatmul.mubr.bf16.gmra.mxu0 %v5292_v24  ;;  %v4373_v50 = vld [vmem:[#allocation11 + $0x10] sm:$0xff]  }
 0x204   : > { %3850 = vmatprep.mubr.bf16.mxu1 %v5357_v2  ;;  %3894 = vmatprep.mubr.bf16.mxu0 %v5279_v12  ;;  %v4339_v2 = vld [vmem:[#allocation10 + $0x168] sm:$0xff]  }
 0x205   : > { %3939 = vmatpush3.bf16.msra.mxu0 %v4332_v54  ;;  %3848 = vmatprep.subr.bf16.mxu1 %v4333_v63  ;;  %v4374_v54 = vld [vmem:[#allocation13] sm:$0xff]  }
 0x206   : > { %3940 = vmatprep.subr.bf16.mxu0 %v4334_v55 }
 0x207   : > { %3849 = vmatpush3.bf16.msra.mxu1 %v4333_v63 }
 0x208   : > { %3898 = vmatprep.subr.bf16.mxu1 %v4335_v37 }
 0x209   : > { %3941 = vmatpush3.bf16.msra.mxu0 %v4334_v55 }
 0x20a   : > { %3851 = vmatmul.mubr.bf16.vlgmr.msra.gmra.mxu1 %v5369_v13  ;;  %3942 = vmatprep.subr.bf16.mxu0 %v4336_v23 }
 0x20b   : > { %3895 = vmatmul.mubr.bf16.gmra.mxu0 %v5436_v5  ;;  %3899 = vmatpush3.bf16.msra.mxu1 %v4335_v37  ;;  %v4378_v37 = vld [vmem:[%s5126_s23 + $0x8] sm:$0xff]  }
 0x20c   : > { %3854 = vmatprep.mubr.bf16.mxu1 %v5391_v51  ;;  %3946 = vmatprep.mubr.bf16.mxu0 %v5369_v13  ;;  %v4343_v13 = vld [vmem:[#allocation10 + $0x158] sm:$0xff]  }
 0x20d   : > { %3943 = vmatpush3.bf16.msra.mxu0 %v4336_v23  ;;  %3900 = vmatprep.subr.bf16.mxu1 %v4337_v8  ;;  %v4376_v23 = vld [vmem:[#allocation11] sm:$0xff]  }
 0x20e   : > { %3944 = vmatprep.subr.bf16.mxu0 %v4338_v27 }
 0x20f   : > { %3901 = vmatpush3.bf16.msra.mxu1 %v4337_v8 }
 0x210   : > { %3902 = vmatprep.subr.bf16.mxu1 %v4339_v2 }
 0x211   : > { %3945 = vmatpush3.bf16.msra.mxu0 %v4338_v27 }
 0x212   : > { %3855 = vmatmul.mubr.bf16.gmra.mxu1 %v5399_v59  ;;  %3994 = vmatprep.subr.bf16.mxu0 %v4340_v10 }
 0x213   : > { %3903 = vmatpush3.bf16.msra.mxu1 %v4339_v2  ;;  %3858 = vmatprep.mubr.bf16.mxu1 %v5411_v9 }
 0x214   : > { %3947 = vmatmul.mubr.bf16.vlgmr.msra.gmra.mxu0 %v5391_v51  ;;  %3904 = vmatprep.subr.bf16.mxu1 %v4341_v7  ;;  %v4346_v51 = vld [vmem:[#allocation10 + $0x220] sm:$0xff]  }
 0x215   : > { %3950 = vmatprep.mubr.bf16.mxu0 %v5399_v59  ;;  %3995 = vmatpush3.bf16.msra.mxu0 %v4340_v10  ;;  %v4348_v59 = vld [vmem:[#allocation10 + $0x218] sm:$0xff]  }
 0x216   : > { %3996 = vmatprep.subr.bf16.mxu0 %v4342_v14 }
 0x217   : > { %3905 = vmatpush3.bf16.msra.mxu1 %v4341_v7 }
 0x218   : > { %3906 = vmatprep.subr.bf16.mxu1 %v4343_v13 }
 0x219   : > { %3997 = vmatpush3.bf16.msra.mxu0 %v4342_v14 }
 0x21a   : > { %3859 = vmatmul.mubr.bf16.gmra.mxu1 %v5419_v32  ;;  %3998 = vmatprep.subr.bf16.mxu0 %v4344_v17 }
 0x21b   : > { %3907 = vmatpush3.bf16.msra.mxu1 %v4343_v13  ;;  %3862 = vmatprep.mubr.bf16.mxu1 %v5430_v60 }
 0x21c   : > { %3951 = vmatmul.mubr.bf16.gmra.mxu0 %v5411_v9  ;;  %3908 = vmatprep.subr.bf16.mxu1 %v4345_v20  ;;  %v4353_v9 = vld [vmem:[#allocation10 + $0x1f0] sm:$0xff]  }
 0x21d   : > { %3954 = vmatprep.mubr.bf16.mxu0 %v5419_v32  ;;  %3999 = vmatpush3.bf16.msra.mxu0 %v4344_v17  ;;  %v4380_v17 = vld [vmem:[%s5126_s23 + $0x18] sm:$0xff]  }
 0x21e   : > { %4000 = vmatprep.subr.bf16.mxu0 %v4346_v51 }
 0x21f   : > { %3909 = vmatpush3.bf16.msra.mxu1 %v4345_v20  ;;  %v4381_v20 = vld [vmem:[%s5126_s23 + $0x20] sm:$0xff]  }
 0x220   : > { %3910 = vmatprep.subr.bf16.mxu1 %v4347_v33 }
 0x221   : > { %4001 = vmatpush3.bf16.msra.mxu0 %v4346_v51 }
 0x222   : > { %3863 = vmatmul.mubr.bf16.gmra.mxu1 %v1109_v43  ;;  %4002 = vmatprep.subr.bf16.mxu0 %v4348_v59 }
 0x223   : > { %3911 = vmatpush3.bf16.msra.mxu1 %v4347_v33  ;;  %3914 = vmatprep.mubr.bf16.mxu1 %v5227_v30  ;;  %v4355_v30 = vld [vmem:[#allocation10 + $0x1e8] sm:$0xff]  }
 0x224   : > { %3955 = vmatmul.mubr.bf16.gmra.mxu0 %v5430_v60  ;;  %3912 = vmatprep.subr.bf16.mxu1 %v4349_v42  ;;  %v4375_v60 = vld [vmem:[#allocation11 + $0x8] sm:$0xff]  }
 0x225   : > { %3958 = vmatprep.mubr.bf16.mxu0 %v1109_v43  ;;  %4003 = vmatpush3.bf16.msra.mxu0 %v4348_v59 }
 0x226   : > { %4004 = vmatprep.subr.bf16.mxu0 %v4350_v6 }
 0x227   : > { %3913 = vmatpush3.bf16.msra.mxu1 %v4349_v42 }
 0x228   : > { %3962 = vmatprep.subr.bf16.mxu1 %v4351_v44 }
 0x229   : > { %4005 = vmatpush3.bf16.msra.mxu0 %v4350_v6  ;;  %v4382_v6 = vld [vmem:[%s5126_s23 + $0x28] sm:$0xff]  }
 0x22a   : > { %3915 = vmatmul.mubr.bf16.vlgmr.msra.gmra.mxu1 %v5251_v49  ;;  %4006 = vmatprep.subr.bf16.mxu0 %v4352_v45 }
 0x22b   : > { %3963 = vmatpush3.bf16.msra.mxu1 %v4351_v44  ;;  %3918 = vmatprep.mubr.bf16.mxu1 %v5265_v62  ;;  %v4383_v44 = vld [vmem:[%s5126_s23 + $0x30] sm:$0xff]  }
 0x22c   : > { %3959 = vmatmul.mubr.bf16.gmra.mxu0 %v1110_v0  ;;  %3964 = vmatprep.subr.bf16.mxu1 %v4353_v9  ;;  %v4359_v0 = vld [vmem:[#allocation10 + $0x1c8] sm:$0xff]  }
 0x22d   : > { %4007 = vmatpush3.bf16.msra.mxu0 %v4352_v45  ;;  %4010 = vmatprep.mubr.bf16.mxu0 %v5251_v49  ;;  %v1127_v49 = vrot.slane %v1078_v22, 1 }
 0x22e   : > { %4008 = vmatprep.subr.bf16.mxu0 %v4354_v46 }
 0x22f   : > { %3965 = vmatpush3.bf16.msra.mxu1 %v4353_v9 }
 0x230   : > { %3966 = vmatprep.subr.bf16.mxu1 %v4355_v30 }
 0x231   : > { %4009 = vmatpush3.bf16.msra.mxu0 %v4354_v46 }
 0x232   : > { %3919 = vmatmul.mubr.bf16.gmra.mxu1 %v5296_v25 }
 0x233   : > { %3967 = vmatpush3.bf16.msra.mxu1 %v4355_v30  ;;  %3922 = vmatprep.mubr.bf16.mxu1 %v5319_v38 }
 0x234   : > { %4011 = vmatmul.mubr.bf16.vlgmr.msra.gmra.mxu0 %v5265_v62  ;;  %3968 = vmatprep.subr.bf16.mxu1 %v4356_v47  ;;  %v1128_v62 = vor.u32 %v1127_v49, %v1075_v39 }
 0x235   : > { %4014 = vmatprep.mubr.bf16.mxu0 %v5296_v25  ;;  %v4360_v25 = vld [vmem:[#allocation10 + $0x1c0] sm:$0xff]  }
 0x236   : > { %v1152_v52 = vsel %vm5214_vm5, %v1128_v62, 0 }
 0x237   : > { %3969 = vmatpush3.bf16.msra.mxu1 %v4356_v47 }
 0x238   : > { %3970 = vmatprep.subr.bf16.mxu1 %v4357_v29 }
 0x23a   : > { %3923 = vmatmul.mubr.bf16.gmra.mxu1 %v5350_v61 }
 0x23b   : > { %3971 = vmatpush3.bf16.msra.mxu1 %v4357_v29  ;;  %3926 = vmatprep.mubr.bf16.mxu1 %v5361_v3 }
 0x23c   : > { %4015 = vmatmul.mubr.bf16.gmra.mxu0 %v5319_v38  ;;  %3972 = vmatprep.subr.bf16.mxu1 %v4358_v15 }
 0x23d   : > { %4018 = vmatprep.mubr.bf16.mxu0 %v5350_v61 }
 0x23f   : > { %3973 = vmatpush3.bf16.msra.mxu1 %v4358_v15 }
 0x240   : > { %3974 = vmatprep.subr.bf16.mxu1 %v4359_v0 }
 0x242   : > { %3927 = vmatmul.mubr.bf16.gmra.mxu1 %v1152_v52 }
 0x243   : > { %3975 = vmatpush3.bf16.msra.mxu1 %v4359_v0  ;;  %3978 = vmatprep.mubr.bf16.mxu1 %v5211_v18  ;;  %v4377_v18 = vld [vmem:[%s5126_s23] sm:$0xff]  }
 0x244   : > { %4019 = vmatmul.mubr.bf16.gmra.mxu0 %v5361_v3  ;;  %3976 = vmatprep.subr.bf16.mxu1 %v4360_v25  ;;  %v4371_v3 = vld [vmem:[#allocation11 + $0x18] sm:$0xff]  }
 0x245   : > { %4022 = vmatprep.mubr.bf16.mxu0 %v1152_v52 }
 0x247   : > { %3977 = vmatpush3.bf16.msra.mxu1 %v4360_v25 }
 0x248   : > { %4026 = vmatprep.subr.bf16.mxu1 %v4361_v19 }
 0x24a   : > { %3979 = vmatmul.mubr.bf16.vlgmr.msra.gmra.mxu1 %v5204_v11  ;;  %v3471_v11 = vpack.c.bf16 %v987_v35, %v986_v58  ;;  %v4368_v58 = vld [vmem:[#allocation13 + $0x18] sm:$0xff]   ;;  %v4370_v35 = vld [vmem:[#allocation13 + $0x10] sm:$0xff]  }
 0x24b   : > { %3982 = vmatprep.mubr.bf16.mxu1 %v5247_v48  ;;  %4027 = vmatpush3.bf16.msra.mxu1 %v4361_v19  ;;  %v4363_v48 = vld [vmem:[#allocation11 + $0x38] sm:$0xff]  }
 0x24c   : > { %4023 = vmatmul.mubr.bf16.gmra.mxu0 %v1153_v4  ;;  %4058 = vmatprep.subr.bf16.mxu0 %v4363_v48  ;;  %v4372_v4 = vld [vmem:[#allocation13 + $0x8] sm:$0xff]  }
 0x24d   : > { %4059 = vmatpush3.bf16.msra.mxu0 %v4363_v48 }
 0x252   : > { %3983 = vmatmul.mubr.bf16.gmra.mxu1 %v5240_v41  ;;  %v4362_v41 = vld [vmem:[#allocation13 + $0x30] sm:$0xff]  }
 0x253   : > { %3986 = vmatprep.mubr.bf16.mxu1 %v5292_v24  ;;  %4028 = vmatprep.subr.bf16.mxu1 %v4362_v41  ;;  %v4365_v24 = vld [vmem:[#allocation11 + $0x30] sm:$0xff]  }
 0x254   : > { %4029 = vmatpush3.bf16.msra.mxu1 %v4362_v41  ;;  %4060 = vmatprep.subr.bf16.mxu0 %v4365_v24 }
 0x255   : > { %4061 = vmatpush3.bf16.msra.mxu0 %v4365_v24 }
 0x256   : > { %4062 = vmatprep.subr.bf16.mxu0 %v4367_v28 }
 0x259   : > { %4063 = vmatpush3.bf16.msra.mxu0 %v4367_v28 }
 0x25a   : > { %3987 = vmatmul.mubr.bf16.gmra.mxu1 %v5279_v12  ;;  %v4364_v12 = vld [vmem:[#allocation13 + $0x28] sm:$0xff]   ;;  %4064 = vmatprep.subr.bf16.mxu0 %v4369_v36 }
 0x25b   : > { %3990 = vmatprep.mubr.bf16.mxu1 %v5436_v5  ;;  %4030 = vmatprep.subr.bf16.mxu1 %v4364_v12  ;;  %v4379_v5 = vld [vmem:[%s5126_s23 + $0x10] sm:$0xff]  }
 0x25c   : > { %4031 = vmatpush3.bf16.msra.mxu1 %v4364_v12 }
 0x25d   : > { %4032 = vmatprep.subr.bf16.mxu1 %v4366_v21  ;;  %4065 = vmatpush3.bf16.msra.mxu0 %v4369_v36 }
 0x25e   : > { %4066 = vmatprep.subr.bf16.mxu0 %v4371_v3 }
 0x260   : > { %4033 = vmatpush3.bf16.msra.mxu1 %v4366_v21 }
 0x261   : > { %4034 = vmatprep.subr.bf16.mxu1 %v4368_v58  ;;  %4067 = vmatpush3.bf16.msra.mxu0 %v4371_v3 }
 0x262   : > { %3991 = vmatmul.mubr.msk.bf16.gmra.mxu1 %vm3470_vm11, %v3471_v11  ;;  %4068 = vmatprep.subr.bf16.mxu0 %v4373_v50 }
 0x263   : > { %4042 = vmatprep.mubr.bf16.mxu1 %v4377_v18  ;;  %v4384_v18 = vld [vmem:[%s5126_s23 + $0x38] sm:$0xff]  }
 0x264   : > { %4035 = vmatpush3.bf16.msra.mxu1 %v4368_v58 }
 0x265   : > { %4036 = vmatprep.subr.bf16.mxu1 %v4370_v35  ;;  %4069 = vmatpush3.bf16.msra.mxu0 %v4373_v50 }
 0x266   : > { %4070 = vmatprep.subr.bf16.mxu0 %v4375_v60 }
 0x268   : > { %4037 = vmatpush3.bf16.msra.mxu1 %v4370_v35 }
 0x269   : > { %4038 = vmatprep.subr.bf16.mxu1 %v4372_v4  ;;  %4071 = vmatpush3.bf16.msra.mxu0 %v4375_v60 }
 0x26a   : > { %4072 = vmatprep.subr.bf16.mxu0 %v4376_v23 }
 0x26c   : > { %4039 = vmatpush3.bf16.msra.mxu1 %v4372_v4 }
 0x26d   : > { %4040 = vmatprep.subr.bf16.mxu1 %v4374_v54  ;;  %4073 = vmatpush3.bf16.msra.mxu0 %v4376_v23 }
 0x270   : > { %4041 = vmatpush3.bf16.msra.mxu1 %v4374_v54 }
 0x273   : > { %4043 = vmatmul.mubr.bf16.vlgmr.msra.gmra.mxu1 %v4378_v37 }
 0x274   : > { %4046 = vmatprep.mubr.bf16.mxu1 %v4379_v5 }
 0x27b   : > { %4047 = vmatmul.mubr.bf16.gmra.mxu1 %v4380_v17 }
 0x27c   : > { %4050 = vmatprep.mubr.bf16.mxu1 %v4381_v20 }
 0x283   : > { %4051 = vmatmul.mubr.bf16.gmra.mxu1 %v4382_v6 }
 0x284   : > { %4054 = vmatprep.mubr.bf16.mxu1 %v4383_v44 }
 0x28a   : > { %v5496_v38 = vpop.f32.mrf.mxu1 }
 0x28b   : > { %4055 = vmatmul.mubr.bf16.gmra.mxu1 %v4384_v18 }
 0x28c   : > { %v5498_v61 = vpop.f32.mrf.mxu1 }
 0x28e   : > { %v5500_v16 = vpop.f32.mrf.mxu1 }
 0x290   : > { %v5502_v32 = vpop.f32.mrf.mxu1 }
 0x292   : > { %v5504_v53 = vpop.f32.mrf.mxu1  ;;  %v3820_v34 = vpop.f32.mrf.mxu0 }
 0x294   : > { %v5506_v56 = vpop.f32.mrf.mxu1  ;;  %v1576_v57 = vpop.f32.mrf.mxu0 }
 0x296   : > { %v5508_v63 = vpop.f32.mrf.mxu1  ;;  %v3821_v55 = vpop.f32.mrf.mxu0 }
 0x298   : > { %v5510_v26 = vpop.f32.mrf.mxu1  ;;  %v1579_v1 = vpop.f32.mrf.mxu0 }
 0x29a   : > { %v3764_v8 = vpop.f32.mrf.mxu1  ;;  %v3824_v27 = vpop.f32.mrf.mxu0 }
 0x29c   : > { %v1301_v2 = vpop.f32.mrf.mxu1  ;;  %v1592_v10 = vpop.f32.mrf.mxu0 }
 0x29e   : > { %v3765_v7 = vpop.f32.mrf.mxu1  ;;  %v3825_v14 = vpop.f32.mrf.mxu0 }
 0x2a0   : > { %v5514_v13 = vpop.f32.mrf.mxu1  ;;  %v1595_v39 = vpop.f32.mrf.mxu0 }
 0x2a2   : > { %v3768_v31 = vpop.f32.mrf.mxu1  ;;  %v3828_v51 = vpop.f32.mrf.mxu0 }
 0x2a4   : > { %v5518_v22 = vpop.f32.mrf.mxu1  ;;  %v1608_v33 = vpop.f32.mrf.mxu0 }
 0x2a6   : > { %v5520_v40 = vpop.f32.mrf.mxu1  ;;  %v3829_v59 = vpop.f32.mrf.mxu0 }
 0x2a8   : > { %v5522_v42 = vpop.f32.mrf.mxu1  ;;  %v1611_v43 = vpop.f32.mrf.mxu0 }
 0x2aa   : > { %v3788_v45 = vpop.f32.mrf.mxu1  ;;  %v3832_v9 = vpop.f32.mrf.mxu0 }
 0x2ab   : > { %v1423_v46 = vadd.f32 %v3788_v45, %v5496_v38 }
 0x2ac   : > { %v1414_v30 = vpop.f32.mrf.mxu1  ;;  %v1624_v47 = vpop.f32.mrf.mxu0 }
 0x2ad   : > { %v1415_v29 = vadd.f32 %v1414_v30, %v5498_v61  ;;  %v5528_v15 = vadd.f32 %v3820_v34, %v1423_v46 }
 0x2ae   : > { %v3789_v49 = vpop.f32.mrf.mxu1  ;;  %v3833_v0 = vpop.f32.mrf.mxu0 }
 0x2af   : > { %v1426_v62 = vadd.f32 %v3789_v49, %v5500_v16  ;;  %v5531_v25 = vadd.f32 %v1576_v57, %v1415_v29 }
 0x2b0   : > { %v1417_v52 = vpop.f32.mrf.mxu1  ;;  %v1627_v11 = vpop.f32.mrf.mxu0 }
 0x2b1   : > { %v1418_v19 = vadd.f32 %v1417_v52, %v5502_v32  ;;  %v5535_v41 = vadd.f32 %v3821_v55, %v1426_v62 }
 0x2b2   : > { %v3792_v48 = vpop.f32.mrf.mxu1 }
 0x2b3   : > { %v1439_v12 = vadd.f32 %v3792_v48, %v5504_v53  ;;  %v5538_v24 = vpop.f32.mrf.mxu0  ;;  %v5540_v21 = vadd.f32 %v1579_v1, %v1418_v19 }
 0x2b4   : > { %v1430_v28 = vpop.f32.mrf.mxu1 }
 0x2b5   : > { %v1431_v58 = vadd.f32 %v1430_v28, %v5506_v56  ;;  %v5543_v36 = vpop.f32.mrf.mxu0  ;;  %v1645_v38 = vadd.f32 %v3824_v27, %v1439_v12 }
 0x2b6   : > { %v3793_v35 = vpop.f32.mrf.mxu1 }
 0x2b7   : > { %v1442_v61 = vadd.f32 %v3793_v35, %v5508_v63  ;;  %v5546_v3 = vpop.f32.mrf.mxu0  ;;  %v5548_v16 = vadd.f32 %v1592_v10, %v1431_v58 }
 0x2b8   : > { %v1433_v4 = vpop.f32.mrf.mxu1 }
 0x2b9   : > { %v1434_v32 = vadd.f32 %v1433_v4, %v5510_v26  ;;  %v5551_v50 = vpop.f32.mrf.mxu0  ;;  %v5553_v53 = vadd.f32 %v3825_v14, %v1442_v61 }
 0x2ba   : > { %v3796_v34 = vpop.f32.mrf.mxu1 }
 0x2bb   : > { %v1455_v54 = vadd.f32 %v3796_v34, %v3764_v8  ;;  %v3888_v56 = vpop.f32.mrf.mxu0  ;;  %v5555_v57 = vadd.f32 %v1595_v39, %v1434_v32 }
 0x2bc   : > { %v1446_v60 = vpop.f32.mrf.mxu1 }
 0x2bd   : > { %v1447_v55 = vadd.f32 %v1446_v60, %v1301_v2  ;;  %v5557_v1 = vpop.f32.mrf.mxu0  ;;  %v1649_v63 = vadd.f32 %v3828_v51, %v1455_v54 }
 0x2be   : > { %v3797_v37 = vpop.f32.mrf.mxu1 }
 0x2bf   : > { %v1458_v23 = vadd.f32 %v3797_v37, %v3765_v7  ;;  %v5559_v5 = vpop.f32.mrf.mxu0  ;;  %v5561_v27 = vadd.f32 %v1608_v33, %v1447_v55 }
 0x2c0   : > { %v1449_v26 = vpop.f32.mrf.mxu1 }
 0x2c1   : > { %v1450_v10 = vadd.f32 %v1449_v26, %v5514_v13  ;;  %v5564_v14 = vpop.f32.mrf.mxu0  ;;  %v5566_v8 = vadd.f32 %v3829_v59, %v1458_v23 }
 0x2c2   : > { %v3800_v39 = vpop.f32.mrf.mxu1 }
 0x2c3   : > { %v1471_v17 = vadd.f32 %v3800_v39, %v3768_v31  ;;  %v3892_v20 = vpop.f32.mrf.mxu0  ;;  %v5568_v2 = vadd.f32 %v1611_v43, %v1450_v10 }
 0x2c4   : > { %v1462_v6 = vpop.f32.mrf.mxu1 }
 0x2c5   : > { %v1463_v51 = vadd.f32 %v1462_v6, %v5518_v22  ;;  %v5571_v7 = vpop.f32.mrf.mxu0  ;;  %v1653_v44 = vadd.f32 %v3832_v9, %v1471_v17 }
 0x2c6   : > { %v3801_v33 = vpop.f32.mrf.mxu1 }
 0x2c7   : > { %v1474_v45 = vadd.f32 %v3801_v33, %v5520_v40  ;;  %v5574_v46 = vpop.f32.mrf.mxu0  ;;  %v5576_v13 = vadd.f32 %v1624_v47, %v1463_v51 }
 0x2c8   : > { %v1465_v59 = vpop.f32.mrf.mxu1 }
 0x2c9   : > { %v1466_v30 = vadd.f32 %v1465_v59, %v5522_v42  ;;  %v5579_v31 = vpop.f32.mrf.mxu0  ;;  %v5581_v43 = vadd.f32 %v3833_v0, %v1474_v45 }
 0x2ca   : > { %6001 = vst [vmem:[#allocation36_spill] sm:$0xff] %v5579_v31  ;;  %v3852_v29 = vpop.f32.mrf.mxu1 }
 0x2cb   : > { %6002 = vst [vmem:[#allocation37_spill] sm:$0xff] %v5581_v43  ;;  %v3896_v49 = vpop.f32.mrf.mxu0  ;;  %v5583_v22 = vadd.f32 %v1627_v11, %v1466_v30 }
 0x2cc   : > { %v1754_v62 = vpop.f32.mrf.mxu1 }
 0x2cd   : > { %6003 = vst [vmem:[#allocation38_spill] sm:$0xff] %v5583_v22  ;;  %v5585_v9 = vpop.f32.mrf.mxu0 }
 0x2ce   : > { %6004 = vst [vmem:[#allocation39_spill] sm:$0xff] %v5585_v9  ;;  %v3853_v52 = vpop.f32.mrf.mxu1 }
 0x2cf   : > { %v5587_v40 = vpop.f32.mrf.mxu0 }
 0x2d0   : > { %6005 = vst [vmem:[#allocation40_spill] sm:$0xff] %v5587_v40  ;;  %v1757_v18 = vpop.f32.mrf.mxu1 }
 0x2d1   : > { %v5589_v47 = vpop.f32.mrf.mxu0 }
 0x2d2   : > { %6006 = vst [vmem:[#allocation41_spill] sm:$0xff] %v5589_v47  ;;  %v3856_v19 = vpop.f32.mrf.mxu1 }
 0x2d3   : > { %v1823_v48 = vadd.f32 %v3856_v19, %v1645_v38 }
 0x2d4   : > { %v5591_v42 = vpop.f32.mrf.mxu0  ;;  %v1770_v12 = vpop.f32.mrf.mxu1 }
 0x2d5   : > { %v5593_v0 = vadd.f32 %v3888_v56, %v1823_v48 }
 0x2d6   : > { %v5595_v28 = vpop.f32.mrf.mxu0  ;;  %v5597_v11 = vpop.f32.mrf.mxu1 }
 0x2d8   : > { %v5599_v58 = vpop.f32.mrf.mxu0  ;;  %v5601_v35 = vpop.f32.mrf.mxu1 }
 0x2da   : > { %v5603_v61 = vpop.f32.mrf.mxu0  ;;  %v3860_v4 = vpop.f32.mrf.mxu1 }
 0x2db   : > { %v1827_v32 = vadd.f32 %v3860_v4, %v1649_v63 }
 0x2dc   : > { %v5605_v34 = vpop.f32.mrf.mxu0  ;;  %v5607_v38 = vpop.f32.mrf.mxu1 }
 0x2dd   : > { %v5609_v54 = vadd.f32 %v3892_v20, %v1827_v32 }
 0x2de   : > { %v5611_v56 = vpop.f32.mrf.mxu0  ;;  %v5613_v60 = vpop.f32.mrf.mxu1 }
 0x2e0   : > { %v5615_v55 = vpop.f32.mrf.mxu0  ;;  %v5617_v37 = vpop.f32.mrf.mxu1 }
 0x2e1   : > { %6007 = vst [vmem:[#allocation42_spill] sm:$0xff] %v5615_v55 }
 0x2e2   : > { %v5619_v23 = vpop.f32.mrf.mxu0  ;;  %v3864_v26 = vpop.f32.mrf.mxu1 }
 0x2e3   : > { %6008 = vst [vmem:[#allocation43_spill] sm:$0xff] %v5619_v23  ;;  %v1831_v10 = vadd.f32 %v3864_v26, %v1653_v44 }
 0x2e4   : > { %v5621_v39 = vpop.f32.mrf.mxu0  ;;  %v5623_v63 = vpop.f32.mrf.mxu1 }
 0x2e5   : > { %6009 = vst [vmem:[#allocation44_spill] sm:$0xff] %v5621_v39  ;;  %v5625_v17 = vadd.f32 %v3896_v49, %v1831_v10 }
 0x2e6   : > { %v5627_v20 = vpop.f32.mrf.mxu0  ;;  %v5629_v6 = vpop.f32.mrf.mxu1 }
 0x2e7   : > { %6010 = vst [vmem:[#allocation45_spill] sm:$0xff] %v5625_v17  ;;  %6011 = vst [vmem:[#allocation46_spill] sm:$0xff] %v5627_v20 }
 0x2e8   : > { %6012 = vst [vmem:[#allocation47_spill] sm:$0xff] %v5629_v6  ;;  %v5631_v51 = vpop.f32.mrf.mxu0  ;;  %v5633_v33 = vpop.f32.mrf.mxu1  ;;  %v1820_v6 = vadd.f32 %v3853_v52, %v5535_v41 }
 0x2e9   : > { %6013 = vst [vmem:[#allocation48_spill] sm:$0xff] %v5631_v51  ;;  %6014 = vst [vmem:[#allocation49_spill] sm:$0xff] %v5633_v33 }
 0x2ea   : > { %v5635_v45 = vpop.f32.mrf.mxu0  ;;  %v3916_v59 = vpop.f32.mrf.mxu1 }
 0x2eb   : > { %6015 = vst [vmem:[#allocation50_spill] sm:$0xff] %v5635_v45 }
 0x2ec   : > { %v5637_v30 = vpop.f32.mrf.mxu0  ;;  %v2110_v44 = vpop.f32.mrf.mxu1 }
 0x2ed   : > { %6016 = vst [vmem:[#allocation51_spill] sm:$0xff] %v5637_v30 }
 0x2ee   : > { %v5639_v19 = vpop.f32.mrf.mxu0  ;;  %v3917_v48 = vpop.f32.mrf.mxu1 }
 0x2ef   : > { %6017 = vst [vmem:[#allocation52_spill] sm:$0xff] %v5639_v19 }
 0x2f0   : > { %v5641_v4 = vpop.f32.mrf.mxu0  ;;  %v2113_v49 = vpop.f32.mrf.mxu1 }
 0x2f1   : > { %6018 = vst [vmem:[#allocation53_spill] sm:$0xff] %v5641_v4  ;;  %v1819_v4 = vadd.f32 %v3852_v29, %v5528_v15 }
 0x2f2   : > { %v5643_v32 = vpop.f32.mrf.mxu0  ;;  %v3920_v26 = vpop.f32.mrf.mxu1 }
 0x2f3   : > { %6019 = vst [vmem:[#allocation54_spill] sm:$0xff] %v5643_v32  ;;  %v1817_v32 = vadd.f32 %v1754_v62, %v5531_v25  ;;  %v1997_v43 = vadd.f32 %v5538_v24, %v1819_v4  ;;  %v1998_v62 = vadd.f32 %v5546_v3, %v1820_v6  ;;  %v1822_v3 = vadd.f32 %v5601_v35, %v5555_v57 }
 0x2f4   : > { %v4012_v10 = vpop.f32.mrf.mxu0  ;;  %v2126_v47 = vpop.f32.mrf.mxu1 }
 0x2f5   : > { %v2175_v55 = vadd.f32 %v3916_v59, %v1997_v43  ;;  %v2176_v41 = vadd.f32 %v3917_v48, %v1998_v62 }
 0x2f6   : > { %v2644_v51 = vpop.f32.mrf.mxu0  ;;  %v3921_v17 = vpop.f32.mrf.mxu1 }
 0x2f7   : > { %v2353_v52 = vadd.f32 %v5591_v42, %v2175_v55  ;;  %v2354_v55 = vadd.f32 %v5599_v58, %v2176_v41  ;;  %v2000_v58 = vadd.f32 %v5564_v14, %v1822_v3  ;;  %v6029_v3 = vld [vmem:[#allocation47_spill] sm:$0xff] }
 0x2f8   : > { %v4013_v40 = vpop.f32.mrf.mxu0  ;;  %v2129_v33 = vpop.f32.mrf.mxu1 }
 0x2fa   : > { %v2647_v45 = vpop.f32.mrf.mxu0  ;;  %v5645_v22 = vpop.f32.mrf.mxu1 }
 0x2fc   : > { %v5647_v30 = vpop.f32.mrf.mxu1  ;;  %v5649_v20 = vpop.f32.mrf.mxu0 }
 0x2fd   : > { %6020 = vst [vmem:[#allocation55_spill] sm:$0xff] %v5647_v30  ;;  %v1818_v30 = vadd.f32 %v1757_v18, %v5540_v21 }
 0x2fe   : > { %v5651_v19 = vpop.f32.mrf.mxu1  ;;  %v5657_v39 = vpop.f32.mrf.mxu0 }
 0x2ff   : > { %6021 = vst [vmem:[#allocation56_spill] sm:$0xff] %v5651_v19  ;;  %v1995_v19 = vadd.f32 %v5543_v36, %v1817_v32  ;;  %v1996_v24 = vadd.f32 %v5551_v50, %v1818_v30  ;;  %v2179_v50 = vadd.f32 %v3920_v26, %v5593_v0  ;;  %v1828_v0 = vadd.f32 %v5613_v60, %v5566_v8 }
 0x300   : > { %v5654_v9 = vpop.f32.mrf.mxu1  ;;  %v5667_v15 = vpop.f32.mrf.mxu0  ;;  %v2178_v26 = vadd.f32 %v2129_v33, %v2000_v58  ;;  %v1826_v60 = vadd.f32 %v5617_v37, %v5568_v2  ;;  %v6025_v2 = vld [vmem:[#allocation42_spill] sm:$0xff] }
 0x301   : > { %6022 = vst [vmem:[#allocation57_spill] sm:$0xff] %v5654_v9  ;;  %v2173_v25 = vadd.f32 %v2110_v44, %v1995_v19  ;;  %v2174_v36 = vadd.f32 %v2113_v49, %v1996_v24  ;;  %v1824_v44 = vadd.f32 %v5597_v11, %v5553_v53 }
 0x302   : > { %v5659_v31 = vpop.f32.mrf.mxu1  ;;  %v5677_v21 = vpop.f32.mrf.mxu0 }
 0x303   : > { %6023 = vst [vmem:[#allocation58_spill] sm:$0xff] %v5659_v31  ;;  %v1821_v31 = vadd.f32 %v1770_v12, %v5548_v16  ;;  %v2351_v59 = vadd.f32 %v5595_v28, %v2173_v25  ;;  %v5692_v28 = vld [vmem:[%s6024_s2] ss:$0 sm:$0xff] }
 0x304   : > { %v5663_v23 = vpop.f32.mrf.mxu1  ;;  %v5687_v19 = vpop.f32.mrf.mxu0 }
 0x305   : > { %v1999_v16 = vadd.f32 %v5557_v1, %v1821_v31  ;;  %v2352_v1 = vadd.f32 %v5603_v61, %v2174_v36  ;;  %v1825_v31 = vadd.f32 %v5607_v38, %v5561_v27 }
 0x306   : > { %v5669_v29 = vpop.f32.mrf.mxu1  ;;  %v5703_v61 = vpop.f32.mrf.mxu0 }
 0x307   : > { %v2177_v30 = vadd.f32 %v2126_v47, %v1999_v16  ;;  %v2002_v47 = vadd.f32 %v5559_v5, %v1824_v44  ;;  %v6028_v44 = vld [vmem:[#allocation37_spill] sm:$0xff] }
 0x308   : > { %v5673_v9 = vpop.f32.mrf.mxu1  ;;  %v4021_v24 = vpop.f32.mrf.mxu0  ;;  %v1832_v16 = vadd.f32 %v6029_v3, %v6028_v44 }
 0x309   : > { %v2180_v32 = vadd.f32 %v3921_v17, %v2002_v47  ;;  %v2355_v27 = vadd.f32 %v5611_v56, %v2177_v30  ;;  %v2006_v17 = vadd.f32 %v5574_v46, %v1828_v0  ;;  %v6032_v30 = vld [vmem:[#allocation44_spill] sm:$0xff] }
 0x30a   : > { %v3980_v43 = vpop.f32.mrf.mxu1 }
 0x30b   : > { %v2531_v18 = vadd.f32 %v3980_v43, %v2353_v52  ;;  %v2358_v37 = vadd.f32 %v6025_v2, %v2180_v32  ;;  %v6036_v32 = vld [vmem:[#allocation38_spill] sm:$0xff] }
 0x30c   : > { %v2466_v12 = vpop.f32.mrf.mxu1 }
 0x30d   : > { %v2709_v6 = vadd.f32 %v4012_v10, %v2531_v18  ;;  %v2529_v42 = vadd.f32 %v2466_v12, %v2351_v59  ;;  %v6030_v12 = vld [vmem:[#allocation36_spill] sm:$0xff] }
 0x30e   : > { %v3981_v53 = vpop.f32.mrf.mxu1 }
 0x30f   : > { %v2707_v11 = vadd.f32 %v2644_v51, %v2529_v42  ;;  %v2532_v57 = vadd.f32 %v3981_v53, %v2354_v55  ;;  %v2732_v48 = vadd.f32 %v5692_v28, %v2709_v6  ;;  %v2357_v51 = vadd.f32 %v5605_v34, %v2179_v50 }
 0x310   : > { %v2469_v35 = vpop.f32.mrf.mxu1  ;;  %v2003_v34 = vadd.f32 %v5571_v7, %v1825_v31  ;;  %v6027_v7 = vld [vmem:[#allocation55_spill] sm:$0xff]  ;;  %v2004_v50 = vadd.f32 %v6030_v12, %v1826_v60  ;;  %v2679_v31 = vpop.f32.mrf.mxu0  ;;  %v6040_v60 = vld [vmem:[#allocation58_spill] sm:$0xff] }
 0x311   : > { %v2710_v4 = vadd.f32 %v4013_v40, %v2532_v57  ;;  %v2530_v49 = vadd.f32 %v2469_v35, %v2352_v1  ;;  %v2730_v8 = vadd.f32 %v5692_v28, %v2707_v11  ;;  %v2183_v40 = vadd.f32 %v5645_v22, %v5609_v54  ;;  %v6026_v22 = vld [vmem:[#allocation43_spill] sm:$0xff]  ;;  %v6034_v35 = vld [vmem:[#allocation57_spill] sm:$0xff] }
 0x312   : > { %v3984_v10 = vpop.f32.mrf.mxu1  ;;  %v2748_v25 = vmax.f32 %v2732_v48, 0.0  ;;  %v2356_v54 = vadd.f32 %v6026_v22, %v2178_v26  ;;  %v2181_v36 = vadd.f32 %v6027_v7, %v2003_v34  ;;  %v6033_v57 = vld [vmem:[#allocation39_spill] sm:$0xff]  ;;  %v2182_v48 = vadd.f32 %v6034_v35, %v2004_v50  ;;  %v6037_v26 = vld [vmem:[#allocation49_spill] sm:$0xff] }
 0x313   : > { %v2733_v5 = vadd.f32 %v5692_v28, %v2710_v4  ;;  %v2708_v38 = vadd.f32 %v2647_v45, %v2530_v49  ;;  %v2535_v14 = vadd.f32 %v3984_v10, %v2357_v51  ;;  %v1829_v45 = vadd.f32 %v5623_v63, %v5576_v13  ;;  %v6035_v49 = vld [vmem:[#allocation46_spill] sm:$0xff] }
 0x314   : > { %v2482_v33 = vpop.f32.mrf.mxu1  ;;  %v2746_v46 = vmax.f32 %v2730_v8, 0.0  ;;  %v2361_v53 = vadd.f32 %v6032_v30, %v2183_v40  ;;  %v2359_v51 = vadd.f32 %v6035_v49, %v2181_v36  ;;  %v1830_v10 = vadd.f32 %v6037_v26, %v6036_v32 }
 0x315   : > { %v2749_v62 = vmax.f32 %v2733_v5, 0.0  ;;  %v2731_v56 = vadd.f32 %v5692_v28, %v2708_v38  ;;  %v2533_v41 = vadd.f32 %v2482_v33, %v2355_v27  ;;  %v2713_v52 = vadd.f32 %v5649_v20, %v2535_v14  ;;  %v6031_v20 = vld [vmem:[#allocation56_spill] sm:$0xff] }
 0x316   : > { %v3985_v43 = vpop.f32.mrf.mxu1  ;;  %v2184_v42 = vadd.f32 %v6031_v20, %v2006_v17  ;;  %v2007_v1 = vadd.f32 %v6033_v57, %v1829_v45  ;;  %v6038_v27 = vld [vmem:[#allocation40_spill] sm:$0xff] }
 0x317   : > { %v2763_v18 = vpack.c.bf16 %v2749_v62, %v2748_v25  ;;  %v2747_v59 = vmax.f32 %v2731_v56, 0.0  ;;  %v2711_v13 = vadd.f32 %v5657_v39, %v2533_v41  ;;  %v2536_v63 = vadd.f32 %v3985_v43, %v2358_v37  ;;  %v6041_v17 = vld [vmem:[#allocation48_spill] sm:$0xff]  ;;  %v4024_v62 = vpop.f32.mrf.mxu0  ;;  %v6042_v43 = vld [vmem:[#allocation50_spill] sm:$0xff] }
 0x318   : > { %v2485_v6 = vpop.f32.mrf.mxu1  ;;  %v2736_v0 = vadd.f32 %v5692_v28, %v2713_v52  ;;  %v2010_v8 = vadd.f32 %v6038_v27, %v1832_v16  ;;  %v2362_v33 = vadd.f32 %v6041_v17, %v2184_v42  ;;  %v2185_v25 = vadd.f32 %v5663_v23, %v2007_v1  ;;  %v6044_v16 = vld [vmem:[#allocation51_spill] sm:$0xff] }
 0x319   : > { %v2534_v55 = vadd.f32 %v2485_v6, %v2356_v54  ;;  %v2762_v11 = vpack.c.bf16 %v2747_v59, %v2746_v46  ;;  %v2714_v47 = vadd.f32 %v5667_v15, %v2536_v63  ;;  %v2734_v5 = vadd.f32 %v5692_v28, %v2711_v13  ;;  %v6039_v15 = vld [vmem:[#allocation45_spill] sm:$0xff]  ;;  %v2692_v50 = vpop.f32.mrf.mxu0  ;;  %v6045_v6 = vld [vmem:[#allocation52_spill] sm:$0xff] }
 0x31a   : > { %v3988_v58 = vpop.f32.mrf.mxu1  ;;  %v2187_v40 = vadd.f32 %v6040_v60, %v6039_v15  ;;  %v2752_v56 = vmax.f32 %v2736_v0, 0.0  ;;  %v2360_v22 = vadd.f32 %v6042_v43, %v2182_v48  ;;  %v2188_v54 = vadd.f32 %v5669_v29, %v2010_v8  ;;  %v6043_v59 = vld [vmem:[#allocation41_spill] sm:$0xff] }
 0x31b   : > { %v2712_v39 = vadd.f32 %v5677_v21, %v2534_v55  ;;  %v2539_v4 = vadd.f32 %v3988_v58, %v2361_v53  ;;  %4074 = vmatprep.mubr.bf16.mxu0 %v2762_v11  ;;  %v2737_v38 = vadd.f32 %v5692_v28, %v2714_v47  ;;  %v2750_v7 = vmax.f32 %v2734_v5, 0.0  ;;  %v6046_v53 = vld [vmem:[#allocation53_spill] sm:$0xff]  ;;  %v4025_v58 = vpop.f32.mrf.mxu0 }
 0x31c   : > { %v2498_v14 = vpop.f32.mrf.mxu1  ;;  %4075 = vmatmul.mubr.bf16.vlgmr.msra.gmra.mxu0 %v2763_v18  ;;  %v2008_v44 = vadd.f32 %v6043_v59, %v1830_v10  ;;  %v2365_v12 = vadd.f32 %v6044_v16, %v2187_v40  ;;  %v2363_v20 = vadd.f32 %v6045_v6, %v2185_v25  ;;  %v2366_v11 = vadd.f32 %v6046_v53, %v2188_v54 }
 0x31d   : > { %v2735_v21 = vadd.f32 %v5692_v28, %v2712_v39  ;;  %v2537_v34 = vadd.f32 %v2498_v14, %v2359_v51  ;;  %v2753_v41 = vmax.f32 %v2737_v38, 0.0  ;;  %v2717_v45 = vadd.f32 %v5687_v19, %v2539_v4  ;;  %v2695_v5 = vpop.f32.mrf.mxu0 }
 0x31e   : > { %v3989_v52 = vpop.f32.mrf.mxu1  ;;  %v2186_v29 = vadd.f32 %v5673_v9, %v2008_v44 }
 0x31f   : > { %v2751_v2 = vmax.f32 %v2735_v21, 0.0  ;;  %v2540_v37 = vadd.f32 %v3989_v52, %v2362_v33  ;;  %v2715_v36 = vadd.f32 %v5703_v61, %v2537_v34  ;;  %v2765_v18 = vpack.c.bf16 %v2753_v41, %v2752_v56 }
 0x320   : > { %v2501_v46 = vpop.f32.mrf.mxu1  ;;  %v2740_v19 = vadd.f32 %v5692_v28, %v2717_v45 }
 0x321   : > { %v2718_v23 = vadd.f32 %v4021_v24, %v2540_v37  ;;  %v2538_v3 = vadd.f32 %v2501_v46, %v2360_v22  ;;  %v2764_v63 = vpack.c.bf16 %v2751_v2, %v2750_v7  ;;  %v2738_v30 = vadd.f32 %v5692_v28, %v2715_v36 }
 0x322   : > { %v3992_v13 = vpop.f32.mrf.mxu1  ;;  %v2756_v35 = vmax.f32 %v2740_v19, 0.0 }
 0x323   : > { %v2741_v42 = vadd.f32 %v5692_v28, %v2718_v23  ;;  %v2716_v61 = vadd.f32 %v2679_v31, %v2538_v3  ;;  %v2543_v55 = vadd.f32 %v3992_v13, %v2365_v12  ;;  %4078 = vmatprep.mubr.bf16.mxu0 %v2764_v63  ;;  %v6047_v31 = vld [vmem:[#allocation54_spill] sm:$0xff]  ;;  %v2754_v51 = vmax.f32 %v2738_v30, 0.0 }
 0x324   : > { %v2514_v24 = vpop.f32.mrf.mxu1  ;;  %4079 = vmatmul.mubr.bf16.gmra.mxu0 %v2765_v18  ;;  %v2364_v49 = vadd.f32 %v6047_v31, %v2186_v29 }
 0x325   : > { %v2757_v57 = vmax.f32 %v2741_v42, 0.0  ;;  %v2739_v1 = vadd.f32 %v5692_v28, %v2716_v61  ;;  %v2721_v0 = vadd.f32 %v4024_v62, %v2543_v55  ;;  %v2541_v47 = vadd.f32 %v2514_v24, %v2363_v20 }
 0x326   : > { %v3993_v48 = vpop.f32.mrf.mxu1 }
 0x327   : > { %v2755_v9 = vmax.f32 %v2739_v1, 0.0  ;;  %v2719_v39 = vadd.f32 %v2692_v50, %v2541_v47  ;;  %v2544_v4 = vadd.f32 %v3993_v48, %v2366_v11  ;;  %v2767_v26 = vpack.c.bf16 %v2757_v57, %v2756_v35 }
 0x328   : > { %v2517_v32 = vpop.f32.mrf.mxu1  ;;  %v2744_v10 = vadd.f32 %v5692_v28, %v2721_v0 }
 0x329   : > { %v2722_v27 = vadd.f32 %v4025_v58, %v2544_v4  ;;  %v2542_v8 = vadd.f32 %v2517_v32, %v2364_v49  ;;  %v2766_v38 = vpack.c.bf16 %v2755_v9, %v2754_v51  ;;  %v2742_v14 = vadd.f32 %v5692_v28, %v2719_v39 }
 0x32a   : > { %v2760_v40 = vmax.f32 %v2744_v10, 0.0 }
 0x32b   : > { %v2745_v15 = vadd.f32 %v5692_v28, %v2722_v27  ;;  %v2720_v60 = vadd.f32 %v2695_v5, %v2542_v8  ;;  %4082 = vmatprep.mubr.bf16.mxu0 %v2766_v38  ;;  %v2758_v17 = vmax.f32 %v2742_v14, 0.0 }
 0x32c   : > { %4083 = vmatmul.mubr.bf16.gmra.mxu0 %v2767_v26 }
 0x32d   : > { %v2761_v21 = vmax.f32 %v2745_v15, 0.0  ;;  %v2743_v34 = vadd.f32 %v5692_v28, %v2720_v60  ;;  %v5764_v28 = vld [vmem:[%s6048_s29] ss:$0 sm:$0xff] }
 0x32f   : > { %v2759_v33 = vmax.f32 %v2743_v34, 0.0  ;;  %v2769_v25 = vpack.c.bf16 %v2761_v21, %v2760_v40 }
 0x331   : > { %v2768_v62 = vpack.c.bf16 %v2759_v33, %v2758_v17 }
 0x333   : > { %4086 = vmatprep.mubr.bf16.mxu0 %v2768_v62  ;;  %v4044_v56 = vpop.f32.mrf.mxu1 }
 0x334   : > { %4087 = vmatmul.mubr.bf16.gmra.mxu0 %v2769_v25 }
 0x335   : > { %v2884_v41 = vpop.f32.mrf.mxu1 }
 0x337   : > { %v4045_v45 = vpop.f32.mrf.mxu1 }
 0x339   : > { %v2887_v52 = vpop.f32.mrf.mxu1 }
 0x33b   : > { %v4048_v2 = vpop.f32.mrf.mxu1 }
 0x33d   : > { %v2900_v37 = vpop.f32.mrf.mxu1 }
 0x33f   : > { %v4049_v43 = vpop.f32.mrf.mxu1 }
 0x341   : > { %v2903_v22 = vpop.f32.mrf.mxu1 }
 0x343   : > { %v4052_v59 = vpop.f32.mrf.mxu1 }
 0x345   : > { %v2916_v63 = vpop.f32.mrf.mxu1 }
 0x347   : > { %v4053_v30 = vpop.f32.mrf.mxu1 }
 0x349   : > { %v2919_v58 = vpop.f32.mrf.mxu1 }
 0x34b   : > { %v4056_v51 = vpop.f32.mrf.mxu1 }
 0x34d   : > { %v2932_v15 = vpop.f32.mrf.mxu1 }
 0x3dc   : > { %v4076_v54 = vpop.f32.mrf.mxu0 }
 0x3dd   : > { %v3038_v7 = vadd.f32 %v4076_v54, %v4044_v56  ;;  %v4057_v56 = vpop.f32.mrf.mxu1 }
 0x3de   : > { %v3029_v36 = vpop.f32.mrf.mxu0 }
 0x3df   : > { %v3101_v46 = vadd.f32 %v5764_v28, %v3038_v7  ;;  %v3030_v18 = vadd.f32 %v3029_v36, %v2884_v41  ;;  %v2935_v7 = vpop.f32.mrf.mxu1 }
 0x3e0   : > { %v4077_v44 = vpop.f32.mrf.mxu0 }
 0x3e1   : > { %v3117_v23 = vmax.f32 %v3101_v46, 0.0  ;;  %v3099_v3 = vadd.f32 %v5764_v28, %v3030_v18  ;;  %v3041_v16 = vadd.f32 %v4077_v44, %v4045_v45 }
 0x3e2   : > { %v3032_v12 = vpop.f32.mrf.mxu0 }
 0x3e3   : > { %3133 = vst [vmem:[%s5769_s25 + $0x10] sm:$0xff] %v3117_v23  ;;  %v3115_v50 = vmax.f32 %v3099_v3, 0.0  ;;  %v3102_v19 = vadd.f32 %v5764_v28, %v3041_v16  ;;  %v3033_v13 = vadd.f32 %v3032_v12, %v2887_v52 }
 0x3e4   : > { %v4080_v29 = vpop.f32.mrf.mxu0 }
 0x3e5   : > { %3131 = vst [vmem:[%s5769_s25] sm:$0xff] %v3115_v50  ;;  %v3118_v6 = vmax.f32 %v3102_v19, 0.0  ;;  %v3100_v20 = vadd.f32 %v5764_v28, %v3033_v13  ;;  %v3054_v42 = vadd.f32 %v4080_v29, %v4048_v2 }
 0x3e6   : > { %v3045_v55 = vpop.f32.mrf.mxu0 }
 0x3e7   : > { %3134 = vst [vmem:[%s5769_s25 + $0x18] sm:$0xff] %v3118_v6  ;;  %v3116_v61 = vmax.f32 %v3100_v20, 0.0  ;;  %v3105_v24 = vadd.f32 %v5764_v28, %v3054_v42  ;;  %v3046_v53 = vadd.f32 %v3045_v55, %v2900_v37 }
 0x3e8   : > { %v4081_v11 = vpop.f32.mrf.mxu0 }
 0x3e9   : > { %3132 = vst [vmem:[%s5769_s25 + $0x8] sm:$0xff] %v3116_v61  ;;  %v3121_v57 = vmax.f32 %v3105_v24, 0.0  ;;  %v3103_v1 = vadd.f32 %v5764_v28, %v3046_v53  ;;  %v3057_v0 = vadd.f32 %v4081_v11, %v4049_v43 }
 0x3ea   : > { %v3048_v47 = vpop.f32.mrf.mxu0 }
 0x3eb   : > { %3137 = vst [vmem:[%s5769_s25 + $0x30] sm:$0xff] %v3121_v57  ;;  %v3119_v35 = vmax.f32 %v3103_v1, 0.0  ;;  %v3106_v48 = vadd.f32 %v5764_v28, %v3057_v0  ;;  %v3049_v9 = vadd.f32 %v3048_v47, %v2903_v22 }
 0x3ec   : > { %v4084_v39 = vpop.f32.mrf.mxu0 }
 0x3ed   : > { %3135 = vst [vmem:[%s5769_s25 + $0x20] sm:$0xff] %v3119_v35  ;;  %v3122_v4 = vmax.f32 %v3106_v48, 0.0  ;;  %v3104_v31 = vadd.f32 %v5764_v28, %v3049_v9  ;;  %v3070_v49 = vadd.f32 %v4084_v39, %v4052_v59 }
 0x3ee   : > { %v3061_v32 = vpop.f32.mrf.mxu0 }
 0x3ef   : > { %3138 = vst [vmem:[%s5769_s25 + $0x38] sm:$0xff] %v3122_v4  ;;  %v3120_v26 = vmax.f32 %v3104_v31, 0.0  ;;  %v3109_v10 = vadd.f32 %v5764_v28, %v3070_v49  ;;  %v3062_v27 = vadd.f32 %v3061_v32, %v2916_v63 }
 0x3f0   : > { %v4085_v8 = vpop.f32.mrf.mxu0 }
 0x3f1   : > { %3136 = vst [vmem:[%s5769_s25 + $0x28] sm:$0xff] %v3120_v26  ;;  %v3125_v5 = vmax.f32 %v3109_v10, 0.0  ;;  %v3107_v38 = vadd.f32 %v5764_v28, %v3062_v27  ;;  %v3073_v14 = vadd.f32 %v4085_v8, %v4053_v30 }
 0x3f2   : > { %v3064_v60 = vpop.f32.mrf.mxu0 }
 0x3f3   : > { %3141 = vst [vmem:[%s5769_s25 + $0x50] sm:$0xff] %v3125_v5  ;;  %v3123_v40 = vmax.f32 %v3107_v38, 0.0  ;;  %v3110_v21 = vadd.f32 %v5764_v28, %v3073_v14  ;;  %v3065_v34 = vadd.f32 %v3064_v60, %v2919_v58 }
 0x3f4   : > { %v4088_v17 = vpop.f32.mrf.mxu0 }
 0x3f5   : > { %3139 = vst [vmem:[%s5769_s25 + $0x40] sm:$0xff] %v3123_v40  ;;  %v3126_v33 = vmax.f32 %v3110_v21, 0.0  ;;  %v3108_v25 = vadd.f32 %v5764_v28, %v3065_v34  ;;  %v3086_v62 = vadd.f32 %v4088_v17, %v4056_v51 }
 0x3f6   : > { %v3077_v41 = vpop.f32.mrf.mxu0 }
 0x3f7   : > { %3142 = vst [vmem:[%s5769_s25 + $0x58] sm:$0xff] %v3126_v33  ;;  %v3124_v45 = vmax.f32 %v3108_v25, 0.0  ;;  %v3113_v52 = vadd.f32 %v5764_v28, %v3086_v62  ;;  %v3078_v2 = vadd.f32 %v3077_v41, %v2932_v15 }
 0x3f8   : > { %v4089_v37 = vpop.f32.mrf.mxu0 }
 0x3f9   : > { %3140 = vst [vmem:[%s5769_s25 + $0x48] sm:$0xff] %v3124_v45  ;;  %v3129_v43 = vmax.f32 %v3113_v52, 0.0  ;;  %v3111_v22 = vadd.f32 %v5764_v28, %v3078_v2  ;;  %v3089_v54 = vadd.f32 %v4089_v37, %v4057_v56 }
 0x3fa   : > { %v3080_v36 = vpop.f32.mrf.mxu0 }
 0x3fb   : > { %3145 = vst [vmem:[%s5769_s25 + $0x70] sm:$0xff] %v3129_v43  ;;  %v3127_v46 = vmax.f32 %v3111_v22, 0.0  ;;  %v3114_v18 = vadd.f32 %v5764_v28, %v3089_v54  ;;  %v3081_v59 = vadd.f32 %v3080_v36, %v2935_v7 }
 0x3fd   : > { %3143 = vst [vmem:[%s5769_s25 + $0x60] sm:$0xff] %v3127_v46  ;;  %v3130_v44 = vmax.f32 %v3114_v18, 0.0  ;;  %v3112_v23 = vadd.f32 %v5764_v28, %v3081_v59 }
 0x3ff   : > { %3146 = vst [vmem:[%s5769_s25 + $0x78] sm:$0xff] %v3130_v44  ;;  %v3128_v3 = vmax.f32 %v3112_v23, 0.0 }
 0x401   : > { %3144 = vst [vmem:[%s5769_s25 + $0x68] sm:$0xff] %v3128_v3 }
 0x402   : > { %4586 = shalt.err (!%p4583_p3)
}
 0x403   : > { %s4587_s2 = scalar_lea.hbm %s5805_s14, 2048  ;;  %s4591_s29 = scalar_lea.hbm %s6050_s4, 8192 }
 0x404   : > { %p4588_p13 = scmp.ne.s32.totalorder %s5805_s14, %s4587_s2  ;;  %p4592_p8 = scmp.lt.s32.totalorder %s5805_s14, %s6050_s4 }
 0x405   : > { %p4593_p12 = scmp.lt.s32.totalorder %s4591_s29, %s4587_s2 }
 0x406   : > { %p4589_p10 = pnand %p4588_p13, %p6051_p5 }
 0x407   : > { %p4594_p9 = por %p4593_p12, %p4592_p8 }
 0x408   : > { %p4590_p11 = pneg %p4589_p10 }
 0x40a   : > { %p4595_p0 = pnand %p4594_p9, %p4590_p11 }
 0x40c   : > { %4598 = shalt.err (!%p4595_p0)
}
 0x40d   : > { %s4745_s9 = smov 128   ;;  %s4746_s7 = smov 8  }
 0x40e   : > { %4112 = dma.vmem_to_hbm [thread:$0]  (%p6051_p5), %s5807_s11, 2048, %s5805_s14, %s3148_s30, %s4745_s9, %s4745_s9, %s4746_s7  }
 0x40f PF: > { %p4150_p7 = scmp.ge.s32.totalorder %s4733_s26, 2  ;;  %s3179_s22 = sand.u32 1, %s4705_s19  }
 0x410   : > { %p6052_p1 = scmp.ne.s32.totalorder %s5964_s15, 0  ;;  %s3180_s10 = scalar_lea.sflag [#allocation4], %s3179_s22 }
 0x412   : > { %p4138_p6 = pnand %p4150_p7, %p6052_p1 }
 0x414   : > { %p4139_p2 = pneg %p4138_p6 }
 0x416   : > { %4676 = dma.done.wait (%p4139_p2), %s3180_s10, 2048  }
 0x417   : > { %4678 = vsyncadd (%p4139_p2), %s3180_s10, 4294965248  ;;  %s31_s26 = sadd.s32 1, %s4733_s26   ;;  %s6054_s3 = sld [smem:[#allocation22_spill]] }
 0x418   : > { %p5839_p4 = scmp.ge.s32.totalorder %s31_s26, 6   ;;  %s6055_s14 = sld [smem:[#allocation23_spill]] }
 0x419   : > { %s6056_s16 = sld [smem:[#allocation24_spill]]  ;;  %s6058_s11 = smov %s5023_s13 }
 0x41a   : > { %s6057_s8 = sld [smem:[#allocation35_spill]]  ;;  %s6064_s15 = smov %s6085_s28 }
 0x41b   : > { %s6059_s22 = sld [smem:[#allocation27_spill]]  ;;  %s6065_s17 = smov %s4701_s18 }
 0x41c   : > { %s6060_s23 = sld [smem:[#allocation28_spill]]  ;;  %s6067_s19 = smov %s4709_s20 }
 0x41d   : > { %s6061_s24 = sld [smem:[#allocation30_spill]]  ;;  %s6063_s13 = smov %s6054_s3 }
 0x41e   : > { %s6062_s25 = sld [smem:[#allocation31_spill]]  ;;  %s6068_s20 = smov %s4713_s21 }
 0x41f   : > { %s6069_s21 = smov %s6058_s11  ;;  %30 = sbr.rel (!%p5839_p4) target bundleno = 26 (0x1a), region = 153 }
 0x420   : > { %s6066_s18 = smov %s6057_s8 }
 0x424   :  { %3185 = vsyncpa [#allocation3], 1 }
 0x425   :  { %3187 = vsyncpa [#allocation3 + $0x1], 1 }
 0x426   :  { %3188 = vsyncpa [#allocation6], 1 }
 0x427   :  { %3190 = vsyncpa [#allocation6 + $0x1], 1 }
 0x428   :  { %3191 = vsyncpa [#allocation9], 1 }
 0x429   :  { %3192 = vsyncpa [#allocation12], 1 }
 0x42a   :  { %3193 = vsyncpa [#allocation4], 1 }
 0x42b   :  { %3195 = vsyncpa [#allocation4 + $0x1], 1 }

</bundles_post_ra>
